<compile_context>
chip_gen: v5e
topology: v5e:2x2
jax: 0.10.0
libtpu: 0.0.40
codegen_flags: <defaults>
</compile_context>

<pallas_src>
import functools

import jax
import jax.numpy as jnp
from jax.experimental import pallas as pl
from jax.experimental.pallas import tpu as pltpu


# ---------------------------------------------------------------------------
# In-kernel building block: one bidirectional LSTM layer (values in, values out)
# ---------------------------------------------------------------------------
def _bilstm_layer(x_flat, wih, whh, b, *, T, B, H):
    """Fused fwd+bwd LSTM layer on time-major-flattened activations.

    x_flat : (T*B, D_in)  row = t*B + b
    wih    : (D_in, 8H)   [W_ih_fwd^T | W_ih_bwd^T]   (PyTorch gate order i,f,g,o)
    whh    : (2H, 8H)     block_diag(W_hh_fwd^T, W_hh_bwd^T)
    b      : (1, 8H)      [b_ih_fwd+b_hh_fwd | b_ih_bwd+b_hh_bwd]
    returns (T*B, 2H)     rows = [h_fwd(t) | h_bwd(t)] in time-major order.
    """
    H4 = 4 * H
    # Hoisted input projection: whole sequence, both directions, one MXU call.
    gx = jnp.dot(x_flat, wih, preferred_element_type=jnp.float32) + b  # (T*B, 8H)

    h_f = jnp.zeros((B, H), jnp.float32)
    c_f = jnp.zeros((B, H), jnp.float32)
    h_b = jnp.zeros((B, H), jnp.float32)
    c_b = jnp.zeros((B, H), jnp.float32)
    ys_f = [None] * T
    ys_b = [None] * T

    def cell(gates, c):
        i = jax.nn.sigmoid(gates[:, 0 * H:1 * H])
        f = jax.nn.sigmoid(gates[:, 1 * H:2 * H])
        g = jnp.tanh(gates[:, 2 * H:3 * H])
        o = jax.nn.sigmoid(gates[:, 3 * H:4 * H])
        c_new = f * c + i * g
        h_new = o * jnp.tanh(c_new)
        return h_new, c_new

    for t in range(T):                 # T is small & static -> unrolled
        tb = T - 1 - t                 # backward direction's time index
        # One lane-dense recurrent matmul for both directions (block-diag W_hh).
        hcat = jnp.concatenate([h_f, h_b], axis=1)                     # (B, 2H)
        rec = jnp.dot(hcat, whh, preferred_element_type=jnp.float32)   # (B, 8H)
        gates_f = gx[t * B:(t + 1) * B, 0:H4] + rec[:, 0:H4]
        gates_b = gx[tb * B:(tb + 1) * B, H4:2 * H4] + rec[:, H4:2 * H4]
        h_f, c_f = cell(gates_f, c_f)
        h_b, c_b = cell(gates_b, c_b)
        ys_f[t] = h_f
        ys_b[tb] = h_b

    rows = [jnp.concatenate([ys_f[t], ys_b[t]], axis=1) for t in range(T)]
    return jnp.concatenate(rows, axis=0)                               # (T*B, 2H)


# ---------------------------------------------------------------------------
# Kernel: grid step n in {0 (L net), 1 (R net)} -> full multi-layer BiLSTM stack
# ---------------------------------------------------------------------------
def _io_encoder_kernel(*refs, num_layers, T, B, H):
    x_ref, mask_ref = refs[0], refs[1]
    w_refs = refs[2:2 + 3 * num_layers]
    enc_ref = refs[2 + 3 * num_layers]

    m = mask_ref[0]                      # (T*B, 1) this network's context mask
    h = x_ref[...] * m                   # pre-LSTM context masking
    for layer in range(num_layers):
        wih = w_refs[3 * layer][0]       # (D_in, 8H)
        whh = w_refs[3 * layer + 1][0]   # (2H, 8H)
        b = w_refs[3 * layer + 2][0]     # (1, 8H)
        h = _bilstm_layer(h, wih, whh, b, T=T, B=B, H=H)
    enc_ref[0] = (h * m).astype(enc_ref.dtype)   # post-LSTM context masking


# ---------------------------------------------------------------------------
# Parameter construction (PyTorch nn.LSTM init), pre-packed for the kernel
# ---------------------------------------------------------------------------
def make_lstm_params(key, input_size, hidden_size, num_layers):
    """U(-1/sqrt(H), 1/sqrt(H)) init; packed per layer as (wih_cat, whh_cat, b_cat)."""
    H = hidden_size
    k = hidden_size ** -0.5
    layers = []
    for layer in range(num_layers):
        d_in = input_size if layer == 0 else 2 * H
        packed = []
        for _ in range(2):  # forward, backward
            key, k1, k2, k3, k4 = jax.random.split(key, 5)
            w_ih = jax.random.uniform(k1, (4 * H, d_in), jnp.float32, -k, k)
            w_hh = jax.random.uniform(k2, (4 * H, H), jnp.float32, -k, k)
            b_ih = jax.random.uniform(k3, (4 * H,), jnp.float32, -k, k)
            b_hh = jax.random.uniform(k4, (4 * H,), jnp.float32, -k, k)
            packed.append((w_ih, w_hh, b_ih + b_hh))
        (wif, whf, bf), (wib, whb, bb) = packed
        wih_cat = jnp.concatenate([wif.T, wib.T], axis=1)              # (d_in, 8H)
        zeros = jnp.zeros((H, 4 * H), jnp.float32)
        whh_cat = jnp.concatenate(
            [jnp.concatenate([whf.T, zeros], axis=1),
             jnp.concatenate([zeros, whb.T], axis=1)], axis=0)         # (2H, 8H)
        b_cat = jnp.concatenate([bf, bb])[None, :]                     # (1, 8H)
        layers.append((wih_cat, whh_cat, b_cat))
    return layers, key


def stack_networks(params_L, params_R):
    """Stack L/R networks' per-layer weights along a leading axis of size 2."""
    return [tuple(jnp.stack([a, b], axis=0) for a, b in zip(wl, wr))
            for wl, wr in zip(params_L, params_R)]


# ---------------------------------------------------------------------------
# IO.forward
# ---------------------------------------------------------------------------
@jax.jit
def io_forward(sentence, left_mask, right_mask, target, stacked_params):
    B, T, E = sentence.shape
    num_layers = len(stacked_params)
    H = stacked_params[0][1].shape[1] // 2            # whh_cat stacked: (2, 2H, 8H)
    TB = T * B

    # Time-major (T*B)-flattened layout (row = t*B + b): every per-timestep
    # access inside the kernel becomes a static row slice, no in-kernel flips.
    x_flat = jnp.transpose(sentence, (1, 0, 2)).reshape(TB, E)
    lm_flat = jnp.transpose(left_mask, (1, 0)).reshape(TB, 1)
    rm_flat = jnp.transpose(right_mask, (1, 0)).reshape(TB, 1)
    mask_stk = jnp.stack([lm_flat, rm_flat], axis=0)  # (2, T*B, 1): [L, R]

    in_specs = [
        pl.BlockSpec((TB, E), lambda n: (0, 0)),          # shared sentence
        pl.BlockSpec((1, TB, 1), lambda n: (n, 0, 0)),    # per-network mask
    ]
    w_args = []
    for (wih, whh, b) in stacked_params:
        for w in (wih, whh, b):
            in_specs.append(pl.BlockSpec((1,) + w.shape[1:], lambda n: (n, 0, 0)))
            w_args.append(w)

    kernel = functools.partial(_io_encoder_kernel,
                               num_layers=num_layers, T=T, B=B, H=H)
    enc_stk = pl.pallas_call(
        kernel,
        out_shape=jax.ShapeDtypeStruct((2, TB, 2 * H), jnp.float32),
        grid=(2,),                                        # n=0 -> L net, n=1 -> R net
        in_specs=in_specs,
        out_specs=pl.BlockSpec((1, TB, 2 * H), lambda n: (n, 0, 0)),
        compiler_params=pltpu.CompilerParams(
            dimension_semantics=("parallel",)),           # L/R across TCs on v7x
    )(x_flat, mask_stk, *w_args)

    # Cross-network combine + target-average mask: needs both networks, so it
    # lives outside the per-network kernel (one tiny fused XLA elementwise op).
    tgt_flat = jnp.transpose(target, (1, 0)).reshape(TB, 1)
    tam_flat = 1.0 - 0.5 * (tgt_flat != 0).astype(jnp.float32)        # (T*B, 1)
    enc_flat = (enc_stk[0] + enc_stk[1]) * tam_flat                   # (T*B, 2H)
    tam_full = jnp.broadcast_to(tam_flat, enc_flat.shape)

    encoded = jnp.transpose(enc_flat.reshape(T, B, 2 * H), (1, 0, 2))
    tam = jnp.transpose(tam_full.reshape(T, B, 2 * H), (1, 0, 2))
    return encoded, tam


# ---------------------------------------------------------------------------
# Pure-JAX reference (PyTorch nn.LSTM semantics) for a numerical self-check
# ---------------------------------------------------------------------------
def io_forward_reference(sentence, left_mask, right_mask, target, stacked_params):
    B, T, E = sentence.shape
    H = stacked_params[0][1].shape[1] // 2
    hi = jax.lax.Precision.HIGHEST

    def lstm_dir(x_tm, wih_t, whh_t, b):               # x_tm: (T, B, D)
        h = jnp.zeros((B, H), jnp.float32)
        c = jnp.zeros((B, H), jnp.float32)
        ys = []
        for t in range(T):
            g = (jnp.dot(x_tm[t], wih_t, precision=hi)
                 + jnp.dot(h, whh_t, precision=hi) + b)
            i = jax.nn.sigmoid(g[:, :H])
            f = jax.nn.sigmoid(g[:, H:2 * H])
            gg = jnp.tanh(g[:, 2 * H:3 * H])
            o = jax.nn.sigmoid(g[:, 3 * H:])
            c = f * c + i * gg
            h = o * jnp.tanh(c)
            ys.append(h)
        return jnp.stack(ys, axis=0)                    # (T, B, H)

    def bilstm(x_btd, net):
        h = jnp.transpose(x_btd, (1, 0, 2))             # (T, B, D)
        for (wih_s, whh_s, b_s) in stacked_params:
            wih, whh, b = wih_s[net], whh_s[net], b_s[net][0]
            yf = lstm_dir(h, wih[:, :4 * H], whh[:H, :4 * H], b[:4 * H])
            yb = lstm_dir(h[::-1], wih[:, 4 * H:], whh[H:, 4 * H:], b[4 * H:])[::-1]
            h = jnp.concatenate([yf, yb], axis=-1)
        return jnp.transpose(h, (1, 0, 2))              # (B, T, 2H)

    le = bilstm(sentence * left_mask[..., None], 0) * left_mask[..., None]
    re = bilstm(sentence * right_mask[..., None], 1) * right_mask[..., None]
    tam = jnp.broadcast_to(
        1.0 - 0.5 * (target != 0).astype(jnp.float32)[..., None], le.shape)
    return (le + re) * tam, tam


if __name__ == "__main__":
    # IO(word_embed_dim=32, l1=2, n_hidden=16, num_layers=2)
    B, T, E, H, L1 = 2, 8, 32, 16, 2

    key = jax.random.PRNGKey(0)
    params_L, key = make_lstm_params(key, E, H, L1)
    params_R, key = make_lstm_params(key, E, H, L1)
    stacked_params = stack_networks(params_L, params_R)

    key, k_s, k_l, k_r, k_t = jax.random.split(key, 5)
    sentence = jax.random.normal(k_s, (B, T, E), jnp.float32)
    left_mask = (jax.random.uniform(k_l, (B, T)) > 0.3).astype(jnp.float32)
    right_mask = (jax.random.uniform(k_r, (B, T)) > 0.3).astype(jnp.float32)
    target = jax.random.randint(k_t, (B, T), 0, 5, jnp.int32)

    encoded, tam = io_forward(sentence, left_mask, right_mask, target,
                              stacked_params)
    jax.block_until_ready((encoded, tam))

    assert encoded.shape == (B, T, 2 * H)
    assert tam.shape == (B, T, 2 * H)
    assert bool(jnp.all(jnp.isfinite(encoded)))

    # Numerical self-check against the pure-JAX PyTorch-semantics reference.
    enc_ref, tam_ref = io_forward_reference(sentence, left_mask, right_mask,
                                            target, stacked_params)
    assert float(jnp.max(jnp.abs(encoded - enc_ref))) < 2e-2
    assert float(jnp.max(jnp.abs(tam - tam_ref))) < 1e-6

    print("KERNEL_OK")
</pallas_src>

<mosaic_0001>
module attributes {stable_mosaic.version = 11 : i64} {
  func.func @_io_encoder_kernel(%arg0: i32, %arg1: memref<16x32xf32, #tpu.memory_space<vmem>>, %arg2: memref<1x16x1xf32, #tpu.memory_space<vmem>>, %arg3: memref<1x32x128xf32, #tpu.memory_space<vmem>>, %arg4: memref<1x32x128xf32, #tpu.memory_space<vmem>>, %arg5: memref<1x1x128xf32, #tpu.memory_space<vmem>>, %arg6: memref<1x32x128xf32, #tpu.memory_space<vmem>>, %arg7: memref<1x32x128xf32, #tpu.memory_space<vmem>>, %arg8: memref<1x1x128xf32, #tpu.memory_space<vmem>>, %arg9: memref<1x16x32xf32, #tpu.memory_space<vmem>>) attributes {dimension_semantics = [#tpu.dimension_semantics<parallel>], iteration_bounds = array<i64: 2>, scalar_prefetch = 0 : i64, scratch_operands = 0 : i64, tpu.core_type = #tpu.core_type<tc>, window_params = [{pipeline_mode = #tpu.pipeline_mode<synchronous>, transform_indices = @transform_0, window_bounds = array<i64: 16, 32>}, {transform_indices = @transform_1, window_bounds = array<i64: 1, 16, 1>}, {transform_indices = @transform_2, window_bounds = array<i64: 1, 32, 128>}, {transform_indices = @transform_3, window_bounds = array<i64: 1, 32, 128>}, {transform_indices = @transform_4, window_bounds = array<i64: 1, 1, 128>}, {transform_indices = @transform_5, window_bounds = array<i64: 1, 32, 128>}, {transform_indices = @transform_6, window_bounds = array<i64: 1, 32, 128>}, {transform_indices = @transform_7, window_bounds = array<i64: 1, 1, 128>}, {transform_indices = @transform_8, window_bounds = array<i64: 1, 16, 32>}]} {
    %c0 = arith.constant 0 : index
    %c0_0 = arith.constant 0 : index
    %c0_1 = arith.constant 0 : index
    %0 = vector.load %arg2[%c0, %c0_0, %c0_1] : memref<1x16x1xf32, #tpu.memory_space<vmem>>, vector<1x16x1xf32>
    %1 = vector.shape_cast %0 : vector<1x16x1xf32> to vector<16x1xf32>
    %c0_2 = arith.constant 0 : index
    %c0_3 = arith.constant 0 : index
    %2 = vector.load %arg1[%c0_2, %c0_3] : memref<16x32xf32, #tpu.memory_space<vmem>>, vector<16x32xf32>
    %3 = vector.broadcast %1 : vector<16x1xf32> to vector<16x32xf32>
    %4 = arith.mulf %2, %3 : vector<16x32xf32>
    %c0_4 = arith.constant 0 : index
    %c0_5 = arith.constant 0 : index
    %c0_6 = arith.constant 0 : index
    %5 = vector.load %arg3[%c0_4, %c0_5, %c0_6] : memref<1x32x128xf32, #tpu.memory_space<vmem>>, vector<1x32x128xf32>
    %6 = vector.shape_cast %5 : vector<1x32x128xf32> to vector<32x128xf32>
    %c0_7 = arith.constant 0 : index
    %c0_8 = arith.constant 0 : index
    %c0_9 = arith.constant 0 : index
    %7 = vector.load %arg4[%c0_7, %c0_8, %c0_9] : memref<1x32x128xf32, #tpu.memory_space<vmem>>, vector<1x32x128xf32>
    %8 = vector.shape_cast %7 : vector<1x32x128xf32> to vector<32x128xf32>
    %c0_10 = arith.constant 0 : index
    %c0_11 = arith.constant 0 : index
    %c0_12 = arith.constant 0 : index
    %9 = vector.load %arg5[%c0_10, %c0_11, %c0_12] : memref<1x1x128xf32, #tpu.memory_space<vmem>>, vector<1x1x128xf32>
    %10 = vector.shape_cast %9 : vector<1x1x128xf32> to vector<1x128xf32>
    %cst = arith.constant dense<0.000000e+00> : vector<16x128xf32>
    %11 = tpu.matmul %4, %6, %cst {dimension_numbers = #tpu.dot_dimension_numbers<[1], [0], [0], [1], [0, 0, 1, 1], [], []>} : vector<16x32xf32>, vector<32x128xf32>, vector<16x128xf32> -> vector<16x128xf32>
    %12 = vector.broadcast %10 : vector<1x128xf32> to vector<16x128xf32>
    %13 = arith.addf %11, %12 : vector<16x128xf32>
    %cst_13 = arith.constant 0.000000e+00 : f32
    %14 = vector.broadcast %cst_13 : f32 to vector<2x16xf32>
    %cst_14 = arith.constant 0.000000e+00 : f32
    %15 = vector.broadcast %cst_14 : f32 to vector<2x16xf32>
    %cst_15 = arith.constant 0.000000e+00 : f32
    %16 = vector.broadcast %cst_15 : f32 to vector<2x16xf32>
    %cst_16 = arith.constant 0.000000e+00 : f32
    %17 = vector.broadcast %cst_16 : f32 to vector<2x16xf32>
    %18 = tpu.concatenate %14, %16 in 1 : vector<2x16xf32>, vector<2x16xf32> -> vector<2x32xf32>
    %cst_17 = arith.constant dense<0.000000e+00> : vector<2x128xf32>
    %19 = tpu.matmul %18, %8, %cst_17 {dimension_numbers = #tpu.dot_dimension_numbers<[1], [0], [0], [1], [0, 0, 1, 1], [], []>} : vector<2x32xf32>, vector<32x128xf32>, vector<2x128xf32> -> vector<2x128xf32>
    %20 = vector.extract_strided_slice %13 {offsets = [0, 0], sizes = [2, 64], strides = [1, 1]} : vector<16x128xf32> to vector<2x64xf32>
    %21 = vector.extract_strided_slice %19 {offsets = [0, 0], sizes = [2, 64], strides = [1, 1]} : vector<2x128xf32> to vector<2x64xf32>
    %22 = arith.addf %20, %21 : vector<2x64xf32>
    %23 = vector.extract_strided_slice %13 {offsets = [14, 64], sizes = [2, 64], strides = [1, 1]} : vector<16x128xf32> to vector<2x64xf32>
    %24 = vector.extract_strided_slice %19 {offsets = [0, 64], sizes = [2, 64], strides = [1, 1]} : vector<2x128xf32> to vector<2x64xf32>
    %25 = arith.addf %23, %24 : vector<2x64xf32>
    %26 = vector.extract_strided_slice %22 {offsets = [0, 0], sizes = [2, 16], strides = [1, 1]} : vector<2x64xf32> to vector<2x16xf32>
    %27 = arith.negf %26 : vector<2x16xf32>
    %28 = math.exp %27 : vector<2x16xf32>
    %cst_18 = arith.constant 1.000000e+00 : f32
    %29 = vector.broadcast %cst_18 : f32 to vector<2x16xf32>
    %30 = arith.addf %29, %28 : vector<2x16xf32>
    %31 = arith.divf %29, %30 : vector<2x16xf32>
    %32 = vector.extract_strided_slice %22 {offsets = [0, 16], sizes = [2, 16], strides = [1, 1]} : vector<2x64xf32> to vector<2x16xf32>
    %33 = arith.negf %32 : vector<2x16xf32>
    %34 = math.exp %33 : vector<2x16xf32>
    %cst_19 = arith.constant 1.000000e+00 : f32
    %35 = vector.broadcast %cst_19 : f32 to vector<2x16xf32>
    %36 = arith.addf %35, %34 : vector<2x16xf32>
    %37 = arith.divf %35, %36 : vector<2x16xf32>
    %38 = vector.extract_strided_slice %22 {offsets = [0, 32], sizes = [2, 16], strides = [1, 1]} : vector<2x64xf32> to vector<2x16xf32>
    %39 = math.tanh %38 : vector<2x16xf32>
    %40 = vector.extract_strided_slice %22 {offsets = [0, 48], sizes = [2, 16], strides = [1, 1]} : vector<2x64xf32> to vector<2x16xf32>
    %41 = arith.negf %40 : vector<2x16xf32>
    %42 = math.exp %41 : vector<2x16xf32>
    %cst_20 = arith.constant 1.000000e+00 : f32
    %43 = vector.broadcast %cst_20 : f32 to vector<2x16xf32>
    %44 = arith.addf %43, %42 : vector<2x16xf32>
    %45 = arith.divf %43, %44 : vector<2x16xf32>
    %46 = arith.mulf %37, %15 : vector<2x16xf32>
    %47 = arith.mulf %31, %39 : vector<2x16xf32>
    %48 = arith.addf %46, %47 : vector<2x16xf32>
    %49 = math.tanh %48 : vector<2x16xf32>
    %50 = arith.mulf %45, %49 : vector<2x16xf32>
    %51 = vector.extract_strided_slice %25 {offsets = [0, 0], sizes = [2, 16], strides = [1, 1]} : vector<2x64xf32> to vector<2x16xf32>
    %52 = arith.negf %51 : vector<2x16xf32>
    %53 = math.exp %52 : vector<2x16xf32>
    %cst_21 = arith.constant 1.000000e+00 : f32
    %54 = vector.broadcast %cst_21 : f32 to vector<2x16xf32>
    %55 = arith.addf %54, %53 : vector<2x16xf32>
    %56 = arith.divf %54, %55 : vector<2x16xf32>
    %57 = vector.extract_strided_slice %25 {offsets = [0, 16], sizes = [2, 16], strides = [1, 1]} : vector<2x64xf32> to vector<2x16xf32>
    %58 = arith.negf %57 : vector<2x16xf32>
    %59 = math.exp %58 : vector<2x16xf32>
    %cst_22 = arith.constant 1.000000e+00 : f32
    %60 = vector.broadcast %cst_22 : f32 to vector<2x16xf32>
    %61 = arith.addf %60, %59 : vector<2x16xf32>
    %62 = arith.divf %60, %61 : vector<2x16xf32>
    %63 = vector.extract_strided_slice %25 {offsets = [0, 32], sizes = [2, 16], strides = [1, 1]} : vector<2x64xf32> to vector<2x16xf32>
    %64 = math.tanh %63 : vector<2x16xf32>
    %65 = vector.extract_strided_slice %25 {offsets = [0, 48], sizes = [2, 16], strides = [1, 1]} : vector<2x64xf32> to vector<2x16xf32>
    %66 = arith.negf %65 : vector<2x16xf32>
    %67 = math.exp %66 : vector<2x16xf32>
    %cst_23 = arith.constant 1.000000e+00 : f32
    %68 = vector.broadcast %cst_23 : f32 to vector<2x16xf32>
    %69 = arith.addf %68, %67 : vector<2x16xf32>
    %70 = arith.divf %68, %69 : vector<2x16xf32>
    %71 = arith.mulf %62, %17 : vector<2x16xf32>
    %72 = arith.mulf %56, %64 : vector<2x16xf32>
    %73 = arith.addf %71, %72 : vector<2x16xf32>
    %74 = math.tanh %73 : vector<2x16xf32>
    %75 = arith.mulf %70, %74 : vector<2x16xf32>
    %76 = tpu.concatenate %50, %75 in 1 : vector<2x16xf32>, vector<2x16xf32> -> vector<2x32xf32>
    %cst_24 = arith.constant dense<0.000000e+00> : vector<2x128xf32>
    %77 = tpu.matmul %76, %8, %cst_24 {dimension_numbers = #tpu.dot_dimension_numbers<[1], [0], [0], [1], [0, 0, 1, 1], [], []>} : vector<2x32xf32>, vector<32x128xf32>, vector<2x128xf32> -> vector<2x128xf32>
    %78 = vector.extract_strided_slice %13 {offsets = [2, 0], sizes = [2, 64], strides = [1, 1]} : vector<16x128xf32> to vector<2x64xf32>
    %79 = vector.extract_strided_slice %77 {offsets = [0, 0], sizes = [2, 64], strides = [1, 1]} : vector<2x128xf32> to vector<2x64xf32>
    %80 = arith.addf %78, %79 : vector<2x64xf32>
    %81 = vector.extract_strided_slice %13 {offsets = [12, 64], sizes = [2, 64], strides = [1, 1]} : vector<16x128xf32> to vector<2x64xf32>
    %82 = vector.extract_strided_slice %77 {offsets = [0, 64], sizes = [2, 64], strides = [1, 1]} : vector<2x128xf32> to vector<2x64xf32>
    %83 = arith.addf %81, %82 : vector<2x64xf32>
    %84 = vector.extract_strided_slice %80 {offsets = [0, 0], sizes = [2, 16], strides = [1, 1]} : vector<2x64xf32> to vector<2x16xf32>
    %85 = arith.negf %84 : vector<2x16xf32>
    %86 = math.exp %85 : vector<2x16xf32>
    %cst_25 = arith.constant 1.000000e+00 : f32
    %87 = vector.broadcast %cst_25 : f32 to vector<2x16xf32>
    %88 = arith.addf %87, %86 : vector<2x16xf32>
    %89 = arith.divf %87, %88 : vector<2x16xf32>
    %90 = vector.extract_strided_slice %80 {offsets = [0, 16], sizes = [2, 16], strides = [1, 1]} : vector<2x64xf32> to vector<2x16xf32>
    %91 = arith.negf %90 : vector<2x16xf32>
    %92 = math.exp %91 : vector<2x16xf32>
    %cst_26 = arith.constant 1.000000e+00 : f32
    %93 = vector.broadcast %cst_26 : f32 to vector<2x16xf32>
    %94 = arith.addf %93, %92 : vector<2x16xf32>
    %95 = arith.divf %93, %94 : vector<2x16xf32>
    %96 = vector.extract_strided_slice %80 {offsets = [0, 32], sizes = [2, 16], strides = [1, 1]} : vector<2x64xf32> to vector<2x16xf32>
    %97 = math.tanh %96 : vector<2x16xf32>
    %98 = vector.extract_strided_slice %80 {offsets = [0, 48], sizes = [2, 16], strides = [1, 1]} : vector<2x64xf32> to vector<2x16xf32>
    %99 = arith.negf %98 : vector<2x16xf32>
    %100 = math.exp %99 : vector<2x16xf32>
    %cst_27 = arith.constant 1.000000e+00 : f32
    %101 = vector.broadcast %cst_27 : f32 to vector<2x16xf32>
    %102 = arith.addf %101, %100 : vector<2x16xf32>
    %103 = arith.divf %101, %102 : vector<2x16xf32>
    %104 = arith.mulf %95, %48 : vector<2x16xf32>
    %105 = arith.mulf %89, %97 : vector<2x16xf32>
    %106 = arith.addf %104, %105 : vector<2x16xf32>
    %107 = math.tanh %106 : vector<2x16xf32>
    %108 = arith.mulf %103, %107 : vector<2x16xf32>
    %109 = vector.extract_strided_slice %83 {offsets = [0, 0], sizes = [2, 16], strides = [1, 1]} : vector<2x64xf32> to vector<2x16xf32>
    %110 = arith.negf %109 : vector<2x16xf32>
    %111 = math.exp %110 : vector<2x16xf32>
    %cst_28 = arith.constant 1.000000e+00 : f32
    %112 = vector.broadcast %cst_28 : f32 to vector<2x16xf32>
    %113 = arith.addf %112, %111 : vector<2x16xf32>
    %114 = arith.divf %112, %113 : vector<2x16xf32>
    %115 = vector.extract_strided_slice %83 {offsets = [0, 16], sizes = [2, 16], strides = [1, 1]} : vector<2x64xf32> to vector<2x16xf32>
    %116 = arith.negf %115 : vector<2x16xf32>
    %117 = math.exp %116 : vector<2x16xf32>
    %cst_29 = arith.constant 1.000000e+00 : f32
    %118 = vector.broadcast %cst_29 : f32 to vector<2x16xf32>
    %119 = arith.addf %118, %117 : vector<2x16xf32>
    %120 = arith.divf %118, %119 : vector<2x16xf32>
    %121 = vector.extract_strided_slice %83 {offsets = [0, 32], sizes = [2, 16], strides = [1, 1]} : vector<2x64xf32> to vector<2x16xf32>
    %122 = math.tanh %121 : vector<2x16xf32>
    %123 = vector.extract_strided_slice %83 {offsets = [0, 48], sizes = [2, 16], strides = [1, 1]} : vector<2x64xf32> to vector<2x16xf32>
    %124 = arith.negf %123 : vector<2x16xf32>
    %125 = math.exp %124 : vector<2x16xf32>
    %cst_30 = arith.constant 1.000000e+00 : f32
    %126 = vector.broadcast %cst_30 : f32 to vector<2x16xf32>
    %127 = arith.addf %126, %125 : vector<2x16xf32>
    %128 = arith.divf %126, %127 : vector<2x16xf32>
    %129 = arith.mulf %120, %73 : vector<2x16xf32>
    %130 = arith.mulf %114, %122 : vector<2x16xf32>
    %131 = arith.addf %129, %130 : vector<2x16xf32>
    %132 = math.tanh %131 : vector<2x16xf32>
    %133 = arith.mulf %128, %132 : vector<2x16xf32>
    %134 = tpu.concatenate %108, %133 in 1 : vector<2x16xf32>, vector<2x16xf32> -> vector<2x32xf32>
    %cst_31 = arith.constant dense<0.000000e+00> : vector<2x128xf32>
    %135 = tpu.matmul %134, %8, %cst_31 {dimension_numbers = #tpu.dot_dimension_numbers<[1], [0], [0], [1], [0, 0, 1, 1], [], []>} : vector<2x32xf32>, vector<32x128xf32>, vector<2x128xf32> -> vector<2x128xf32>
    %136 = vector.extract_strided_slice %13 {offsets = [4, 0], sizes = [2, 64], strides = [1, 1]} : vector<16x128xf32> to vector<2x64xf32>
    %137 = vector.extract_strided_slice %135 {offsets = [0, 0], sizes = [2, 64], strides = [1, 1]} : vector<2x128xf32> to vector<2x64xf32>
    %138 = arith.addf %136, %137 : vector<2x64xf32>
    %139 = vector.extract_strided_slice %13 {offsets = [10, 64], sizes = [2, 64], strides = [1, 1]} : vector<16x128xf32> to vector<2x64xf32>
    %140 = vector.extract_strided_slice %135 {offsets = [0, 64], sizes = [2, 64], strides = [1, 1]} : vector<2x128xf32> to vector<2x64xf32>
    %141 = arith.addf %139, %140 : vector<2x64xf32>
    %142 = vector.extract_strided_slice %138 {offsets = [0, 0], sizes = [2, 16], strides = [1, 1]} : vector<2x64xf32> to vector<2x16xf32>
    %143 = arith.negf %142 : vector<2x16xf32>
    %144 = math.exp %143 : vector<2x16xf32>
    %cst_32 = arith.constant 1.000000e+00 : f32
    %145 = vector.broadcast %cst_32 : f32 to vector<2x16xf32>
    %146 = arith.addf %145, %144 : vector<2x16xf32>
    %147 = arith.divf %145, %146 : vector<2x16xf32>
    %148 = vector.extract_strided_slice %138 {offsets = [0, 16], sizes = [2, 16], strides = [1, 1]} : vector<2x64xf32> to vector<2x16xf32>
    %149 = arith.negf %148 : vector<2x16xf32>
    %150 = math.exp %149 : vector<2x16xf32>
    %cst_33 = arith.constant 1.000000e+00 : f32
    %151 = vector.broadcast %cst_33 : f32 to vector<2x16xf32>
    %152 = arith.addf %151, %150 : vector<2x16xf32>
    %153 = arith.divf %151, %152 : vector<2x16xf32>
    %154 = vector.extract_strided_slice %138 {offsets = [0, 32], sizes = [2, 16], strides = [1, 1]} : vector<2x64xf32> to vector<2x16xf32>
    %155 = math.tanh %154 : vector<2x16xf32>
    %156 = vector.extract_strided_slice %138 {offsets = [0, 48], sizes = [2, 16], strides = [1, 1]} : vector<2x64xf32> to vector<2x16xf32>
    %157 = arith.negf %156 : vector<2x16xf32>
    %158 = math.exp %157 : vector<2x16xf32>
    %cst_34 = arith.constant 1.000000e+00 : f32
    %159 = vector.broadcast %cst_34 : f32 to vector<2x16xf32>
    %160 = arith.addf %159, %158 : vector<2x16xf32>
    %161 = arith.divf %159, %160 : vector<2x16xf32>
    %162 = arith.mulf %153, %106 : vector<2x16xf32>
    %163 = arith.mulf %147, %155 : vector<2x16xf32>
    %164 = arith.addf %162, %163 : vector<2x16xf32>
    %165 = math.tanh %164 : vector<2x16xf32>
    %166 = arith.mulf %161, %165 : vector<2x16xf32>
    %167 = vector.extract_strided_slice %141 {offsets = [0, 0], sizes = [2, 16], strides = [1, 1]} : vector<2x64xf32> to vector<2x16xf32>
    %168 = arith.negf %167 : vector<2x16xf32>
    %169 = math.exp %168 : vector<2x16xf32>
    %cst_35 = arith.constant 1.000000e+00 : f32
    %170 = vector.broadcast %cst_35 : f32 to vector<2x16xf32>
    %171 = arith.addf %170, %169 : vector<2x16xf32>
    %172 = arith.divf %170, %171 : vector<2x16xf32>
    %173 = vector.extract_strided_slice %141 {offsets = [0, 16], sizes = [2, 16], strides = [1, 1]} : vector<2x64xf32> to vector<2x16xf32>
    %174 = arith.negf %173 : vector<2x16xf32>
    %175 = math.exp %174 : vector<2x16xf32>
    %cst_36 = arith.constant 1.000000e+00 : f32
    %176 = vector.broadcast %cst_36 : f32 to vector<2x16xf32>
    %177 = arith.addf %176, %175 : vector<2x16xf32>
    %178 = arith.divf %176, %177 : vector<2x16xf32>
    %179 = vector.extract_strided_slice %141 {offsets = [0, 32], sizes = [2, 16], strides = [1, 1]} : vector<2x64xf32> to vector<2x16xf32>
    %180 = math.tanh %179 : vector<2x16xf32>
    %181 = vector.extract_strided_slice %141 {offsets = [0, 48], sizes = [2, 16], strides = [1, 1]} : vector<2x64xf32> to vector<2x16xf32>
    %182 = arith.negf %181 : vector<2x16xf32>
    %183 = math.exp %182 : vector<2x16xf32>
    %cst_37 = arith.constant 1.000000e+00 : f32
    %184 = vector.broadcast %cst_37 : f32 to vector<2x16xf32>
    %185 = arith.addf %184, %183 : vector<2x16xf32>
    %186 = arith.divf %184, %185 : vector<2x16xf32>
    %187 = arith.mulf %178, %131 : vector<2x16xf32>
    %188 = arith.mulf %172, %180 : vector<2x16xf32>
    %189 = arith.addf %187, %188 : vector<2x16xf32>
    %190 = math.tanh %189 : vector<2x16xf32>
    %191 = arith.mulf %186, %190 : vector<2x16xf32>
    %192 = tpu.concatenate %166, %191 in 1 : vector<2x16xf32>, vector<2x16xf32> -> vector<2x32xf32>
    %cst_38 = arith.constant dense<0.000000e+00> : vector<2x128xf32>
    %193 = tpu.matmul %192, %8, %cst_38 {dimension_numbers = #tpu.dot_dimension_numbers<[1], [0], [0], [1], [0, 0, 1, 1], [], []>} : vector<2x32xf32>, vector<32x128xf32>, vector<2x128xf32> -> vector<2x128xf32>
    %194 = vector.extract_strided_slice %13 {offsets = [6, 0], sizes = [2, 64], strides = [1, 1]} : vector<16x128xf32> to vector<2x64xf32>
    %195 = vector.extract_strided_slice %193 {offsets = [0, 0], sizes = [2, 64], strides = [1, 1]} : vector<2x128xf32> to vector<2x64xf32>
    %196 = arith.addf %194, %195 : vector<2x64xf32>
    %197 = vector.extract_strided_slice %13 {offsets = [8, 64], sizes = [2, 64], strides = [1, 1]} : vector<16x128xf32> to vector<2x64xf32>
    %198 = vector.extract_strided_slice %193 {offsets = [0, 64], sizes = [2, 64], strides = [1, 1]} : vector<2x128xf32> to vector<2x64xf32>
    %199 = arith.addf %197, %198 : vector<2x64xf32>
    %200 = vector.extract_strided_slice %196 {offsets = [0, 0], sizes = [2, 16], strides = [1, 1]} : vector<2x64xf32> to vector<2x16xf32>
    %201 = arith.negf %200 : vector<2x16xf32>
    %202 = math.exp %201 : vector<2x16xf32>
    %cst_39 = arith.constant 1.000000e+00 : f32
    %203 = vector.broadcast %cst_39 : f32 to vector<2x16xf32>
    %204 = arith.addf %203, %202 : vector<2x16xf32>
    %205 = arith.divf %203, %204 : vector<2x16xf32>
    %206 = vector.extract_strided_slice %196 {offsets = [0, 16], sizes = [2, 16], strides = [1, 1]} : vector<2x64xf32> to vector<2x16xf32>
    %207 = arith.negf %206 : vector<2x16xf32>
    %208 = math.exp %207 : vector<2x16xf32>
    %cst_40 = arith.constant 1.000000e+00 : f32
    %209 = vector.broadcast %cst_40 : f32 to vector<2x16xf32>
    %210 = arith.addf %209, %208 : vector<2x16xf32>
    %211 = arith.divf %209, %210 : vector<2x16xf32>
    %212 = vector.extract_strided_slice %196 {offsets = [0, 32], sizes = [2, 16], strides = [1, 1]} : vector<2x64xf32> to vector<2x16xf32>
    %213 = math.tanh %212 : vector<2x16xf32>
    %214 = vector.extract_strided_slice %196 {offsets = [0, 48], sizes = [2, 16], strides = [1, 1]} : vector<2x64xf32> to vector<2x16xf32>
    %215 = arith.negf %214 : vector<2x16xf32>
    %216 = math.exp %215 : vector<2x16xf32>
    %cst_41 = arith.constant 1.000000e+00 : f32
    %217 = vector.broadcast %cst_41 : f32 to vector<2x16xf32>
    %218 = arith.addf %217, %216 : vector<2x16xf32>
    %219 = arith.divf %217, %218 : vector<2x16xf32>
    %220 = arith.mulf %211, %164 : vector<2x16xf32>
    %221 = arith.mulf %205, %213 : vector<2x16xf32>
    %222 = arith.addf %220, %221 : vector<2x16xf32>
    %223 = math.tanh %222 : vector<2x16xf32>
    %224 = arith.mulf %219, %223 : vector<2x16xf32>
    %225 = vector.extract_strided_slice %199 {offsets = [0, 0], sizes = [2, 16], strides = [1, 1]} : vector<2x64xf32> to vector<2x16xf32>
    %226 = arith.negf %225 : vector<2x16xf32>
    %227 = math.exp %226 : vector<2x16xf32>
    %cst_42 = arith.constant 1.000000e+00 : f32
    %228 = vector.broadcast %cst_42 : f32 to vector<2x16xf32>
    %229 = arith.addf %228, %227 : vector<2x16xf32>
    %230 = arith.divf %228, %229 : vector<2x16xf32>
    %231 = vector.extract_strided_slice %199 {offsets = [0, 16], sizes = [2, 16], strides = [1, 1]} : vector<2x64xf32> to vector<2x16xf32>
    %232 = arith.negf %231 : vector<2x16xf32>
    %233 = math.exp %232 : vector<2x16xf32>
    %cst_43 = arith.constant 1.000000e+00 : f32
    %234 = vector.broadcast %cst_43 : f32 to vector<2x16xf32>
    %235 = arith.addf %234, %233 : vector<2x16xf32>
    %236 = arith.divf %234, %235 : vector<2x16xf32>
    %237 = vector.extract_strided_slice %199 {offsets = [0, 32], sizes = [2, 16], strides = [1, 1]} : vector<2x64xf32> to vector<2x16xf32>
    %238 = math.tanh %237 : vector<2x16xf32>
    %239 = vector.extract_strided_slice %199 {offsets = [0, 48], sizes = [2, 16], strides = [1, 1]} : vector<2x64xf32> to vector<2x16xf32>
    %240 = arith.negf %239 : vector<2x16xf32>
    %241 = math.exp %240 : vector<2x16xf32>
    %cst_44 = arith.constant 1.000000e+00 : f32
    %242 = vector.broadcast %cst_44 : f32 to vector<2x16xf32>
    %243 = arith.addf %242, %241 : vector<2x16xf32>
    %244 = arith.divf %242, %243 : vector<2x16xf32>
    %245 = arith.mulf %236, %189 : vector<2x16xf32>
    %246 = arith.mulf %230, %238 : vector<2x16xf32>
    %247 = arith.addf %245, %246 : vector<2x16xf32>
    %248 = math.tanh %247 : vector<2x16xf32>
    %249 = arith.mulf %244, %248 : vector<2x16xf32>
    %250 = tpu.concatenate %224, %249 in 1 : vector<2x16xf32>, vector<2x16xf32> -> vector<2x32xf32>
    %cst_45 = arith.constant dense<0.000000e+00> : vector<2x128xf32>
    %251 = tpu.matmul %250, %8, %cst_45 {dimension_numbers = #tpu.dot_dimension_numbers<[1], [0], [0], [1], [0, 0, 1, 1], [], []>} : vector<2x32xf32>, vector<32x128xf32>, vector<2x128xf32> -> vector<2x128xf32>
    %252 = vector.extract_strided_slice %13 {offsets = [8, 0], sizes = [2, 64], strides = [1, 1]} : vector<16x128xf32> to vector<2x64xf32>
    %253 = vector.extract_strided_slice %251 {offsets = [0, 0], sizes = [2, 64], strides = [1, 1]} : vector<2x128xf32> to vector<2x64xf32>
    %254 = arith.addf %252, %253 : vector<2x64xf32>
    %255 = vector.extract_strided_slice %13 {offsets = [6, 64], sizes = [2, 64], strides = [1, 1]} : vector<16x128xf32> to vector<2x64xf32>
    %256 = vector.extract_strided_slice %251 {offsets = [0, 64], sizes = [2, 64], strides = [1, 1]} : vector<2x128xf32> to vector<2x64xf32>
    %257 = arith.addf %255, %256 : vector<2x64xf32>
    %258 = vector.extract_strided_slice %254 {offsets = [0, 0], sizes = [2, 16], strides = [1, 1]} : vector<2x64xf32> to vector<2x16xf32>
    %259 = arith.negf %258 : vector<2x16xf32>
    %260 = math.exp %259 : vector<2x16xf32>
    %cst_46 = arith.constant 1.000000e+00 : f32
    %261 = vector.broadcast %cst_46 : f32 to vector<2x16xf32>
    %262 = arith.addf %261, %260 : vector<2x16xf32>
    %263 = arith.divf %261, %262 : vector<2x16xf32>
    %264 = vector.extract_strided_slice %254 {offsets = [0, 16], sizes = [2, 16], strides = [1, 1]} : vector<2x64xf32> to vector<2x16xf32>
    %265 = arith.negf %264 : vector<2x16xf32>
    %266 = math.exp %265 : vector<2x16xf32>
    %cst_47 = arith.constant 1.000000e+00 : f32
    %267 = vector.broadcast %cst_47 : f32 to vector<2x16xf32>
    %268 = arith.addf %267, %266 : vector<2x16xf32>
    %269 = arith.divf %267, %268 : vector<2x16xf32>
    %270 = vector.extract_strided_slice %254 {offsets = [0, 32], sizes = [2, 16], strides = [1, 1]} : vector<2x64xf32> to vector<2x16xf32>
    %271 = math.tanh %270 : vector<2x16xf32>
    %272 = vector.extract_strided_slice %254 {offsets = [0, 48], sizes = [2, 16], strides = [1, 1]} : vector<2x64xf32> to vector<2x16xf32>
    %273 = arith.negf %272 : vector<2x16xf32>
    %274 = math.exp %273 : vector<2x16xf32>
    %cst_48 = arith.constant 1.000000e+00 : f32
    %275 = vector.broadcast %cst_48 : f32 to vector<2x16xf32>
    %276 = arith.addf %275, %274 : vector<2x16xf32>
    %277 = arith.divf %275, %276 : vector<2x16xf32>
    %278 = arith.mulf %269, %222 : vector<2x16xf32>
    %279 = arith.mulf %263, %271 : vector<2x16xf32>
    %280 = arith.addf %278, %279 : vector<2x16xf32>
    %281 = math.tanh %280 : vector<2x16xf32>
    %282 = arith.mulf %277, %281 : vector<2x16xf32>
    %283 = vector.extract_strided_slice %257 {offsets = [0, 0], sizes = [2, 16], strides = [1, 1]} : vector<2x64xf32> to vector<2x16xf32>
    %284 = arith.negf %283 : vector<2x16xf32>
    %285 = math.exp %284 : vector<2x16xf32>
    %cst_49 = arith.constant 1.000000e+00 : f32
    %286 = vector.broadcast %cst_49 : f32 to vector<2x16xf32>
    %287 = arith.addf %286, %285 : vector<2x16xf32>
    %288 = arith.divf %286, %287 : vector<2x16xf32>
    %289 = vector.extract_strided_slice %257 {offsets = [0, 16], sizes = [2, 16], strides = [1, 1]} : vector<2x64xf32> to vector<2x16xf32>
    %290 = arith.negf %289 : vector<2x16xf32>
    %291 = math.exp %290 : vector<2x16xf32>
    %cst_50 = arith.constant 1.000000e+00 : f32
    %292 = vector.broadcast %cst_50 : f32 to vector<2x16xf32>
    %293 = arith.addf %292, %291 : vector<2x16xf32>
    %294 = arith.divf %292, %293 : vector<2x16xf32>
    %295 = vector.extract_strided_slice %257 {offsets = [0, 32], sizes = [2, 16], strides = [1, 1]} : vector<2x64xf32> to vector<2x16xf32>
    %296 = math.tanh %295 : vector<2x16xf32>
    %297 = vector.extract_strided_slice %257 {offsets = [0, 48], sizes = [2, 16], strides = [1, 1]} : vector<2x64xf32> to vector<2x16xf32>
    %298 = arith.negf %297 : vector<2x16xf32>
    %299 = math.exp %298 : vector<2x16xf32>
    %cst_51 = arith.constant 1.000000e+00 : f32
    %300 = vector.broadcast %cst_51 : f32 to vector<2x16xf32>
    %301 = arith.addf %300, %299 : vector<2x16xf32>
    %302 = arith.divf %300, %301 : vector<2x16xf32>
    %303 = arith.mulf %294, %247 : vector<2x16xf32>
    %304 = arith.mulf %288, %296 : vector<2x16xf32>
    %305 = arith.addf %303, %304 : vector<2x16xf32>
    %306 = math.tanh %305 : vector<2x16xf32>
    %307 = arith.mulf %302, %306 : vector<2x16xf32>
    %308 = tpu.concatenate %282, %307 in 1 : vector<2x16xf32>, vector<2x16xf32> -> vector<2x32xf32>
    %cst_52 = arith.constant dense<0.000000e+00> : vector<2x128xf32>
    %309 = tpu.matmul %308, %8, %cst_52 {dimension_numbers = #tpu.dot_dimension_numbers<[1], [0], [0], [1], [0, 0, 1, 1], [], []>} : vector<2x32xf32>, vector<32x128xf32>, vector<2x128xf32> -> vector<2x128xf32>
    %310 = vector.extract_strided_slice %13 {offsets = [10, 0], sizes = [2, 64], strides = [1, 1]} : vector<16x128xf32> to vector<2x64xf32>
    %311 = vector.extract_strided_slice %309 {offsets = [0, 0], sizes = [2, 64], strides = [1, 1]} : vector<2x128xf32> to vector<2x64xf32>
    %312 = arith.addf %310, %311 : vector<2x64xf32>
    %313 = vector.extract_strided_slice %13 {offsets = [4, 64], sizes = [2, 64], strides = [1, 1]} : vector<16x128xf32> to vector<2x64xf32>
    %314 = vector.extract_strided_slice %309 {offsets = [0, 64], sizes = [2, 64], strides = [1, 1]} : vector<2x128xf32> to vector<2x64xf32>
    %315 = arith.addf %313, %314 : vector<2x64xf32>
    %316 = vector.extract_strided_slice %312 {offsets = [0, 0], sizes = [2, 16], strides = [1, 1]} : vector<2x64xf32> to vector<2x16xf32>
    %317 = arith.negf %316 : vector<2x16xf32>
    %318 = math.exp %317 : vector<2x16xf32>
    %cst_53 = arith.constant 1.000000e+00 : f32
    %319 = vector.broadcast %cst_53 : f32 to vector<2x16xf32>
    %320 = arith.addf %319, %318 : vector<2x16xf32>
    %321 = arith.divf %319, %320 : vector<2x16xf32>
    %322 = vector.extract_strided_slice %312 {offsets = [0, 16], sizes = [2, 16], strides = [1, 1]} : vector<2x64xf32> to vector<2x16xf32>
    %323 = arith.negf %322 : vector<2x16xf32>
    %324 = math.exp %323 : vector<2x16xf32>
    %cst_54 = arith.constant 1.000000e+00 : f32
    %325 = vector.broadcast %cst_54 : f32 to vector<2x16xf32>
    %326 = arith.addf %325, %324 : vector<2x16xf32>
    %327 = arith.divf %325, %326 : vector<2x16xf32>
    %328 = vector.extract_strided_slice %312 {offsets = [0, 32], sizes = [2, 16], strides = [1, 1]} : vector<2x64xf32> to vector<2x16xf32>
    %329 = math.tanh %328 : vector<2x16xf32>
    %330 = vector.extract_strided_slice %312 {offsets = [0, 48], sizes = [2, 16], strides = [1, 1]} : vector<2x64xf32> to vector<2x16xf32>
    %331 = arith.negf %330 : vector<2x16xf32>
    %332 = math.exp %331 : vector<2x16xf32>
    %cst_55 = arith.constant 1.000000e+00 : f32
    %333 = vector.broadcast %cst_55 : f32 to vector<2x16xf32>
    %334 = arith.addf %333, %332 : vector<2x16xf32>
    %335 = arith.divf %333, %334 : vector<2x16xf32>
    %336 = arith.mulf %327, %280 : vector<2x16xf32>
    %337 = arith.mulf %321, %329 : vector<2x16xf32>
    %338 = arith.addf %336, %337 : vector<2x16xf32>
    %339 = math.tanh %338 : vector<2x16xf32>
    %340 = arith.mulf %335, %339 : vector<2x16xf32>
    %341 = vector.extract_strided_slice %315 {offsets = [0, 0], sizes = [2, 16], strides = [1, 1]} : vector<2x64xf32> to vector<2x16xf32>
    %342 = arith.negf %341 : vector<2x16xf32>
    %343 = math.exp %342 : vector<2x16xf32>
    %cst_56 = arith.constant 1.000000e+00 : f32
    %344 = vector.broadcast %cst_56 : f32 to vector<2x16xf32>
    %345 = arith.addf %344, %343 : vector<2x16xf32>
    %346 = arith.divf %344, %345 : vector<2x16xf32>
    %347 = vector.extract_strided_slice %315 {offsets = [0, 16], sizes = [2, 16], strides = [1, 1]} : vector<2x64xf32> to vector<2x16xf32>
    %348 = arith.negf %347 : vector<2x16xf32>
    %349 = math.exp %348 : vector<2x16xf32>
    %cst_57 = arith.constant 1.000000e+00 : f32
    %350 = vector.broadcast %cst_57 : f32 to vector<2x16xf32>
    %351 = arith.addf %350, %349 : vector<2x16xf32>
    %352 = arith.divf %350, %351 : vector<2x16xf32>
    %353 = vector.extract_strided_slice %315 {offsets = [0, 32], sizes = [2, 16], strides = [1, 1]} : vector<2x64xf32> to vector<2x16xf32>
    %354 = math.tanh %353 : vector<2x16xf32>
    %355 = vector.extract_strided_slice %315 {offsets = [0, 48], sizes = [2, 16], strides = [1, 1]} : vector<2x64xf32> to vector<2x16xf32>
    %356 = arith.negf %355 : vector<2x16xf32>
    %357 = math.exp %356 : vector<2x16xf32>
    %cst_58 = arith.constant 1.000000e+00 : f32
    %358 = vector.broadcast %cst_58 : f32 to vector<2x16xf32>
    %359 = arith.addf %358, %357 : vector<2x16xf32>
    %360 = arith.divf %358, %359 : vector<2x16xf32>
    %361 = arith.mulf %352, %305 : vector<2x16xf32>
    %362 = arith.mulf %346, %354 : vector<2x16xf32>
    %363 = arith.addf %361, %362 : vector<2x16xf32>
    %364 = math.tanh %363 : vector<2x16xf32>
    %365 = arith.mulf %360, %364 : vector<2x16xf32>
    %366 = tpu.concatenate %340, %365 in 1 : vector<2x16xf32>, vector<2x16xf32> -> vector<2x32xf32>
    %cst_59 = arith.constant dense<0.000000e+00> : vector<2x128xf32>
    %367 = tpu.matmul %366, %8, %cst_59 {dimension_numbers = #tpu.dot_dimension_numbers<[1], [0], [0], [1], [0, 0, 1, 1], [], []>} : vector<2x32xf32>, vector<32x128xf32>, vector<2x128xf32> -> vector<2x128xf32>
    %368 = vector.extract_strided_slice %13 {offsets = [12, 0], sizes = [2, 64], strides = [1, 1]} : vector<16x128xf32> to vector<2x64xf32>
    %369 = vector.extract_strided_slice %367 {offsets = [0, 0], sizes = [2, 64], strides = [1, 1]} : vector<2x128xf32> to vector<2x64xf32>
    %370 = arith.addf %368, %369 : vector<2x64xf32>
    %371 = vector.extract_strided_slice %13 {offsets = [2, 64], sizes = [2, 64], strides = [1, 1]} : vector<16x128xf32> to vector<2x64xf32>
    %372 = vector.extract_strided_slice %367 {offsets = [0, 64], sizes = [2, 64], strides = [1, 1]} : vector<2x128xf32> to vector<2x64xf32>
    %373 = arith.addf %371, %372 : vector<2x64xf32>
    %374 = vector.extract_strided_slice %370 {offsets = [0, 0], sizes = [2, 16], strides = [1, 1]} : vector<2x64xf32> to vector<2x16xf32>
    %375 = arith.negf %374 : vector<2x16xf32>
    %376 = math.exp %375 : vector<2x16xf32>
    %cst_60 = arith.constant 1.000000e+00 : f32
    %377 = vector.broadcast %cst_60 : f32 to vector<2x16xf32>
    %378 = arith.addf %377, %376 : vector<2x16xf32>
    %379 = arith.divf %377, %378 : vector<2x16xf32>
    %380 = vector.extract_strided_slice %370 {offsets = [0, 16], sizes = [2, 16], strides = [1, 1]} : vector<2x64xf32> to vector<2x16xf32>
    %381 = arith.negf %380 : vector<2x16xf32>
    %382 = math.exp %381 : vector<2x16xf32>
    %cst_61 = arith.constant 1.000000e+00 : f32
    %383 = vector.broadcast %cst_61 : f32 to vector<2x16xf32>
    %384 = arith.addf %383, %382 : vector<2x16xf32>
    %385 = arith.divf %383, %384 : vector<2x16xf32>
    %386 = vector.extract_strided_slice %370 {offsets = [0, 32], sizes = [2, 16], strides = [1, 1]} : vector<2x64xf32> to vector<2x16xf32>
    %387 = math.tanh %386 : vector<2x16xf32>
    %388 = vector.extract_strided_slice %370 {offsets = [0, 48], sizes = [2, 16], strides = [1, 1]} : vector<2x64xf32> to vector<2x16xf32>
    %389 = arith.negf %388 : vector<2x16xf32>
    %390 = math.exp %389 : vector<2x16xf32>
    %cst_62 = arith.constant 1.000000e+00 : f32
    %391 = vector.broadcast %cst_62 : f32 to vector<2x16xf32>
    %392 = arith.addf %391, %390 : vector<2x16xf32>
    %393 = arith.divf %391, %392 : vector<2x16xf32>
    %394 = arith.mulf %385, %338 : vector<2x16xf32>
    %395 = arith.mulf %379, %387 : vector<2x16xf32>
    %396 = arith.addf %394, %395 : vector<2x16xf32>
    %397 = math.tanh %396 : vector<2x16xf32>
    %398 = arith.mulf %393, %397 : vector<2x16xf32>
    %399 = vector.extract_strided_slice %373 {offsets = [0, 0], sizes = [2, 16], strides = [1, 1]} : vector<2x64xf32> to vector<2x16xf32>
    %400 = arith.negf %399 : vector<2x16xf32>
    %401 = math.exp %400 : vector<2x16xf32>
    %cst_63 = arith.constant 1.000000e+00 : f32
    %402 = vector.broadcast %cst_63 : f32 to vector<2x16xf32>
    %403 = arith.addf %402, %401 : vector<2x16xf32>
    %404 = arith.divf %402, %403 : vector<2x16xf32>
    %405 = vector.extract_strided_slice %373 {offsets = [0, 16], sizes = [2, 16], strides = [1, 1]} : vector<2x64xf32> to vector<2x16xf32>
    %406 = arith.negf %405 : vector<2x16xf32>
    %407 = math.exp %406 : vector<2x16xf32>
    %cst_64 = arith.constant 1.000000e+00 : f32
    %408 = vector.broadcast %cst_64 : f32 to vector<2x16xf32>
    %409 = arith.addf %408, %407 : vector<2x16xf32>
    %410 = arith.divf %408, %409 : vector<2x16xf32>
    %411 = vector.extract_strided_slice %373 {offsets = [0, 32], sizes = [2, 16], strides = [1, 1]} : vector<2x64xf32> to vector<2x16xf32>
    %412 = math.tanh %411 : vector<2x16xf32>
    %413 = vector.extract_strided_slice %373 {offsets = [0, 48], sizes = [2, 16], strides = [1, 1]} : vector<2x64xf32> to vector<2x16xf32>
    %414 = arith.negf %413 : vector<2x16xf32>
    %415 = math.exp %414 : vector<2x16xf32>
    %cst_65 = arith.constant 1.000000e+00 : f32
    %416 = vector.broadcast %cst_65 : f32 to vector<2x16xf32>
    %417 = arith.addf %416, %415 : vector<2x16xf32>
    %418 = arith.divf %416, %417 : vector<2x16xf32>
    %419 = arith.mulf %410, %363 : vector<2x16xf32>
    %420 = arith.mulf %404, %412 : vector<2x16xf32>
    %421 = arith.addf %419, %420 : vector<2x16xf32>
    %422 = math.tanh %421 : vector<2x16xf32>
    %423 = arith.mulf %418, %422 : vector<2x16xf32>
    %424 = tpu.concatenate %398, %423 in 1 : vector<2x16xf32>, vector<2x16xf32> -> vector<2x32xf32>
    %cst_66 = arith.constant dense<0.000000e+00> : vector<2x128xf32>
    %425 = tpu.matmul %424, %8, %cst_66 {dimension_numbers = #tpu.dot_dimension_numbers<[1], [0], [0], [1], [0, 0, 1, 1], [], []>} : vector<2x32xf32>, vector<32x128xf32>, vector<2x128xf32> -> vector<2x128xf32>
    %426 = vector.extract_strided_slice %13 {offsets = [14, 0], sizes = [2, 64], strides = [1, 1]} : vector<16x128xf32> to vector<2x64xf32>
    %427 = vector.extract_strided_slice %425 {offsets = [0, 0], sizes = [2, 64], strides = [1, 1]} : vector<2x128xf32> to vector<2x64xf32>
    %428 = arith.addf %426, %427 : vector<2x64xf32>
    %429 = vector.extract_strided_slice %13 {offsets = [0, 64], sizes = [2, 64], strides = [1, 1]} : vector<16x128xf32> to vector<2x64xf32>
    %430 = vector.extract_strided_slice %425 {offsets = [0, 64], sizes = [2, 64], strides = [1, 1]} : vector<2x128xf32> to vector<2x64xf32>
    %431 = arith.addf %429, %430 : vector<2x64xf32>
    %432 = vector.extract_strided_slice %428 {offsets = [0, 0], sizes = [2, 16], strides = [1, 1]} : vector<2x64xf32> to vector<2x16xf32>
    %433 = arith.negf %432 : vector<2x16xf32>
    %434 = math.exp %433 : vector<2x16xf32>
    %cst_67 = arith.constant 1.000000e+00 : f32
    %435 = vector.broadcast %cst_67 : f32 to vector<2x16xf32>
    %436 = arith.addf %435, %434 : vector<2x16xf32>
    %437 = arith.divf %435, %436 : vector<2x16xf32>
    %438 = vector.extract_strided_slice %428 {offsets = [0, 16], sizes = [2, 16], strides = [1, 1]} : vector<2x64xf32> to vector<2x16xf32>
    %439 = arith.negf %438 : vector<2x16xf32>
    %440 = math.exp %439 : vector<2x16xf32>
    %cst_68 = arith.constant 1.000000e+00 : f32
    %441 = vector.broadcast %cst_68 : f32 to vector<2x16xf32>
    %442 = arith.addf %441, %440 : vector<2x16xf32>
    %443 = arith.divf %441, %442 : vector<2x16xf32>
    %444 = vector.extract_strided_slice %428 {offsets = [0, 32], sizes = [2, 16], strides = [1, 1]} : vector<2x64xf32> to vector<2x16xf32>
    %445 = math.tanh %444 : vector<2x16xf32>
    %446 = vector.extract_strided_slice %428 {offsets = [0, 48], sizes = [2, 16], strides = [1, 1]} : vector<2x64xf32> to vector<2x16xf32>
    %447 = arith.negf %446 : vector<2x16xf32>
    %448 = math.exp %447 : vector<2x16xf32>
    %cst_69 = arith.constant 1.000000e+00 : f32
    %449 = vector.broadcast %cst_69 : f32 to vector<2x16xf32>
    %450 = arith.addf %449, %448 : vector<2x16xf32>
    %451 = arith.divf %449, %450 : vector<2x16xf32>
    %452 = arith.mulf %443, %396 : vector<2x16xf32>
    %453 = arith.mulf %437, %445 : vector<2x16xf32>
    %454 = arith.addf %452, %453 : vector<2x16xf32>
    %455 = math.tanh %454 : vector<2x16xf32>
    %456 = arith.mulf %451, %455 : vector<2x16xf32>
    %457 = vector.extract_strided_slice %431 {offsets = [0, 0], sizes = [2, 16], strides = [1, 1]} : vector<2x64xf32> to vector<2x16xf32>
    %458 = arith.negf %457 : vector<2x16xf32>
    %459 = math.exp %458 : vector<2x16xf32>
    %cst_70 = arith.constant 1.000000e+00 : f32
    %460 = vector.broadcast %cst_70 : f32 to vector<2x16xf32>
    %461 = arith.addf %460, %459 : vector<2x16xf32>
    %462 = arith.divf %460, %461 : vector<2x16xf32>
    %463 = vector.extract_strided_slice %431 {offsets = [0, 16], sizes = [2, 16], strides = [1, 1]} : vector<2x64xf32> to vector<2x16xf32>
    %464 = arith.negf %463 : vector<2x16xf32>
    %465 = math.exp %464 : vector<2x16xf32>
    %cst_71 = arith.constant 1.000000e+00 : f32
    %466 = vector.broadcast %cst_71 : f32 to vector<2x16xf32>
    %467 = arith.addf %466, %465 : vector<2x16xf32>
    %468 = arith.divf %466, %467 : vector<2x16xf32>
    %469 = vector.extract_strided_slice %431 {offsets = [0, 32], sizes = [2, 16], strides = [1, 1]} : vector<2x64xf32> to vector<2x16xf32>
    %470 = math.tanh %469 : vector<2x16xf32>
    %471 = vector.extract_strided_slice %431 {offsets = [0, 48], sizes = [2, 16], strides = [1, 1]} : vector<2x64xf32> to vector<2x16xf32>
    %472 = arith.negf %471 : vector<2x16xf32>
    %473 = math.exp %472 : vector<2x16xf32>
    %cst_72 = arith.constant 1.000000e+00 : f32
    %474 = vector.broadcast %cst_72 : f32 to vector<2x16xf32>
    %475 = arith.addf %474, %473 : vector<2x16xf32>
    %476 = arith.divf %474, %475 : vector<2x16xf32>
    %477 = arith.mulf %468, %421 : vector<2x16xf32>
    %478 = arith.mulf %462, %470 : vector<2x16xf32>
    %479 = arith.addf %477, %478 : vector<2x16xf32>
    %480 = math.tanh %479 : vector<2x16xf32>
    %481 = arith.mulf %476, %480 : vector<2x16xf32>
    %482 = tpu.concatenate %50, %481 in 1 : vector<2x16xf32>, vector<2x16xf32> -> vector<2x32xf32>
    %483 = tpu.concatenate %108, %423 in 1 : vector<2x16xf32>, vector<2x16xf32> -> vector<2x32xf32>
    %484 = tpu.concatenate %166, %365 in 1 : vector<2x16xf32>, vector<2x16xf32> -> vector<2x32xf32>
    %485 = tpu.concatenate %224, %307 in 1 : vector<2x16xf32>, vector<2x16xf32> -> vector<2x32xf32>
    %486 = tpu.concatenate %282, %249 in 1 : vector<2x16xf32>, vector<2x16xf32> -> vector<2x32xf32>
    %487 = tpu.concatenate %340, %191 in 1 : vector<2x16xf32>, vector<2x16xf32> -> vector<2x32xf32>
    %488 = tpu.concatenate %398, %133 in 1 : vector<2x16xf32>, vector<2x16xf32> -> vector<2x32xf32>
    %489 = tpu.concatenate %456, %75 in 1 : vector<2x16xf32>, vector<2x16xf32> -> vector<2x32xf32>
    %490 = tpu.concatenate %482, %483, %484, %485, %486, %487, %488, %489 in 0 : vector<2x32xf32>, vector<2x32xf32>, vector<2x32xf32>, vector<2x32xf32>, vector<2x32xf32>, vector<2x32xf32>, vector<2x32xf32>, vector<2x32xf32> -> vector<16x32xf32>
    %c0_73 = arith.constant 0 : index
    %c0_74 = arith.constant 0 : index
    %c0_75 = arith.constant 0 : index
    %491 = vector.load %arg6[%c0_73, %c0_74, %c0_75] : memref<1x32x128xf32, #tpu.memory_space<vmem>>, vector<1x32x128xf32>
    %492 = vector.shape_cast %491 : vector<1x32x128xf32> to vector<32x128xf32>
    %c0_76 = arith.constant 0 : index
    %c0_77 = arith.constant 0 : index
    %c0_78 = arith.constant 0 : index
    %493 = vector.load %arg7[%c0_76, %c0_77, %c0_78] : memref<1x32x128xf32, #tpu.memory_space<vmem>>, vector<1x32x128xf32>
    %494 = vector.shape_cast %493 : vector<1x32x128xf32> to vector<32x128xf32>
    %c0_79 = arith.constant 0 : index
    %c0_80 = arith.constant 0 : index
    %c0_81 = arith.constant 0 : index
    %495 = vector.load %arg8[%c0_79, %c0_80, %c0_81] : memref<1x1x128xf32, #tpu.memory_space<vmem>>, vector<1x1x128xf32>
    %496 = vector.shape_cast %495 : vector<1x1x128xf32> to vector<1x128xf32>
    %cst_82 = arith.constant dense<0.000000e+00> : vector<16x128xf32>
    %497 = tpu.matmul %490, %492, %cst_82 {dimension_numbers = #tpu.dot_dimension_numbers<[1], [0], [0], [1], [0, 0, 1, 1], [], []>} : vector<16x32xf32>, vector<32x128xf32>, vector<16x128xf32> -> vector<16x128xf32>
    %498 = vector.broadcast %496 : vector<1x128xf32> to vector<16x128xf32>
    %499 = arith.addf %497, %498 : vector<16x128xf32>
    %cst_83 = arith.constant 0.000000e+00 : f32
    %500 = vector.broadcast %cst_83 : f32 to vector<2x16xf32>
    %cst_84 = arith.constant 0.000000e+00 : f32
    %501 = vector.broadcast %cst_84 : f32 to vector<2x16xf32>
    %cst_85 = arith.constant 0.000000e+00 : f32
    %502 = vector.broadcast %cst_85 : f32 to vector<2x16xf32>
    %cst_86 = arith.constant 0.000000e+00 : f32
    %503 = vector.broadcast %cst_86 : f32 to vector<2x16xf32>
    %504 = tpu.concatenate %500, %502 in 1 : vector<2x16xf32>, vector<2x16xf32> -> vector<2x32xf32>
    %cst_87 = arith.constant dense<0.000000e+00> : vector<2x128xf32>
    %505 = tpu.matmul %504, %494, %cst_87 {dimension_numbers = #tpu.dot_dimension_numbers<[1], [0], [0], [1], [0, 0, 1, 1], [], []>} : vector<2x32xf32>, vector<32x128xf32>, vector<2x128xf32> -> vector<2x128xf32>
    %506 = vector.extract_strided_slice %499 {offsets = [0, 0], sizes = [2, 64], strides = [1, 1]} : vector<16x128xf32> to vector<2x64xf32>
    %507 = vector.extract_strided_slice %505 {offsets = [0, 0], sizes = [2, 64], strides = [1, 1]} : vector<2x128xf32> to vector<2x64xf32>
    %508 = arith.addf %506, %507 : vector<2x64xf32>
    %509 = vector.extract_strided_slice %499 {offsets = [14, 64], sizes = [2, 64], strides = [1, 1]} : vector<16x128xf32> to vector<2x64xf32>
    %510 = vector.extract_strided_slice %505 {offsets = [0, 64], sizes = [2, 64], strides = [1, 1]} : vector<2x128xf32> to vector<2x64xf32>
    %511 = arith.addf %509, %510 : vector<2x64xf32>
    %512 = vector.extract_strided_slice %508 {offsets = [0, 0], sizes = [2, 16], strides = [1, 1]} : vector<2x64xf32> to vector<2x16xf32>
    %513 = arith.negf %512 : vector<2x16xf32>
    %514 = math.exp %513 : vector<2x16xf32>
    %cst_88 = arith.constant 1.000000e+00 : f32
    %515 = vector.broadcast %cst_88 : f32 to vector<2x16xf32>
    %516 = arith.addf %515, %514 : vector<2x16xf32>
    %517 = arith.divf %515, %516 : vector<2x16xf32>
    %518 = vector.extract_strided_slice %508 {offsets = [0, 16], sizes = [2, 16], strides = [1, 1]} : vector<2x64xf32> to vector<2x16xf32>
    %519 = arith.negf %518 : vector<2x16xf32>
    %520 = math.exp %519 : vector<2x16xf32>
    %cst_89 = arith.constant 1.000000e+00 : f32
    %521 = vector.broadcast %cst_89 : f32 to vector<2x16xf32>
    %522 = arith.addf %521, %520 : vector<2x16xf32>
    %523 = arith.divf %521, %522 : vector<2x16xf32>
    %524 = vector.extract_strided_slice %508 {offsets = [0, 32], sizes = [2, 16], strides = [1, 1]} : vector<2x64xf32> to vector<2x16xf32>
    %525 = math.tanh %524 : vector<2x16xf32>
    %526 = vector.extract_strided_slice %508 {offsets = [0, 48], sizes = [2, 16], strides = [1, 1]} : vector<2x64xf32> to vector<2x16xf32>
    %527 = arith.negf %526 : vector<2x16xf32>
    %528 = math.exp %527 : vector<2x16xf32>
    %cst_90 = arith.constant 1.000000e+00 : f32
    %529 = vector.broadcast %cst_90 : f32 to vector<2x16xf32>
    %530 = arith.addf %529, %528 : vector<2x16xf32>
    %531 = arith.divf %529, %530 : vector<2x16xf32>
    %532 = arith.mulf %523, %501 : vector<2x16xf32>
    %533 = arith.mulf %517, %525 : vector<2x16xf32>
    %534 = arith.addf %532, %533 : vector<2x16xf32>
    %535 = math.tanh %534 : vector<2x16xf32>
    %536 = arith.mulf %531, %535 : vector<2x16xf32>
    %537 = vector.extract_strided_slice %511 {offsets = [0, 0], sizes = [2, 16], strides = [1, 1]} : vector<2x64xf32> to vector<2x16xf32>
    %538 = arith.negf %537 : vector<2x16xf32>
    %539 = math.exp %538 : vector<2x16xf32>
    %cst_91 = arith.constant 1.000000e+00 : f32
    %540 = vector.broadcast %cst_91 : f32 to vector<2x16xf32>
    %541 = arith.addf %540, %539 : vector<2x16xf32>
    %542 = arith.divf %540, %541 : vector<2x16xf32>
    %543 = vector.extract_strided_slice %511 {offsets = [0, 16], sizes = [2, 16], strides = [1, 1]} : vector<2x64xf32> to vector<2x16xf32>
    %544 = arith.negf %543 : vector<2x16xf32>
    %545 = math.exp %544 : vector<2x16xf32>
    %cst_92 = arith.constant 1.000000e+00 : f32
    %546 = vector.broadcast %cst_92 : f32 to vector<2x16xf32>
    %547 = arith.addf %546, %545 : vector<2x16xf32>
    %548 = arith.divf %546, %547 : vector<2x16xf32>
    %549 = vector.extract_strided_slice %511 {offsets = [0, 32], sizes = [2, 16], strides = [1, 1]} : vector<2x64xf32> to vector<2x16xf32>
    %550 = math.tanh %549 : vector<2x16xf32>
    %551 = vector.extract_strided_slice %511 {offsets = [0, 48], sizes = [2, 16], strides = [1, 1]} : vector<2x64xf32> to vector<2x16xf32>
    %552 = arith.negf %551 : vector<2x16xf32>
    %553 = math.exp %552 : vector<2x16xf32>
    %cst_93 = arith.constant 1.000000e+00 : f32
    %554 = vector.broadcast %cst_93 : f32 to vector<2x16xf32>
    %555 = arith.addf %554, %553 : vector<2x16xf32>
    %556 = arith.divf %554, %555 : vector<2x16xf32>
    %557 = arith.mulf %548, %503 : vector<2x16xf32>
    %558 = arith.mulf %542, %550 : vector<2x16xf32>
    %559 = arith.addf %557, %558 : vector<2x16xf32>
    %560 = math.tanh %559 : vector<2x16xf32>
    %561 = arith.mulf %556, %560 : vector<2x16xf32>
    %562 = tpu.concatenate %536, %561 in 1 : vector<2x16xf32>, vector<2x16xf32> -> vector<2x32xf32>
    %cst_94 = arith.constant dense<0.000000e+00> : vector<2x128xf32>
    %563 = tpu.matmul %562, %494, %cst_94 {dimension_numbers = #tpu.dot_dimension_numbers<[1], [0], [0], [1], [0, 0, 1, 1], [], []>} : vector<2x32xf32>, vector<32x128xf32>, vector<2x128xf32> -> vector<2x128xf32>
    %564 = vector.extract_strided_slice %499 {offsets = [2, 0], sizes = [2, 64], strides = [1, 1]} : vector<16x128xf32> to vector<2x64xf32>
    %565 = vector.extract_strided_slice %563 {offsets = [0, 0], sizes = [2, 64], strides = [1, 1]} : vector<2x128xf32> to vector<2x64xf32>
    %566 = arith.addf %564, %565 : vector<2x64xf32>
    %567 = vector.extract_strided_slice %499 {offsets = [12, 64], sizes = [2, 64], strides = [1, 1]} : vector<16x128xf32> to vector<2x64xf32>
    %568 = vector.extract_strided_slice %563 {offsets = [0, 64], sizes = [2, 64], strides = [1, 1]} : vector<2x128xf32> to vector<2x64xf32>
    %569 = arith.addf %567, %568 : vector<2x64xf32>
    %570 = vector.extract_strided_slice %566 {offsets = [0, 0], sizes = [2, 16], strides = [1, 1]} : vector<2x64xf32> to vector<2x16xf32>
    %571 = arith.negf %570 : vector<2x16xf32>
    %572 = math.exp %571 : vector<2x16xf32>
    %cst_95 = arith.constant 1.000000e+00 : f32
    %573 = vector.broadcast %cst_95 : f32 to vector<2x16xf32>
    %574 = arith.addf %573, %572 : vector<2x16xf32>
    %575 = arith.divf %573, %574 : vector<2x16xf32>
    %576 = vector.extract_strided_slice %566 {offsets = [0, 16], sizes = [2, 16], strides = [1, 1]} : vector<2x64xf32> to vector<2x16xf32>
    %577 = arith.negf %576 : vector<2x16xf32>
    %578 = math.exp %577 : vector<2x16xf32>
    %cst_96 = arith.constant 1.000000e+00 : f32
    %579 = vector.broadcast %cst_96 : f32 to vector<2x16xf32>
    %580 = arith.addf %579, %578 : vector<2x16xf32>
    %581 = arith.divf %579, %580 : vector<2x16xf32>
    %582 = vector.extract_strided_slice %566 {offsets = [0, 32], sizes = [2, 16], strides = [1, 1]} : vector<2x64xf32> to vector<2x16xf32>
    %583 = math.tanh %582 : vector<2x16xf32>
    %584 = vector.extract_strided_slice %566 {offsets = [0, 48], sizes = [2, 16], strides = [1, 1]} : vector<2x64xf32> to vector<2x16xf32>
    %585 = arith.negf %584 : vector<2x16xf32>
    %586 = math.exp %585 : vector<2x16xf32>
    %cst_97 = arith.constant 1.000000e+00 : f32
    %587 = vector.broadcast %cst_97 : f32 to vector<2x16xf32>
    %588 = arith.addf %587, %586 : vector<2x16xf32>
    %589 = arith.divf %587, %588 : vector<2x16xf32>
    %590 = arith.mulf %581, %534 : vector<2x16xf32>
    %591 = arith.mulf %575, %583 : vector<2x16xf32>
    %592 = arith.addf %590, %591 : vector<2x16xf32>
    %593 = math.tanh %592 : vector<2x16xf32>
    %594 = arith.mulf %589, %593 : vector<2x16xf32>
    %595 = vector.extract_strided_slice %569 {offsets = [0, 0], sizes = [2, 16], strides = [1, 1]} : vector<2x64xf32> to vector<2x16xf32>
    %596 = arith.negf %595 : vector<2x16xf32>
    %597 = math.exp %596 : vector<2x16xf32>
    %cst_98 = arith.constant 1.000000e+00 : f32
    %598 = vector.broadcast %cst_98 : f32 to vector<2x16xf32>
    %599 = arith.addf %598, %597 : vector<2x16xf32>
    %600 = arith.divf %598, %599 : vector<2x16xf32>
    %601 = vector.extract_strided_slice %569 {offsets = [0, 16], sizes = [2, 16], strides = [1, 1]} : vector<2x64xf32> to vector<2x16xf32>
    %602 = arith.negf %601 : vector<2x16xf32>
    %603 = math.exp %602 : vector<2x16xf32>
    %cst_99 = arith.constant 1.000000e+00 : f32
    %604 = vector.broadcast %cst_99 : f32 to vector<2x16xf32>
    %605 = arith.addf %604, %603 : vector<2x16xf32>
    %606 = arith.divf %604, %605 : vector<2x16xf32>
    %607 = vector.extract_strided_slice %569 {offsets = [0, 32], sizes = [2, 16], strides = [1, 1]} : vector<2x64xf32> to vector<2x16xf32>
    %608 = math.tanh %607 : vector<2x16xf32>
    %609 = vector.extract_strided_slice %569 {offsets = [0, 48], sizes = [2, 16], strides = [1, 1]} : vector<2x64xf32> to vector<2x16xf32>
    %610 = arith.negf %609 : vector<2x16xf32>
    %611 = math.exp %610 : vector<2x16xf32>
    %cst_100 = arith.constant 1.000000e+00 : f32
    %612 = vector.broadcast %cst_100 : f32 to vector<2x16xf32>
    %613 = arith.addf %612, %611 : vector<2x16xf32>
    %614 = arith.divf %612, %613 : vector<2x16xf32>
    %615 = arith.mulf %606, %559 : vector<2x16xf32>
    %616 = arith.mulf %600, %608 : vector<2x16xf32>
    %617 = arith.addf %615, %616 : vector<2x16xf32>
    %618 = math.tanh %617 : vector<2x16xf32>
    %619 = arith.mulf %614, %618 : vector<2x16xf32>
    %620 = tpu.concatenate %594, %619 in 1 : vector<2x16xf32>, vector<2x16xf32> -> vector<2x32xf32>
    %cst_101 = arith.constant dense<0.000000e+00> : vector<2x128xf32>
    %621 = tpu.matmul %620, %494, %cst_101 {dimension_numbers = #tpu.dot_dimension_numbers<[1], [0], [0], [1], [0, 0, 1, 1], [], []>} : vector<2x32xf32>, vector<32x128xf32>, vector<2x128xf32> -> vector<2x128xf32>
    %622 = vector.extract_strided_slice %499 {offsets = [4, 0], sizes = [2, 64], strides = [1, 1]} : vector<16x128xf32> to vector<2x64xf32>
    %623 = vector.extract_strided_slice %621 {offsets = [0, 0], sizes = [2, 64], strides = [1, 1]} : vector<2x128xf32> to vector<2x64xf32>
    %624 = arith.addf %622, %623 : vector<2x64xf32>
    %625 = vector.extract_strided_slice %499 {offsets = [10, 64], sizes = [2, 64], strides = [1, 1]} : vector<16x128xf32> to vector<2x64xf32>
    %626 = vector.extract_strided_slice %621 {offsets = [0, 64], sizes = [2, 64], strides = [1, 1]} : vector<2x128xf32> to vector<2x64xf32>
    %627 = arith.addf %625, %626 : vector<2x64xf32>
    %628 = vector.extract_strided_slice %624 {offsets = [0, 0], sizes = [2, 16], strides = [1, 1]} : vector<2x64xf32> to vector<2x16xf32>
    %629 = arith.negf %628 : vector<2x16xf32>
    %630 = math.exp %629 : vector<2x16xf32>
    %cst_102 = arith.constant 1.000000e+00 : f32
    %631 = vector.broadcast %cst_102 : f32 to vector<2x16xf32>
    %632 = arith.addf %631, %630 : vector<2x16xf32>
    %633 = arith.divf %631, %632 : vector<2x16xf32>
    %634 = vector.extract_strided_slice %624 {offsets = [0, 16], sizes = [2, 16], strides = [1, 1]} : vector<2x64xf32> to vector<2x16xf32>
    %635 = arith.negf %634 : vector<2x16xf32>
    %636 = math.exp %635 : vector<2x16xf32>
    %cst_103 = arith.constant 1.000000e+00 : f32
    %637 = vector.broadcast %cst_103 : f32 to vector<2x16xf32>
    %638 = arith.addf %637, %636 : vector<2x16xf32>
    %639 = arith.divf %637, %638 : vector<2x16xf32>
    %640 = vector.extract_strided_slice %624 {offsets = [0, 32], sizes = [2, 16], strides = [1, 1]} : vector<2x64xf32> to vector<2x16xf32>
    %641 = math.tanh %640 : vector<2x16xf32>
    %642 = vector.extract_strided_slice %624 {offsets = [0, 48], sizes = [2, 16], strides = [1, 1]} : vector<2x64xf32> to vector<2x16xf32>
    %643 = arith.negf %642 : vector<2x16xf32>
    %644 = math.exp %643 : vector<2x16xf32>
    %cst_104 = arith.constant 1.000000e+00 : f32
    %645 = vector.broadcast %cst_104 : f32 to vector<2x16xf32>
    %646 = arith.addf %645, %644 : vector<2x16xf32>
    %647 = arith.divf %645, %646 : vector<2x16xf32>
    %648 = arith.mulf %639, %592 : vector<2x16xf32>
    %649 = arith.mulf %633, %641 : vector<2x16xf32>
    %650 = arith.addf %648, %649 : vector<2x16xf32>
    %651 = math.tanh %650 : vector<2x16xf32>
    %652 = arith.mulf %647, %651 : vector<2x16xf32>
    %653 = vector.extract_strided_slice %627 {offsets = [0, 0], sizes = [2, 16], strides = [1, 1]} : vector<2x64xf32> to vector<2x16xf32>
    %654 = arith.negf %653 : vector<2x16xf32>
    %655 = math.exp %654 : vector<2x16xf32>
    %cst_105 = arith.constant 1.000000e+00 : f32
    %656 = vector.broadcast %cst_105 : f32 to vector<2x16xf32>
    %657 = arith.addf %656, %655 : vector<2x16xf32>
    %658 = arith.divf %656, %657 : vector<2x16xf32>
    %659 = vector.extract_strided_slice %627 {offsets = [0, 16], sizes = [2, 16], strides = [1, 1]} : vector<2x64xf32> to vector<2x16xf32>
    %660 = arith.negf %659 : vector<2x16xf32>
    %661 = math.exp %660 : vector<2x16xf32>
    %cst_106 = arith.constant 1.000000e+00 : f32
    %662 = vector.broadcast %cst_106 : f32 to vector<2x16xf32>
    %663 = arith.addf %662, %661 : vector<2x16xf32>
    %664 = arith.divf %662, %663 : vector<2x16xf32>
    %665 = vector.extract_strided_slice %627 {offsets = [0, 32], sizes = [2, 16], strides = [1, 1]} : vector<2x64xf32> to vector<2x16xf32>
    %666 = math.tanh %665 : vector<2x16xf32>
    %667 = vector.extract_strided_slice %627 {offsets = [0, 48], sizes = [2, 16], strides = [1, 1]} : vector<2x64xf32> to vector<2x16xf32>
    %668 = arith.negf %667 : vector<2x16xf32>
    %669 = math.exp %668 : vector<2x16xf32>
    %cst_107 = arith.constant 1.000000e+00 : f32
    %670 = vector.broadcast %cst_107 : f32 to vector<2x16xf32>
    %671 = arith.addf %670, %669 : vector<2x16xf32>
    %672 = arith.divf %670, %671 : vector<2x16xf32>
    %673 = arith.mulf %664, %617 : vector<2x16xf32>
    %674 = arith.mulf %658, %666 : vector<2x16xf32>
    %675 = arith.addf %673, %674 : vector<2x16xf32>
    %676 = math.tanh %675 : vector<2x16xf32>
    %677 = arith.mulf %672, %676 : vector<2x16xf32>
    %678 = tpu.concatenate %652, %677 in 1 : vector<2x16xf32>, vector<2x16xf32> -> vector<2x32xf32>
    %cst_108 = arith.constant dense<0.000000e+00> : vector<2x128xf32>
    %679 = tpu.matmul %678, %494, %cst_108 {dimension_numbers = #tpu.dot_dimension_numbers<[1], [0], [0], [1], [0, 0, 1, 1], [], []>} : vector<2x32xf32>, vector<32x128xf32>, vector<2x128xf32> -> vector<2x128xf32>
    %680 = vector.extract_strided_slice %499 {offsets = [6, 0], sizes = [2, 64], strides = [1, 1]} : vector<16x128xf32> to vector<2x64xf32>
    %681 = vector.extract_strided_slice %679 {offsets = [0, 0], sizes = [2, 64], strides = [1, 1]} : vector<2x128xf32> to vector<2x64xf32>
    %682 = arith.addf %680, %681 : vector<2x64xf32>
    %683 = vector.extract_strided_slice %499 {offsets = [8, 64], sizes = [2, 64], strides = [1, 1]} : vector<16x128xf32> to vector<2x64xf32>
    %684 = vector.extract_strided_slice %679 {offsets = [0, 64], sizes = [2, 64], strides = [1, 1]} : vector<2x128xf32> to vector<2x64xf32>
    %685 = arith.addf %683, %684 : vector<2x64xf32>
    %686 = vector.extract_strided_slice %682 {offsets = [0, 0], sizes = [2, 16], strides = [1, 1]} : vector<2x64xf32> to vector<2x16xf32>
    %687 = arith.negf %686 : vector<2x16xf32>
    %688 = math.exp %687 : vector<2x16xf32>
    %cst_109 = arith.constant 1.000000e+00 : f32
    %689 = vector.broadcast %cst_109 : f32 to vector<2x16xf32>
    %690 = arith.addf %689, %688 : vector<2x16xf32>
    %691 = arith.divf %689, %690 : vector<2x16xf32>
    %692 = vector.extract_strided_slice %682 {offsets = [0, 16], sizes = [2, 16], strides = [1, 1]} : vector<2x64xf32> to vector<2x16xf32>
    %693 = arith.negf %692 : vector<2x16xf32>
    %694 = math.exp %693 : vector<2x16xf32>
    %cst_110 = arith.constant 1.000000e+00 : f32
    %695 = vector.broadcast %cst_110 : f32 to vector<2x16xf32>
    %696 = arith.addf %695, %694 : vector<2x16xf32>
    %697 = arith.divf %695, %696 : vector<2x16xf32>
    %698 = vector.extract_strided_slice %682 {offsets = [0, 32], sizes = [2, 16], strides = [1, 1]} : vector<2x64xf32> to vector<2x16xf32>
    %699 = math.tanh %698 : vector<2x16xf32>
    %700 = vector.extract_strided_slice %682 {offsets = [0, 48], sizes = [2, 16], strides = [1, 1]} : vector<2x64xf32> to vector<2x16xf32>
    %701 = arith.negf %700 : vector<2x16xf32>
    %702 = math.exp %701 : vector<2x16xf32>
    %cst_111 = arith.constant 1.000000e+00 : f32
    %703 = vector.broadcast %cst_111 : f32 to vector<2x16xf32>
    %704 = arith.addf %703, %702 : vector<2x16xf32>
    %705 = arith.divf %703, %704 : vector<2x16xf32>
    %706 = arith.mulf %697, %650 : vector<2x16xf32>
    %707 = arith.mulf %691, %699 : vector<2x16xf32>
    %708 = arith.addf %706, %707 : vector<2x16xf32>
    %709 = math.tanh %708 : vector<2x16xf32>
    %710 = arith.mulf %705, %709 : vector<2x16xf32>
    %711 = vector.extract_strided_slice %685 {offsets = [0, 0], sizes = [2, 16], strides = [1, 1]} : vector<2x64xf32> to vector<2x16xf32>
    %712 = arith.negf %711 : vector<2x16xf32>
    %713 = math.exp %712 : vector<2x16xf32>
    %cst_112 = arith.constant 1.000000e+00 : f32
    %714 = vector.broadcast %cst_112 : f32 to vector<2x16xf32>
    %715 = arith.addf %714, %713 : vector<2x16xf32>
    %716 = arith.divf %714, %715 : vector<2x16xf32>
    %717 = vector.extract_strided_slice %685 {offsets = [0, 16], sizes = [2, 16], strides = [1, 1]} : vector<2x64xf32> to vector<2x16xf32>
    %718 = arith.negf %717 : vector<2x16xf32>
    %719 = math.exp %718 : vector<2x16xf32>
    %cst_113 = arith.constant 1.000000e+00 : f32
    %720 = vector.broadcast %cst_113 : f32 to vector<2x16xf32>
    %721 = arith.addf %720, %719 : vector<2x16xf32>
    %722 = arith.divf %720, %721 : vector<2x16xf32>
    %723 = vector.extract_strided_slice %685 {offsets = [0, 32], sizes = [2, 16], strides = [1, 1]} : vector<2x64xf32> to vector<2x16xf32>
    %724 = math.tanh %723 : vector<2x16xf32>
    %725 = vector.extract_strided_slice %685 {offsets = [0, 48], sizes = [2, 16], strides = [1, 1]} : vector<2x64xf32> to vector<2x16xf32>
    %726 = arith.negf %725 : vector<2x16xf32>
    %727 = math.exp %726 : vector<2x16xf32>
    %cst_114 = arith.constant 1.000000e+00 : f32
    %728 = vector.broadcast %cst_114 : f32 to vector<2x16xf32>
    %729 = arith.addf %728, %727 : vector<2x16xf32>
    %730 = arith.divf %728, %729 : vector<2x16xf32>
    %731 = arith.mulf %722, %675 : vector<2x16xf32>
    %732 = arith.mulf %716, %724 : vector<2x16xf32>
    %733 = arith.addf %731, %732 : vector<2x16xf32>
    %734 = math.tanh %733 : vector<2x16xf32>
    %735 = arith.mulf %730, %734 : vector<2x16xf32>
    %736 = tpu.concatenate %710, %735 in 1 : vector<2x16xf32>, vector<2x16xf32> -> vector<2x32xf32>
    %cst_115 = arith.constant dense<0.000000e+00> : vector<2x128xf32>
    %737 = tpu.matmul %736, %494, %cst_115 {dimension_numbers = #tpu.dot_dimension_numbers<[1], [0], [0], [1], [0, 0, 1, 1], [], []>} : vector<2x32xf32>, vector<32x128xf32>, vector<2x128xf32> -> vector<2x128xf32>
    %738 = vector.extract_strided_slice %499 {offsets = [8, 0], sizes = [2, 64], strides = [1, 1]} : vector<16x128xf32> to vector<2x64xf32>
    %739 = vector.extract_strided_slice %737 {offsets = [0, 0], sizes = [2, 64], strides = [1, 1]} : vector<2x128xf32> to vector<2x64xf32>
    %740 = arith.addf %738, %739 : vector<2x64xf32>
    %741 = vector.extract_strided_slice %499 {offsets = [6, 64], sizes = [2, 64], strides = [1, 1]} : vector<16x128xf32> to vector<2x64xf32>
    %742 = vector.extract_strided_slice %737 {offsets = [0, 64], sizes = [2, 64], strides = [1, 1]} : vector<2x128xf32> to vector<2x64xf32>
    %743 = arith.addf %741, %742 : vector<2x64xf32>
    %744 = vector.extract_strided_slice %740 {offsets = [0, 0], sizes = [2, 16], strides = [1, 1]} : vector<2x64xf32> to vector<2x16xf32>
    %745 = arith.negf %744 : vector<2x16xf32>
    %746 = math.exp %745 : vector<2x16xf32>
    %cst_116 = arith.constant 1.000000e+00 : f32
    %747 = vector.broadcast %cst_116 : f32 to vector<2x16xf32>
    %748 = arith.addf %747, %746 : vector<2x16xf32>
    %749 = arith.divf %747, %748 : vector<2x16xf32>
    %750 = vector.extract_strided_slice %740 {offsets = [0, 16], sizes = [2, 16], strides = [1, 1]} : vector<2x64xf32> to vector<2x16xf32>
    %751 = arith.negf %750 : vector<2x16xf32>
    %752 = math.exp %751 : vector<2x16xf32>
    %cst_117 = arith.constant 1.000000e+00 : f32
    %753 = vector.broadcast %cst_117 : f32 to vector<2x16xf32>
    %754 = arith.addf %753, %752 : vector<2x16xf32>
    %755 = arith.divf %753, %754 : vector<2x16xf32>
    %756 = vector.extract_strided_slice %740 {offsets = [0, 32], sizes = [2, 16], strides = [1, 1]} : vector<2x64xf32> to vector<2x16xf32>
    %757 = math.tanh %756 : vector<2x16xf32>
    %758 = vector.extract_strided_slice %740 {offsets = [0, 48], sizes = [2, 16], strides = [1, 1]} : vector<2x64xf32> to vector<2x16xf32>
    %759 = arith.negf %758 : vector<2x16xf32>
    %760 = math.exp %759 : vector<2x16xf32>
    %cst_118 = arith.constant 1.000000e+00 : f32
    %761 = vector.broadcast %cst_118 : f32 to vector<2x16xf32>
    %762 = arith.addf %761, %760 : vector<2x16xf32>
    %763 = arith.divf %761, %762 : vector<2x16xf32>
    %764 = arith.mulf %755, %708 : vector<2x16xf32>
    %765 = arith.mulf %749, %757 : vector<2x16xf32>
    %766 = arith.addf %764, %765 : vector<2x16xf32>
    %767 = math.tanh %766 : vector<2x16xf32>
    %768 = arith.mulf %763, %767 : vector<2x16xf32>
    %769 = vector.extract_strided_slice %743 {offsets = [0, 0], sizes = [2, 16], strides = [1, 1]} : vector<2x64xf32> to vector<2x16xf32>
    %770 = arith.negf %769 : vector<2x16xf32>
    %771 = math.exp %770 : vector<2x16xf32>
    %cst_119 = arith.constant 1.000000e+00 : f32
    %772 = vector.broadcast %cst_119 : f32 to vector<2x16xf32>
    %773 = arith.addf %772, %771 : vector<2x16xf32>
    %774 = arith.divf %772, %773 : vector<2x16xf32>
    %775 = vector.extract_strided_slice %743 {offsets = [0, 16], sizes = [2, 16], strides = [1, 1]} : vector<2x64xf32> to vector<2x16xf32>
    %776 = arith.negf %775 : vector<2x16xf32>
    %777 = math.exp %776 : vector<2x16xf32>
    %cst_120 = arith.constant 1.000000e+00 : f32
    %778 = vector.broadcast %cst_120 : f32 to vector<2x16xf32>
    %779 = arith.addf %778, %777 : vector<2x16xf32>
    %780 = arith.divf %778, %779 : vector<2x16xf32>
    %781 = vector.extract_strided_slice %743 {offsets = [0, 32], sizes = [2, 16], strides = [1, 1]} : vector<2x64xf32> to vector<2x16xf32>
    %782 = math.tanh %781 : vector<2x16xf32>
    %783 = vector.extract_strided_slice %743 {offsets = [0, 48], sizes = [2, 16], strides = [1, 1]} : vector<2x64xf32> to vector<2x16xf32>
    %784 = arith.negf %783 : vector<2x16xf32>
    %785 = math.exp %784 : vector<2x16xf32>
    %cst_121 = arith.constant 1.000000e+00 : f32
    %786 = vector.broadcast %cst_121 : f32 to vector<2x16xf32>
    %787 = arith.addf %786, %785 : vector<2x16xf32>
    %788 = arith.divf %786, %787 : vector<2x16xf32>
    %789 = arith.mulf %780, %733 : vector<2x16xf32>
    %790 = arith.mulf %774, %782 : vector<2x16xf32>
    %791 = arith.addf %789, %790 : vector<2x16xf32>
    %792 = math.tanh %791 : vector<2x16xf32>
    %793 = arith.mulf %788, %792 : vector<2x16xf32>
    %794 = tpu.concatenate %768, %793 in 1 : vector<2x16xf32>, vector<2x16xf32> -> vector<2x32xf32>
    %cst_122 = arith.constant dense<0.000000e+00> : vector<2x128xf32>
    %795 = tpu.matmul %794, %494, %cst_122 {dimension_numbers = #tpu.dot_dimension_numbers<[1], [0], [0], [1], [0, 0, 1, 1], [], []>} : vector<2x32xf32>, vector<32x128xf32>, vector<2x128xf32> -> vector<2x128xf32>
    %796 = vector.extract_strided_slice %499 {offsets = [10, 0], sizes = [2, 64], strides = [1, 1]} : vector<16x128xf32> to vector<2x64xf32>
    %797 = vector.extract_strided_slice %795 {offsets = [0, 0], sizes = [2, 64], strides = [1, 1]} : vector<2x128xf32> to vector<2x64xf32>
    %798 = arith.addf %796, %797 : vector<2x64xf32>
    %799 = vector.extract_strided_slice %499 {offsets = [4, 64], sizes = [2, 64], strides = [1, 1]} : vector<16x128xf32> to vector<2x64xf32>
    %800 = vector.extract_strided_slice %795 {offsets = [0, 64], sizes = [2, 64], strides = [1, 1]} : vector<2x128xf32> to vector<2x64xf32>
    %801 = arith.addf %799, %800 : vector<2x64xf32>
    %802 = vector.extract_strided_slice %798 {offsets = [0, 0], sizes = [2, 16], strides = [1, 1]} : vector<2x64xf32> to vector<2x16xf32>
    %803 = arith.negf %802 : vector<2x16xf32>
    %804 = math.exp %803 : vector<2x16xf32>
    %cst_123 = arith.constant 1.000000e+00 : f32
    %805 = vector.broadcast %cst_123 : f32 to vector<2x16xf32>
    %806 = arith.addf %805, %804 : vector<2x16xf32>
    %807 = arith.divf %805, %806 : vector<2x16xf32>
    %808 = vector.extract_strided_slice %798 {offsets = [0, 16], sizes = [2, 16], strides = [1, 1]} : vector<2x64xf32> to vector<2x16xf32>
    %809 = arith.negf %808 : vector<2x16xf32>
    %810 = math.exp %809 : vector<2x16xf32>
    %cst_124 = arith.constant 1.000000e+00 : f32
    %811 = vector.broadcast %cst_124 : f32 to vector<2x16xf32>
    %812 = arith.addf %811, %810 : vector<2x16xf32>
    %813 = arith.divf %811, %812 : vector<2x16xf32>
    %814 = vector.extract_strided_slice %798 {offsets = [0, 32], sizes = [2, 16], strides = [1, 1]} : vector<2x64xf32> to vector<2x16xf32>
    %815 = math.tanh %814 : vector<2x16xf32>
    %816 = vector.extract_strided_slice %798 {offsets = [0, 48], sizes = [2, 16], strides = [1, 1]} : vector<2x64xf32> to vector<2x16xf32>
    %817 = arith.negf %816 : vector<2x16xf32>
    %818 = math.exp %817 : vector<2x16xf32>
    %cst_125 = arith.constant 1.000000e+00 : f32
    %819 = vector.broadcast %cst_125 : f32 to vector<2x16xf32>
    %820 = arith.addf %819, %818 : vector<2x16xf32>
    %821 = arith.divf %819, %820 : vector<2x16xf32>
    %822 = arith.mulf %813, %766 : vector<2x16xf32>
    %823 = arith.mulf %807, %815 : vector<2x16xf32>
    %824 = arith.addf %822, %823 : vector<2x16xf32>
    %825 = math.tanh %824 : vector<2x16xf32>
    %826 = arith.mulf %821, %825 : vector<2x16xf32>
    %827 = vector.extract_strided_slice %801 {offsets = [0, 0], sizes = [2, 16], strides = [1, 1]} : vector<2x64xf32> to vector<2x16xf32>
    %828 = arith.negf %827 : vector<2x16xf32>
    %829 = math.exp %828 : vector<2x16xf32>
    %cst_126 = arith.constant 1.000000e+00 : f32
    %830 = vector.broadcast %cst_126 : f32 to vector<2x16xf32>
    %831 = arith.addf %830, %829 : vector<2x16xf32>
    %832 = arith.divf %830, %831 : vector<2x16xf32>
    %833 = vector.extract_strided_slice %801 {offsets = [0, 16], sizes = [2, 16], strides = [1, 1]} : vector<2x64xf32> to vector<2x16xf32>
    %834 = arith.negf %833 : vector<2x16xf32>
    %835 = math.exp %834 : vector<2x16xf32>
    %cst_127 = arith.constant 1.000000e+00 : f32
    %836 = vector.broadcast %cst_127 : f32 to vector<2x16xf32>
    %837 = arith.addf %836, %835 : vector<2x16xf32>
    %838 = arith.divf %836, %837 : vector<2x16xf32>
    %839 = vector.extract_strided_slice %801 {offsets = [0, 32], sizes = [2, 16], strides = [1, 1]} : vector<2x64xf32> to vector<2x16xf32>
    %840 = math.tanh %839 : vector<2x16xf32>
    %841 = vector.extract_strided_slice %801 {offsets = [0, 48], sizes = [2, 16], strides = [1, 1]} : vector<2x64xf32> to vector<2x16xf32>
    %842 = arith.negf %841 : vector<2x16xf32>
    %843 = math.exp %842 : vector<2x16xf32>
    %cst_128 = arith.constant 1.000000e+00 : f32
    %844 = vector.broadcast %cst_128 : f32 to vector<2x16xf32>
    %845 = arith.addf %844, %843 : vector<2x16xf32>
    %846 = arith.divf %844, %845 : vector<2x16xf32>
    %847 = arith.mulf %838, %791 : vector<2x16xf32>
    %848 = arith.mulf %832, %840 : vector<2x16xf32>
    %849 = arith.addf %847, %848 : vector<2x16xf32>
    %850 = math.tanh %849 : vector<2x16xf32>
    %851 = arith.mulf %846, %850 : vector<2x16xf32>
    %852 = tpu.concatenate %826, %851 in 1 : vector<2x16xf32>, vector<2x16xf32> -> vector<2x32xf32>
    %cst_129 = arith.constant dense<0.000000e+00> : vector<2x128xf32>
    %853 = tpu.matmul %852, %494, %cst_129 {dimension_numbers = #tpu.dot_dimension_numbers<[1], [0], [0], [1], [0, 0, 1, 1], [], []>} : vector<2x32xf32>, vector<32x128xf32>, vector<2x128xf32> -> vector<2x128xf32>
    %854 = vector.extract_strided_slice %499 {offsets = [12, 0], sizes = [2, 64], strides = [1, 1]} : vector<16x128xf32> to vector<2x64xf32>
    %855 = vector.extract_strided_slice %853 {offsets = [0, 0], sizes = [2, 64], strides = [1, 1]} : vector<2x128xf32> to vector<2x64xf32>
    %856 = arith.addf %854, %855 : vector<2x64xf32>
    %857 = vector.extract_strided_slice %499 {offsets = [2, 64], sizes = [2, 64], strides = [1, 1]} : vector<16x128xf32> to vector<2x64xf32>
    %858 = vector.extract_strided_slice %853 {offsets = [0, 64], sizes = [2, 64], strides = [1, 1]} : vector<2x128xf32> to vector<2x64xf32>
    %859 = arith.addf %857, %858 : vector<2x64xf32>
    %860 = vector.extract_strided_slice %856 {offsets = [0, 0], sizes = [2, 16], strides = [1, 1]} : vector<2x64xf32> to vector<2x16xf32>
    %861 = arith.negf %860 : vector<2x16xf32>
    %862 = math.exp %861 : vector<2x16xf32>
    %cst_130 = arith.constant 1.000000e+00 : f32
    %863 = vector.broadcast %cst_130 : f32 to vector<2x16xf32>
    %864 = arith.addf %863, %862 : vector<2x16xf32>
    %865 = arith.divf %863, %864 : vector<2x16xf32>
    %866 = vector.extract_strided_slice %856 {offsets = [0, 16], sizes = [2, 16], strides = [1, 1]} : vector<2x64xf32> to vector<2x16xf32>
    %867 = arith.negf %866 : vector<2x16xf32>
    %868 = math.exp %867 : vector<2x16xf32>
    %cst_131 = arith.constant 1.000000e+00 : f32
    %869 = vector.broadcast %cst_131 : f32 to vector<2x16xf32>
    %870 = arith.addf %869, %868 : vector<2x16xf32>
    %871 = arith.divf %869, %870 : vector<2x16xf32>
    %872 = vector.extract_strided_slice %856 {offsets = [0, 32], sizes = [2, 16], strides = [1, 1]} : vector<2x64xf32> to vector<2x16xf32>
    %873 = math.tanh %872 : vector<2x16xf32>
    %874 = vector.extract_strided_slice %856 {offsets = [0, 48], sizes = [2, 16], strides = [1, 1]} : vector<2x64xf32> to vector<2x16xf32>
    %875 = arith.negf %874 : vector<2x16xf32>
    %876 = math.exp %875 : vector<2x16xf32>
    %cst_132 = arith.constant 1.000000e+00 : f32
    %877 = vector.broadcast %cst_132 : f32 to vector<2x16xf32>
    %878 = arith.addf %877, %876 : vector<2x16xf32>
    %879 = arith.divf %877, %878 : vector<2x16xf32>
    %880 = arith.mulf %871, %824 : vector<2x16xf32>
    %881 = arith.mulf %865, %873 : vector<2x16xf32>
    %882 = arith.addf %880, %881 : vector<2x16xf32>
    %883 = math.tanh %882 : vector<2x16xf32>
    %884 = arith.mulf %879, %883 : vector<2x16xf32>
    %885 = vector.extract_strided_slice %859 {offsets = [0, 0], sizes = [2, 16], strides = [1, 1]} : vector<2x64xf32> to vector<2x16xf32>
    %886 = arith.negf %885 : vector<2x16xf32>
    %887 = math.exp %886 : vector<2x16xf32>
    %cst_133 = arith.constant 1.000000e+00 : f32
    %888 = vector.broadcast %cst_133 : f32 to vector<2x16xf32>
    %889 = arith.addf %888, %887 : vector<2x16xf32>
    %890 = arith.divf %888, %889 : vector<2x16xf32>
    %891 = vector.extract_strided_slice %859 {offsets = [0, 16], sizes = [2, 16], strides = [1, 1]} : vector<2x64xf32> to vector<2x16xf32>
    %892 = arith.negf %891 : vector<2x16xf32>
    %893 = math.exp %892 : vector<2x16xf32>
    %cst_134 = arith.constant 1.000000e+00 : f32
    %894 = vector.broadcast %cst_134 : f32 to vector<2x16xf32>
    %895 = arith.addf %894, %893 : vector<2x16xf32>
    %896 = arith.divf %894, %895 : vector<2x16xf32>
    %897 = vector.extract_strided_slice %859 {offsets = [0, 32], sizes = [2, 16], strides = [1, 1]} : vector<2x64xf32> to vector<2x16xf32>
    %898 = math.tanh %897 : vector<2x16xf32>
    %899 = vector.extract_strided_slice %859 {offsets = [0, 48], sizes = [2, 16], strides = [1, 1]} : vector<2x64xf32> to vector<2x16xf32>
    %900 = arith.negf %899 : vector<2x16xf32>
    %901 = math.exp %900 : vector<2x16xf32>
    %cst_135 = arith.constant 1.000000e+00 : f32
    %902 = vector.broadcast %cst_135 : f32 to vector<2x16xf32>
    %903 = arith.addf %902, %901 : vector<2x16xf32>
    %904 = arith.divf %902, %903 : vector<2x16xf32>
    %905 = arith.mulf %896, %849 : vector<2x16xf32>
    %906 = arith.mulf %890, %898 : vector<2x16xf32>
    %907 = arith.addf %905, %906 : vector<2x16xf32>
    %908 = math.tanh %907 : vector<2x16xf32>
    %909 = arith.mulf %904, %908 : vector<2x16xf32>
    %910 = tpu.concatenate %884, %909 in 1 : vector<2x16xf32>, vector<2x16xf32> -> vector<2x32xf32>
    %cst_136 = arith.constant dense<0.000000e+00> : vector<2x128xf32>
    %911 = tpu.matmul %910, %494, %cst_136 {dimension_numbers = #tpu.dot_dimension_numbers<[1], [0], [0], [1], [0, 0, 1, 1], [], []>} : vector<2x32xf32>, vector<32x128xf32>, vector<2x128xf32> -> vector<2x128xf32>
    %912 = vector.extract_strided_slice %499 {offsets = [14, 0], sizes = [2, 64], strides = [1, 1]} : vector<16x128xf32> to vector<2x64xf32>
    %913 = vector.extract_strided_slice %911 {offsets = [0, 0], sizes = [2, 64], strides = [1, 1]} : vector<2x128xf32> to vector<2x64xf32>
    %914 = arith.addf %912, %913 : vector<2x64xf32>
    %915 = vector.extract_strided_slice %499 {offsets = [0, 64], sizes = [2, 64], strides = [1, 1]} : vector<16x128xf32> to vector<2x64xf32>
    %916 = vector.extract_strided_slice %911 {offsets = [0, 64], sizes = [2, 64], strides = [1, 1]} : vector<2x128xf32> to vector<2x64xf32>
    %917 = arith.addf %915, %916 : vector<2x64xf32>
    %918 = vector.extract_strided_slice %914 {offsets = [0, 0], sizes = [2, 16], strides = [1, 1]} : vector<2x64xf32> to vector<2x16xf32>
    %919 = arith.negf %918 : vector<2x16xf32>
    %920 = math.exp %919 : vector<2x16xf32>
    %cst_137 = arith.constant 1.000000e+00 : f32
    %921 = vector.broadcast %cst_137 : f32 to vector<2x16xf32>
    %922 = arith.addf %921, %920 : vector<2x16xf32>
    %923 = arith.divf %921, %922 : vector<2x16xf32>
    %924 = vector.extract_strided_slice %914 {offsets = [0, 16], sizes = [2, 16], strides = [1, 1]} : vector<2x64xf32> to vector<2x16xf32>
    %925 = arith.negf %924 : vector<2x16xf32>
    %926 = math.exp %925 : vector<2x16xf32>
    %cst_138 = arith.constant 1.000000e+00 : f32
    %927 = vector.broadcast %cst_138 : f32 to vector<2x16xf32>
    %928 = arith.addf %927, %926 : vector<2x16xf32>
    %929 = arith.divf %927, %928 : vector<2x16xf32>
    %930 = vector.extract_strided_slice %914 {offsets = [0, 32], sizes = [2, 16], strides = [1, 1]} : vector<2x64xf32> to vector<2x16xf32>
    %931 = math.tanh %930 : vector<2x16xf32>
    %932 = vector.extract_strided_slice %914 {offsets = [0, 48], sizes = [2, 16], strides = [1, 1]} : vector<2x64xf32> to vector<2x16xf32>
    %933 = arith.negf %932 : vector<2x16xf32>
    %934 = math.exp %933 : vector<2x16xf32>
    %cst_139 = arith.constant 1.000000e+00 : f32
    %935 = vector.broadcast %cst_139 : f32 to vector<2x16xf32>
    %936 = arith.addf %935, %934 : vector<2x16xf32>
    %937 = arith.divf %935, %936 : vector<2x16xf32>
    %938 = arith.mulf %929, %882 : vector<2x16xf32>
    %939 = arith.mulf %923, %931 : vector<2x16xf32>
    %940 = arith.addf %938, %939 : vector<2x16xf32>
    %941 = math.tanh %940 : vector<2x16xf32>
    %942 = arith.mulf %937, %941 : vector<2x16xf32>
    %943 = vector.extract_strided_slice %917 {offsets = [0, 0], sizes = [2, 16], strides = [1, 1]} : vector<2x64xf32> to vector<2x16xf32>
    %944 = arith.negf %943 : vector<2x16xf32>
    %945 = math.exp %944 : vector<2x16xf32>
    %cst_140 = arith.constant 1.000000e+00 : f32
    %946 = vector.broadcast %cst_140 : f32 to vector<2x16xf32>
    %947 = arith.addf %946, %945 : vector<2x16xf32>
    %948 = arith.divf %946, %947 : vector<2x16xf32>
    %949 = vector.extract_strided_slice %917 {offsets = [0, 16], sizes = [2, 16], strides = [1, 1]} : vector<2x64xf32> to vector<2x16xf32>
    %950 = arith.negf %949 : vector<2x16xf32>
    %951 = math.exp %950 : vector<2x16xf32>
    %cst_141 = arith.constant 1.000000e+00 : f32
    %952 = vector.broadcast %cst_141 : f32 to vector<2x16xf32>
    %953 = arith.addf %952, %951 : vector<2x16xf32>
    %954 = arith.divf %952, %953 : vector<2x16xf32>
    %955 = vector.extract_strided_slice %917 {offsets = [0, 32], sizes = [2, 16], strides = [1, 1]} : vector<2x64xf32> to vector<2x16xf32>
    %956 = math.tanh %955 : vector<2x16xf32>
    %957 = vector.extract_strided_slice %917 {offsets = [0, 48], sizes = [2, 16], strides = [1, 1]} : vector<2x64xf32> to vector<2x16xf32>
    %958 = arith.negf %957 : vector<2x16xf32>
    %959 = math.exp %958 : vector<2x16xf32>
    %cst_142 = arith.constant 1.000000e+00 : f32
    %960 = vector.broadcast %cst_142 : f32 to vector<2x16xf32>
    %961 = arith.addf %960, %959 : vector<2x16xf32>
    %962 = arith.divf %960, %961 : vector<2x16xf32>
    %963 = arith.mulf %954, %907 : vector<2x16xf32>
    %964 = arith.mulf %948, %956 : vector<2x16xf32>
    %965 = arith.addf %963, %964 : vector<2x16xf32>
    %966 = math.tanh %965 : vector<2x16xf32>
    %967 = arith.mulf %962, %966 : vector<2x16xf32>
    %968 = tpu.concatenate %536, %967 in 1 : vector<2x16xf32>, vector<2x16xf32> -> vector<2x32xf32>
    %969 = tpu.concatenate %594, %909 in 1 : vector<2x16xf32>, vector<2x16xf32> -> vector<2x32xf32>
    %970 = tpu.concatenate %652, %851 in 1 : vector<2x16xf32>, vector<2x16xf32> -> vector<2x32xf32>
    %971 = tpu.concatenate %710, %793 in 1 : vector<2x16xf32>, vector<2x16xf32> -> vector<2x32xf32>
    %972 = tpu.concatenate %768, %735 in 1 : vector<2x16xf32>, vector<2x16xf32> -> vector<2x32xf32>
    %973 = tpu.concatenate %826, %677 in 1 : vector<2x16xf32>, vector<2x16xf32> -> vector<2x32xf32>
    %974 = tpu.concatenate %884, %619 in 1 : vector<2x16xf32>, vector<2x16xf32> -> vector<2x32xf32>
    %975 = tpu.concatenate %942, %561 in 1 : vector<2x16xf32>, vector<2x16xf32> -> vector<2x32xf32>
    %976 = tpu.concatenate %968, %969, %970, %971, %972, %973, %974, %975 in 0 : vector<2x32xf32>, vector<2x32xf32>, vector<2x32xf32>, vector<2x32xf32>, vector<2x32xf32>, vector<2x32xf32>, vector<2x32xf32>, vector<2x32xf32> -> vector<16x32xf32>
    %977 = vector.broadcast %1 : vector<16x1xf32> to vector<16x32xf32>
    %978 = arith.mulf %976, %977 : vector<16x32xf32>
    %c0_143 = arith.constant 0 : index
    %c0_144 = arith.constant 0 : index
    %c0_145 = arith.constant 0 : index
    %979 = vector.load %arg9[%c0_143, %c0_144, %c0_145] : memref<1x16x32xf32, #tpu.memory_space<vmem>>, vector<1x16x32xf32>
    %980 = vector.shape_cast %979 : vector<1x16x32xf32> to vector<16x32xf32>
    %981 = vector.shape_cast %978 : vector<16x32xf32> to vector<1x16x32xf32>
    tpu.vector_store %arg9[%c0_143, %c0_144, %c0_145], %981 {strides = array<i32>} : memref<1x16x32xf32, #tpu.memory_space<vmem>>, vector<1x16x32xf32>,
    return
  }
  func.func @transform_0(%arg0: i32) -> (i32, i32) {
    %c0_i32 = arith.constant 0 : i32
    %c0_i32_0 = arith.constant 0 : i32
    %c0_i32_1 = arith.constant 0 : i32
    return %c0_i32, %c0_i32_0 : i32, i32
  }
  func.func @transform_1(%arg0: i32) -> (i32, i32, i32) {
    %c0_i32 = arith.constant 0 : i32
    %c0_i32_0 = arith.constant 0 : i32
    %c0_i32_1 = arith.constant 0 : i32
    return %arg0, %c0_i32, %c0_i32_0 : i32, i32, i32
  }
  func.func @transform_2(%arg0: i32) -> (i32, i32, i32) {
    %c0_i32 = arith.constant 0 : i32
    %c0_i32_0 = arith.constant 0 : i32
    %c0_i32_1 = arith.constant 0 : i32
    return %arg0, %c0_i32, %c0_i32_0 : i32, i32, i32
  }
  func.func @transform_3(%arg0: i32) -> (i32, i32, i32) {
    %c0_i32 = arith.constant 0 : i32
    %c0_i32_0 = arith.constant 0 : i32
    %c0_i32_1 = arith.constant 0 : i32
    return %arg0, %c0_i32, %c0_i32_0 : i32, i32, i32
  }
  func.func @transform_4(%arg0: i32) -> (i32, i32, i32) {
    %c0_i32 = arith.constant 0 : i32
    %c0_i32_0 = arith.constant 0 : i32
    %c0_i32_1 = arith.constant 0 : i32
    return %arg0, %c0_i32, %c0_i32_0 : i32, i32, i32
  }
  func.func @transform_5(%arg0: i32) -> (i32, i32, i32) {
    %c0_i32 = arith.constant 0 : i32
    %c0_i32_0 = arith.constant 0 : i32
    %c0_i32_1 = arith.constant 0 : i32
    return %arg0, %c0_i32, %c0_i32_0 : i32, i32, i32
  }
  func.func @transform_6(%arg0: i32) -> (i32, i32, i32) {
    %c0_i32 = arith.constant 0 : i32
    %c0_i32_0 = arith.constant 0 : i32
    %c0_i32_1 = arith.constant 0 : i32
    return %arg0, %c0_i32, %c0_i32_0 : i32, i32, i32
  }
  func.func @transform_7(%arg0: i32) -> (i32, i32, i32) {
    %c0_i32 = arith.constant 0 : i32
    %c0_i32_0 = arith.constant 0 : i32
    %c0_i32_1 = arith.constant 0 : i32
    return %arg0, %c0_i32, %c0_i32_0 : i32, i32, i32
  }
  func.func @transform_8(%arg0: i32) -> (i32, i32, i32) {
    %c0_i32 = arith.constant 0 : i32
    %c0_i32_0 = arith.constant 0 : i32
    %c0_i32_1 = arith.constant 0 : i32
    return %arg0, %c0_i32, %c0_i32_0 : i32, i32, i32
  }
}

</mosaic_0001>

<bundles_post_ra>
// kernel: io_forward.1
= control target key start
LH: loop header
LB: loop body
LE: loop exit
PB: predicated region body
PF: predicated region fallthrough
CT: control target
= control target key end

     0   :  { %s3967_s0 = inlined_call_operand.vmem [shape: f32[16,32], index: 0, kind: input, shape index: {}]   ;;  %s3968_s1 = inlined_call_operand.vmem [shape: f32[2,16,1], index: 1, kind: input, shape index: {}]   ;;  %s3969_s2 = inlined_call_operand.vmem [shape: f32[2,32,128], index: 2, kind: input, shape index: {}]   ;;  %s3970_s3 = inlined_call_operand.hbm [shape: f32[2,32,128], index: 3, kind: input, shape index: {}]   ;;  %s3971_s4 = inlined_call_operand.vmem [shape: f32[2,1,128], index: 4, kind: input, shape index: {}]   ;;  %s3972_s5 = inlined_call_operand.hbm [shape: f32[2,32,128], index: 5, kind: input, shape index: {}]   ;;  %s3973_s6 = inlined_call_operand.hbm [shape: f32[2,32,128], index: 6, kind: input, shape index: {}]   ;;  %s3974_s7 = inlined_call_operand.vmem [shape: f32[2,1,128], index: 7, kind: input, shape index: {}]   ;;  %s3975_s8 = inlined_call_operand.vmem [shape: f32[2,16,32], index: 8, kind: output, shape index: {}]  }
   0x1   :  { %3979 = sst [smem:[#allocation11_spill]] %s3970_s3 }
   0x2   :  { %3980 = sst [smem:[#allocation12_spill]] %s3972_s5 }
   0x3   :  { %13 = vsyncpa [#allocation3], 0 }
   0x4   :  { %15 = vsyncpa [#allocation3 + $0x1], 0 }
   0x5   :  { %16 = vsyncpa [#allocation5], 0 }
   0x6   :  { %18 = vsyncpa [#allocation5 + $0x1], 0  ;;  %s3280_s27 = smov 0   ;;  %s3282_s28 = smov 0  }
   0x7   :  { %s3284_s29 = smov 0   ;;  %s3286_s30 = smov 0  }
   0x8 LB: > { %s3299_s9 = sadd.s32 4294967295, %s3225_s30   ;;  %s3302_s10 = sadd.s32 1, %s3225_s30   ;;  %s3225_s30 = sphi %s3286_s30, %s3989_s30   ;;  %s3221_s29 = sphi %s3284_s29, %s3993_s29   ;;  %s3217_s28 = sphi %s3282_s28, %s3992_s28   ;;  %s3213_s27 = sphi %s3280_s27, %s3991_s27  }
   0x9   : > { %3981 = sst [smem:[#allocation9_spill]] %s3302_s10  ;;  %s101_s11 = ssub.s32 %s3225_s30, %s3302_s10 }
   0xa   : > { %s104_s12 = sadd.s32 1, %s3221_s29  ;;  %p102_p0 = scmp.eq.s32.totalorder %s101_s11, 0 }
   0xb   : > { %p111_p1 = scmp.ne.s32.totalorder %s3221_s29, %s3217_s28  ;;  %p112_p2 = scmp.eq.s32.totalorder %s3225_s30, 0 }
   0xc   : > { %p117_p3 = scmp.ne.s32.totalorder %s3217_s28, %s3213_s27  ;;  %p118_p5 = scmp.eq.s32.totalorder %s3299_s9, 0 }
   0xd   : > { %s3312_s13 = scalar_select %p102_p0, %s3221_s29, %s104_s12  }
   0xe   : > { %p113_p4 = por %p112_p2, %p111_p1  ;;  %p2797_p6 = scmp.lt.s32.totalorder %s3225_s30, 2 }
   0xf   : > { %3982 = sst [smem:[#allocation10_spill]] %s3312_s13  ;;  %p3316_p7 = por %p118_p5, %p117_p3 }
  0x10   : > { %s3976_s15 = sand.u32 1, %s3221_s29   ;;  %s3326_s17 = sshll.u32 %s3225_s30, 5 }
  0x11   : > { %s3323_s16 = sshll.u32 %s3976_s15, 5  ;;  %p3328_p8 = pnand %p2797_p6, %p113_p4 }
  0x12   : > { %s318_s19 = sand.u32 1, %s3225_s30   ;;  %s3985_s5 = sld [smem:[#allocation12_spill]] }
  0x13   : > { %s322_s24 = scalar_lea.vmem [#allocation4], %s3323_s16  ;;  %s3338_s26 = scalar_lea.sflag [#allocation5], %s318_s19 }
  0x14   : > { %s330_s25 = sshll.u32 %s322_s24, 4  ;;  %p3101_p10 = pneg %p3328_p8  ;;  %s331_s25 = int_to_ptr.vmem [resolvable:$true] %s330_s25 }
  0x18   : > { %s327_s22 = scalar_lea.hbm %s3985_s5, %s3326_s17  ;;  %s3104_s21 = scalar_lea.hbm %s3985_s5, 64 }
  0x19   : > { %s328_s23 = sshll.u32 %s327_s22, 4  ;;  %s329_s23 = int_to_ptr.hbm [resolvable:$true] %s328_s23 }
  0x1a   : > { %s3097_s27 = sshra.s32 %s329_s23, 4  ;;  %s3098_s27 = int_to_ptr.hbm [resolvable:$true] %s3097_s27 }
  0x1b   : > { %s3099_s11 = scalar_lea.hbm %s3098_s27, 32  ;;  %p3105_p13 = scmp.lt.s32.totalorder %s3098_s27, %s3985_s5 }
  0x1c   : > { %p3100_p9 = scmp.ne.s32.totalorder %s3098_s27, %s3099_s11  ;;  %p3106_p0 = scmp.lt.s32.totalorder %s3104_s21, %s3099_s11 }
  0x1e   : > { %p3102_p11 = pnand %p3101_p10, %p3100_p9  ;;  %p3107_p1 = por %p3106_p0, %p3105_p13 }
  0x20   : > { %p3103_p12 = pneg %p3102_p11 }
  0x22   : > { %p3108_p2 = pnand %p3107_p1, %p3103_p12 }
  0x24   : > { %3111 = shalt.err (!%p3108_p2)
}
  0x25   : > { %s3227_s19 = smov 128   ;;  %s3228_s15 = smov 8  }
  0x26   : > { %2793 = dma.hbm_to_vmem [thread:$0]  (!%p3328_p8), %s329_s23, 512, %s331_s25, %s3338_s26, %s3227_s19, %s3227_s19, %s3228_s15  }
  0x27   : > { %p2713_p3 = scmp.ge.s32.totalorder %s3225_s30, 1  ;;  %p366_p4 = scmp.lt.s32.totalorder %s3225_s30, 3 }
  0x28   : > { %s3987_s3 = sld [smem:[#allocation11_spill]]  ;;  %s294_s22 = scalar_lea.vmem [#allocation2], %s3323_s16 }
  0x29   : > { %p3359_p5 = pnand %p2713_p3, %p366_p4  ;;  %s302_s24 = sshll.u32 %s294_s22, 4  ;;  %s303_s24 = int_to_ptr.vmem [resolvable:$true] %s302_s24 }
  0x2a   : > { %s3988_s5 = sand.u32 1, %s3221_s29  }
  0x2b   : > { %s291_s13 = scalar_lea.sflag [#allocation3], %s3988_s5 }
  0x2e   : > { %s299_s20 = scalar_lea.hbm %s3987_s3, %s3326_s17  ;;  %s3134_s11 = scalar_lea.hbm %s3987_s3, 64 }
  0x2f   : > { %s300_s21 = sshll.u32 %s299_s20, 4  ;;  %s301_s21 = int_to_ptr.hbm [resolvable:$true] %s300_s21 }
  0x30   : > { %s3127_s10 = sshra.s32 %s301_s21, 4  ;;  %s3128_s10 = int_to_ptr.hbm [resolvable:$true] %s3127_s10 }
  0x31   : > { %s3129_s23 = scalar_lea.hbm %s3128_s10, 32  ;;  %p3135_p12 = scmp.lt.s32.totalorder %s3128_s10, %s3987_s3 }
  0x32   : > { %p3130_p6 = scmp.ne.s32.totalorder %s3128_s10, %s3129_s23  ;;  %p3136_p13 = scmp.lt.s32.totalorder %s3134_s11, %s3129_s23 }
  0x34   : > { %p3132_p9 = pnand %p3130_p6, %p3101_p10  ;;  %p3137_p0 = por %p3136_p13, %p3135_p12 }
  0x36   : > { %p3133_p11 = pneg %p3132_p9 }
  0x38   : > { %p3138_p1 = pnand %p3137_p0, %p3133_p11 }
  0x3a   : > { %3141 = shalt.err (!%p3138_p1)
}
  0x3b   : > { %2790 = dma.hbm_to_vmem [thread:$0]  (!%p3328_p8), %s301_s21, 512, %s303_s24, %s291_s13, %s3227_s19, %s3227_s19, %s3228_s15  }
  0x3c   : > { %s349_s30 = scalar_lea.hbm %s3973_s6, %s3326_s17  ;;  %s344_s12 = scalar_lea.vmem [#allocation6], %s3323_s16 }
  0x3d   : > { %s350_s25 = sshll.u32 %s349_s30, 4  ;;  %s352_s10 = sshll.u32 %s344_s12, 4  ;;  %s351_s25 = int_to_ptr.hbm [resolvable:$true] %s350_s25  ;;  %s353_s10 = int_to_ptr.vmem [resolvable:$true] %s352_s10 }
  0x3e   : > { %s3157_s23 = sshra.s32 %s351_s25, 4  ;;  %s3164_s13 = scalar_lea.hbm %s3973_s6, 64  ;;  %s3158_s23 = int_to_ptr.hbm [resolvable:$true] %s3157_s23 }
  0x3f   : > { %s3159_s11 = scalar_lea.hbm %s3158_s23, 32  ;;  %p3165_p6 = scmp.lt.s32.totalorder %s3158_s23, %s3973_s6 }
  0x40   : > { %p3160_p2 = scmp.ne.s32.totalorder %s3158_s23, %s3159_s11  ;;  %p3166_p9 = scmp.lt.s32.totalorder %s3164_s13, %s3159_s11 }
  0x42   : > { %p3162_p3 = pnand %p3160_p2, %p3101_p10  ;;  %p3167_p11 = por %p3166_p9, %p3165_p6 }
  0x44   : > { %p3163_p4 = pneg %p3162_p3 }
  0x46   : > { %p3168_p12 = pnand %p3167_p11, %p3163_p4 }
  0x48   : > { %3171 = shalt.err (!%p3168_p12)
}
  0x49   : > { %2796 = dma.hbm_to_vmem [thread:$0]  (!%p3328_p8), %s351_s25, 512, %s353_s10, %s3338_s26, %s3227_s19, %s3227_s19, %s3228_s15  }
  0x4a   : > { %370 = sbr.rel (%p3359_p5) target bundleno = 9711 (0x25ef), region = 52  ;;  %s372_s3 = sand.u32 (!%p3359_p5), 1, %s3217_s28  }
  0x4b   : > { %s3407_s16 = sshll.u32 (!%p3359_p5), %s372_s3, 5  ;;  %s373_s17 = scalar_lea.sflag (!%p3359_p5), [#allocation3], %s372_s3 }
  0x4c   : > { %s3410_s5 = scalar_lea.vmem (!%p3359_p5), [#allocation2], %s3407_s16 }
  0x4f   : > { %3204 = dma.done.wait (%p3316_p7), %s373_s17, 512  }
  0x50   : > { %3206 = vsyncadd (%p3316_p7), %s373_s17, 4294966784  ;;  %s382_s15 = sand.u32 1, %s3299_s9   ;;  %s3418_s26 = scalar_lea.vmem [#allocation4], %s3407_s16 }
  0x51   : > { %s383_s18 = scalar_lea.sflag [#allocation5], %s382_s15 }
  0x52   : > { %3208 = dma.done.wait (%p3316_p7), %s383_s18, 1024  }
  0x53   : > { %3210 = vsyncadd (%p3316_p7), %s383_s18, 4294966272  ;;  %p456_p8 = scmp.lt.s32.totalorder %s3299_s9, 1  ;;  %v3229_v0 = vmov 0   ;;  %v500_v4 = vld [vmem:[%s3410_s5 + $0x18] sm:$0xff]  ;;  %v499_v6 = vld [vmem:[%s3410_s5 + $0x10] sm:$0xff]  ;;  %v3230_v11 = vmov 0.0  }
  0x54   : > { %2838 = vset.pattern.permute.xlu0 %v3229_v0  ;;  %550 = vmatpush.msra.mxu1 %v500_v4  ;;  %v498_v9 = vld [vmem:[%s3410_s5 + $0x8] sm:$0xff]  ;;  %v497_v10 = vld [vmem:[%s3410_s5] sm:$0xff]  ;;  %vm505_vm0 = vcmask 261120   ;;  %s3231_s15 = smov 96   ;;  %s3232_s18 = smov 16   ;;  %vm646_vm9 = vcmask 130048  }
  0x55   : > { %s3995_s9 = smov (!%p456_p8, %s3299_s9), 1  ;;  %663 = vmatpush.msra.mxu2 %v500_v4  ;;  %784 = vmatpush.msra.mxu3 %v500_v4  ;;  %v479_v12 = vld [vmem:[%s3967_s0] sm:$0xff]  ;;  %v480_v15 = vld [vmem:[%s3967_s0 + $0x8] sm:$0xff]  ;;  %s3234_s22 = smov 80  }
  0x56   : > { %s2778_s19 = sshll.u32 %s3995_s9, 4  ;;  %s2779_s27 = sshll.u32 %s3995_s9, 5  ;;  %551 = vmatpush.msra.mxu1 %v499_v6 }
  0x57   : > { %s460_s14 = scalar_lea.vmem %s3968_s1, %s2778_s19  ;;  %s465_s10 = scalar_lea.vmem %s3969_s2, %s2779_s27  ;;  %664 = vmatpush.msra.mxu2 %v499_v6  ;;  %785 = vmatpush.msra.mxu3 %v499_v6 }
  0x58   : > { %v477_v1 = vld [vmem:[%s460_s14] sm:$0xff]  ;;  %v496_v2 = vld [vmem:[%s465_s10 + $0x18] sm:$0xff]  ;;  %v495_v3 = vld [vmem:[%s465_s10 + $0x10] sm:$0xff]  ;;  %s468_s20 = scalar_lea.vmem %s3971_s4, %s3995_s9  ;;  %552 = vmatpush.msra.mxu1 %v498_v9  ;;  %s3233_s27 = smov 32  }
  0x59   : > { %483 = vperm.xlu0 %2838, %v477_v1   ;;  %524 = vmatpush.msra.mxu0 %v496_v2  ;;  %v494_v5 = vld [vmem:[%s465_s10 + $0x8] sm:$0xff]  ;;  %v493_v8 = vld [vmem:[%s465_s10] sm:$0xff]  ;;  %s471_s25 = scalar_lea.vmem %s3974_s7, %s3995_s9  ;;  %s396_s12 = scalar_lea.vmem [#allocation6], %s3407_s16 }
  0x5a   : > { %v478_v7 = vld [vmem:[%s460_s14 + $0x8] sm:$0xff]  ;;  %665 = vmatpush.msra.mxu2 %v498_v9  ;;  %786 = vmatpush.msra.mxu3 %v498_v9  ;;  %v2839_v20 = vld [vmem:[%s468_s20] ss:$0 sm:$0xff]  ;;  %s476_s11 = scalar_lea.vmem %s3975_s8, %s2778_s19 }
  0x5b   : > { %525 = vmatpush.msra.mxu0 %v495_v3  ;;  %553 = vmatpush.msra.mxu1 %v497_v10 }
  0x5c   : > { %554 = vmatmul.f32.vlgmr.msra.gmra.mxu1 %v3230_v11  ;;  %666 = vmatpush.msra.mxu2 %v497_v10 }
  0x5d   : > { %526 = vmatpush.msra.mxu0 %v494_v5  ;;  %787 = vmatpush.msra.mxu3 %v497_v10 }
  0x5e   : > { %905 = vmatpush.msrb.mxu1 %v500_v4  ;;  %1024 = vmatpush.msrb.mxu2 %v500_v4 }
  0x5f   : > { %527 = vmatpush.msra.mxu0 %v493_v8  ;;  %1142 = vmatpush.msrb.mxu3 %v500_v4 }
  0x60   : > { %906 = vmatpush.msrb.mxu1 %v499_v6  ;;  %1025 = vmatpush.msrb.mxu2 %v499_v6 }
  0x61   : > { %488 = vperm.xlu0 %2838, %v478_v7   ;;  %1263 = vmatpush.msrb.mxu0 %v500_v4 }
  0x62   : > { %1143 = vmatpush.msrb.mxu3 %v499_v6  ;;  %907 = vmatpush.msrb.mxu1 %v498_v9 }
  0x63   : > { %1264 = vmatpush.msrb.mxu0 %v499_v6  ;;  %1026 = vmatpush.msrb.mxu2 %v498_v9 }
  0x64   : > { %1144 = vmatpush.msrb.mxu3 %v498_v9  ;;  %908 = vmatpush.msrb.mxu1 %v497_v10 }
  0x65   : > { %1265 = vmatpush.msrb.mxu0 %v498_v9  ;;  %1027 = vmatpush.msrb.mxu2 %v497_v10 }
  0x66   : > { %1145 = vmatpush.msrb.mxu3 %v497_v10  ;;  %1384 = vmatpush.msra.mxu1 %v500_v4 }
  0x67   : > { %1266 = vmatpush.msrb.mxu0 %v497_v10 }
  0x68   : > { %1385 = vmatpush.msra.mxu1 %v499_v6 }
  0x6a   : > { %1386 = vmatpush.msra.mxu1 %v498_v9 }
  0x6c   : > { %1387 = vmatpush.msra.mxu1 %v497_v10 }
  0xcb   : > { %v3450_v13 = vpop.permute.xlu0 %483 }
  0xcc   : > { %v491_v14 = vmul.f32 %v3450_v13, %v479_v12 }
  0xce   : > { %2723 = vmatmul.msk.f32.vlgmr.msra.gmra.mxu0 %vm505_vm0, %v491_v14 }
  0xd3   : > { %v3457_v16 = vpop.permute.xlu0 %488 }
  0xd4   : > { %v492_v17 = vmul.f32 %v3457_v16, %v480_v15 }
  0xd6   : > { %2724 = vmatmul.msk.f32.gmra.mxu0 %vm505_vm0, %v492_v17 }
  0xd9   : > { %v555_v19 = vpop.f32.mrf.mxu1 }
  0xda   : > { %v560_v21 = vrot.slane %v555_v19, 2 }
 0x14b   : > { %v529_v18 = vpop.f32.mrf.mxu0 }
 0x14c   : > { %v3469_v25 = vadd.f32 %v2839_v20, %v529_v18 }
 0x14e   : > { %v558_v26 = vadd.f32 %v555_v19, %v3469_v25 }
 0x150   : > { %v2725_v30 = vmul.f32 -1.442695, %v558_v26 }
 0x153   : > { %v532_v22 = vpop.f32.mrf.mxu0 }
 0x154   : > { %v3466_v23 = vadd.f32 %v2839_v20, %v532_v22 }
 0x156   : > { %v562_v24 = vadd.f32 %v560_v21, %v3466_v23 }
 0x158   : > { %2841 = vtanh.f32 %v562_v24  ;;  %v2726_v29 = vmul.f32 -1.442695, %v562_v24 }
 0x159   : > { %2843 = vtanh.f32 %v558_v26 }
 0x15a   : > { %2845 = vpow2.f32 %v2726_v29 }
 0x15b   : > { %2847 = vpow2.f32 %v2725_v30 }
 0x15e   : > { %v2842_v27 = vpop.eup %2841 }
 0x15f   : > { %622 = vrot.lane.b32.xlu1 %v2842_v27, %s3231_s15  ;;  %v2844_v28 = vpop.eup %2843 }
 0x160   : > { %v2846_v31 = vpop.eup %2845 }
 0x161   : > { %v603_v32 = vadd.f32 1.0, %v2846_v31  ;;  %v2848_v33 = vpop.eup %2847 }
 0x162   : > { %v566_v34 = vadd.f32 1.0, %v2848_v33 }
 0x163   : > { %2849 = vrcp.f32 %v603_v32  ;;  %v615_v43 = vand.u32 2147483648, %v603_v32  ;;  %vm609_vm2 = vweird.f32 %v603_v32  ;;  %v613_v44 = vand.u32 2147483647, %v603_v32 }
 0x164   : > { %2851 = vrcp.f32 %v566_v34  ;;  %v578_v52 = vand.u32 2147483648, %v566_v34  ;;  %vm572_vm6 = vweird.f32 %v566_v34  ;;  %v576_v53 = vand.u32 2147483647, %v566_v34 }
 0x165   : > { %v616_v47 = vor.u32 1.1754944e-38, %v615_v43  ;;  %vm614_vm4 = vcmp.eq.f32.partialorder %v613_v44, 8.507059e+37 }
 0x166   : > { %v579_v55 = vor.u32 1.1754944e-38, %v578_v52  ;;  %vm577_vm8 = vcmp.eq.f32.partialorder %v576_v53, 8.507059e+37 }
 0x167   : > { %585 = vrot.lane.b32.xlu1 %v2844_v28, %s3231_s15 }
 0x169   : > { %v2850_v35 = vpop.eup %2849 }
 0x16a   : > { %v605_v36 = vmul.f32 %v2850_v35, %v603_v32  ;;  %v2852_v38 = vpop.eup %2851  ;;  %vm610_vm1 = vweird.f32 %v2850_v35 }
 0x16b   : > { %v568_v40 = vmul.f32 %v2852_v38, %v566_v34  ;;  %vm611_vm3 = vmor %vm609_vm2, %vm610_vm1  ;;  %vm573_vm5 = vweird.f32 %v2852_v38 }
 0x16c   : > { %v606_v37 = vsub.f32 1.0, %v605_v36  ;;  %vm574_vm7 = vmor %vm572_vm6, %vm573_vm5 }
 0x16d   : > { %v569_v42 = vsub.f32 1.0, %v568_v40 }
 0x16e   : > { %v607_v39 = vmul.f32 %v2850_v35, %v606_v37 }
 0x16f   : > { %v570_v46 = vmul.f32 %v2852_v38, %v569_v42 }
 0x170   : > { %v608_v41 = vadd.f32 %v2850_v35, %v607_v39 }
 0x171   : > { %v571_v51 = vadd.f32 %v2852_v38, %v570_v46 }
 0x172   : > { %v612_v45 = vsel %vm611_vm3, %v2850_v35, %v608_v41 }
 0x173   : > { %v617_v49 = vsel %vm614_vm4, %v616_v47, %v612_v45  ;;  %v575_v54 = vsel %vm574_vm7, %v2852_v38, %v571_v51 }
 0x174   : > { %v580_v56 = vsel %vm577_vm8, %v579_v55, %v575_v54  ;;  %v620_v59 = vmul.f32 0.0, %v617_v49 }
 0x175   : > { %v583_v62 = vmul.f32 0.0, %v580_v56 }
 0x1d1   : > { %v623_v48 = vpop.permute.xlu1 %622 }
 0x1d2   : > { %v625_v50 = vmul.f32 %v623_v48, %v617_v49 }
 0x1d4   : > { %627 = vrot.lane.b32.xlu2 %v625_v50, %s3232_s18 }
 0x1d9   : > { %v586_v57 = vpop.permute.xlu1 %585 }
 0x1da   : > { %v588_v58 = vmul.f32 %v586_v57, %v580_v56 }
 0x1dc   : > { %590 = vrot.lane.b32.xlu2 %v588_v58, %s3232_s18 }
 0x22e   : > { %v628_v60 = vpop.permute.xlu2 %627 }
 0x22f   : > { %v3476_v61 = vadd.f32 %v628_v60, %v620_v59 }
 0x231   : > { %2853 = vtanh.f32 %v3476_v61  ;;  %v739_v58 = vrot.slane %v3476_v61, 2 }
 0x236   : > { %v591_v63 = vpop.permute.xlu2 %590 }
 0x237   : > { %v2854_v0 = vpop.eup %2853  ;;  %v3479_v1 = vadd.f32 %v591_v63, %v583_v62 }
 0x238   : > { %633 = vrot.lane.b32.xlu0 %v2854_v0, %s3233_s27 }
 0x239   : > { %2855 = vtanh.f32 %v3479_v1  ;;  %v699_v53 = vrot.slane %v3479_v1, 6 }
 0x23f   : > { %v2856_v2 = vpop.eup %2855 }
 0x240   : > { %596 = vrot.lane.b32.xlu1 %v2856_v2, %s3233_s27 }
 0x2aa   : > { %v634_v3 = vpop.permute.xlu0 %633 }
 0x2ab   : > { %v3484_v4 = vmul.f32 %v634_v3, %v617_v49 }
 0x2ad   : > { %v642_v5 = vrot.slane %v3484_v4, 6 }
 0x2af   : > { %643 = vrot.lane.b32.xlu0 %v642_v5, %s3233_s27 }
 0x2b2   : > { %v597_v6 = vpop.permute.xlu1 %596 }
 0x2b3   : > { %v599_v7 = vmul.f32 %v597_v6, %v580_v56 }
 0x2b5   : > { %638 = vrot.lane.b32.xlu2 %v599_v7, %s3234_s22 }
 0x30f   : > { %v3489_v8 = vpop.permute.xlu2 %638 }
 0x321   : > { %v644_v9 = vpop.permute.xlu0 %643 }
 0x322   : > { %v647_v10 = vsel %vm646_vm9, %v3489_v8, %v644_v9 }
 0x323   : > { %2727 = vmatmul.msk.f32.vlgmr.msra.gmra.mxu2 %vm505_vm0, %v647_v10 }
 0x3a6   : > { %v668_v12 = vpop.f32.mrf.mxu2 }
 0x3a7   : > { %v672_v14 = vrot.slane %v668_v12, 6  ;;  %v675_v15 = vrot.slane %v668_v12, 4 }
 0x3a9   : > { %v674_v17 = vadd.f32 %v672_v14, %v3469_v25  ;;  %v677_v18 = vadd.f32 %v675_v15, %v3466_v23 }
 0x3ab   : > { %2857 = vtanh.f32 %v674_v17  ;;  %v2728_v21 = vmul.f32 -1.442695, %v674_v17  ;;  %v2729_v27 = vmul.f32 -1.442695, %v677_v18 }
 0x3ac   : > { %2859 = vtanh.f32 %v677_v18 }
 0x3ad   : > { %2861 = vpow2.f32 %v2728_v21 }
 0x3b1   : > { %v2858_v19 = vpop.eup %2857 }
 0x3b2   : > { %v2860_v20 = vpop.eup %2859  ;;  %703 = vrot.lane.b32.xlu2 %v2858_v19, %s3231_s15 }
 0x3b3   : > { %743 = vrot.lane.b32.xlu1 %v2860_v20, %s3231_s15  ;;  %v2862_v22 = vpop.eup %2861 }
 0x3b4   : > { %v681_v24 = vadd.f32 1.0, %v2862_v22 }
 0x3b6   : > { %2863 = vrcp.f32 %v681_v24  ;;  %v693_v34 = vand.u32 2147483648, %v681_v24  ;;  %vm687_vm11 = vweird.f32 %v681_v24  ;;  %v691_v35 = vand.u32 2147483647, %v681_v24 }
 0x3b7   : > { %2865 = vpow2.f32 %v2729_v27 }
 0x3b8   : > { %v694_v37 = vor.u32 1.1754944e-38, %v693_v34  ;;  %vm692_vm13 = vcmp.eq.f32.partialorder %v691_v35, 8.507059e+37 }
 0x3bc   : > { %v2864_v26 = vpop.eup %2863 }
 0x3bd   : > { %v683_v28 = vmul.f32 %v2864_v26, %v681_v24  ;;  %v2866_v31 = vpop.eup %2865  ;;  %vm688_vm10 = vweird.f32 %v2864_v26 }
 0x3be   : > { %v721_v32 = vadd.f32 1.0, %v2866_v31  ;;  %vm689_vm12 = vmor %vm687_vm11, %vm688_vm10 }
 0x3bf   : > { %v684_v29 = vsub.f32 1.0, %v683_v28 }
 0x3c0   : > { %2867 = vrcp.f32 %v721_v32  ;;  %v733_v46 = vand.u32 2147483648, %v721_v32  ;;  %vm727_vm15 = vweird.f32 %v721_v32  ;;  %v731_v47 = vand.u32 2147483647, %v721_v32 }
 0x3c1   : > { %v685_v30 = vmul.f32 %v2864_v26, %v684_v29 }
 0x3c2   : > { %v734_v49 = vor.u32 1.1754944e-38, %v733_v46  ;;  %vm732_vm2 = vcmp.eq.f32.partialorder %v731_v47, 8.507059e+37 }
 0x3c3   : > { %v686_v33 = vadd.f32 %v2864_v26, %v685_v30 }
 0x3c5   : > { %v690_v36 = vsel %vm689_vm12, %v2864_v26, %v686_v33 }
 0x3c6   : > { %v695_v39 = vsel %vm692_vm13, %v694_v37, %v690_v36  ;;  %v2868_v41 = vpop.eup %2867 }
 0x3c7   : > { %v723_v42 = vmul.f32 %v2868_v41, %v721_v32  ;;  %vm728_vm14 = vweird.f32 %v2868_v41  ;;  %v701_v54 = vmul.f32 %v699_v53, %v695_v39 }
 0x3c8   : > { %vm729_vm1 = vmor %vm727_vm15, %vm728_vm14 }
 0x3c9   : > { %v724_v43 = vsub.f32 1.0, %v723_v42 }
 0x3cb   : > { %v725_v44 = vmul.f32 %v2868_v41, %v724_v43 }
 0x3cd   : > { %v726_v45 = vadd.f32 %v2868_v41, %v725_v44 }
 0x3cf   : > { %v730_v48 = vsel %vm729_vm1, %v2868_v41, %v726_v45 }
 0x3d0   : > { %v735_v51 = vsel %vm732_vm2, %v734_v49, %v730_v48 }
 0x3d1   : > { %v741_v59 = vmul.f32 %v739_v58, %v735_v51 }
 0x40c   : > { %v704_v38 = vpop.permute.xlu2 %703 }
 0x40d   : > { %v706_v40 = vmul.f32 %v704_v38, %v695_v39 }
 0x40f   : > { %708 = vrot.lane.b32.xlu1 %v706_v40, %s3232_s18 }
 0x425   : > { %v744_v50 = vpop.permute.xlu1 %743 }
 0x426   : > { %v746_v52 = vmul.f32 %v744_v50, %v735_v51 }
 0x428   : > { %748 = vrot.lane.b32.xlu0 %v746_v52, %s3232_s18 }
 0x481   : > { %v709_v55 = vpop.permute.xlu1 %708 }
 0x482   : > { %v3501_v56 = vadd.f32 %v709_v55, %v701_v54 }
 0x484   : > { %2869 = vtanh.f32 %v3501_v56  ;;  %v820_v58 = vrot.slane %v3501_v56, 6 }
 0x48a   : > { %v2870_v57 = vpop.eup %2869 }
 0x48b   : > { %714 = vrot.lane.b32.xlu0 %v2870_v57, %s3233_s27 }
 0x49a   : > { %v749_v60 = vpop.permute.xlu0 %748 }
 0x49b   : > { %v3506_v62 = vadd.f32 %v749_v60, %v741_v59 }
 0x49d   : > { %2871 = vtanh.f32 %v3506_v62  ;;  %v860_v52 = vrot.slane %v3506_v62, 2 }
 0x4a3   : > { %v2872_v63 = vpop.eup %2871 }
 0x4a4   : > { %754 = vrot.lane.b32.xlu2 %v2872_v63, %s3233_s27 }
 0x4fd   : > { %v715_v0 = vpop.permute.xlu0 %714 }
 0x4fe   : > { %v755_v1 = vpop.permute.xlu2 %754  ;;  %v717_v2 = vmul.f32 %v715_v0, %v695_v39 }
 0x4ff   : > { %v3510_v3 = vmul.f32 %v755_v1, %v735_v51 }
 0x500   : > { %759 = vrot.lane.b32.xlu1 %v717_v2, %s3234_s22 }
 0x501   : > { %v763_v5 = vrot.slane %v3510_v3, 2 }
 0x503   : > { %764 = vrot.lane.b32.xlu2 %v763_v5, %s3233_s27 }
 0x55d   : > { %v765_v61 = vpop.permute.xlu2 %764 }
 0x572   : > { %v3515_v6 = vpop.permute.xlu1 %759 }
 0x573   : > { %v767_v7 = vsel %vm646_vm9, %v3515_v6, %v765_v61 }
 0x574   : > { %v769_v9 = vrot.slane %v767_v7, 2 }
 0x576   : > { %2730 = vmatmul.msk.f32.vlgmr.msra.gmra.mxu3 %vm505_vm0, %v769_v9 }
 0x5f9   : > { %v789_v10 = vpop.f32.mrf.mxu3 }
 0x5fa   : > { %v793_v12 = vrot.slane %v789_v10, 4  ;;  %v796_v14 = vrot.slane %v789_v10, 6 }
 0x5fc   : > { %v795_v15 = vadd.f32 %v793_v12, %v3469_v25  ;;  %v798_v17 = vadd.f32 %v796_v14, %v3466_v23 }
 0x5fe   : > { %2873 = vtanh.f32 %v795_v15  ;;  %v2731_v20 = vmul.f32 -1.442695, %v795_v15  ;;  %v2732_v21 = vmul.f32 -1.442695, %v798_v17 }
 0x5ff   : > { %2875 = vtanh.f32 %v798_v17 }
 0x600   : > { %2877 = vpow2.f32 %v2731_v20 }
 0x601   : > { %2879 = vpow2.f32 %v2732_v21 }
 0x604   : > { %v2874_v18 = vpop.eup %2873 }
 0x605   : > { %v2876_v19 = vpop.eup %2875  ;;  %824 = vrot.lane.b32.xlu1 %v2874_v18, %s3231_s15 }
 0x606   : > { %864 = vrot.lane.b32.xlu0 %v2876_v19, %s3231_s15  ;;  %v2878_v22 = vpop.eup %2877 }
 0x607   : > { %v2880_v24 = vpop.eup %2879  ;;  %v802_v26 = vadd.f32 1.0, %v2878_v22 }
 0x608   : > { %v842_v27 = vadd.f32 1.0, %v2880_v24 }
 0x609   : > { %2881 = vrcp.f32 %v802_v26  ;;  %v814_v38 = vand.u32 2147483648, %v802_v26  ;;  %vm808_vm5 = vweird.f32 %v802_v26  ;;  %v812_v40 = vand.u32 2147483647, %v802_v26 }
 0x60a   : > { %2883 = vrcp.f32 %v842_v27  ;;  %v854_v39 = vand.u32 2147483648, %v842_v27  ;;  %vm848_vm6 = vweird.f32 %v842_v27  ;;  %v852_v41 = vand.u32 2147483647, %v842_v27 }
 0x60b   : > { %v815_v44 = vor.u32 1.1754944e-38, %v814_v38  ;;  %vm813_vm10 = vcmp.eq.f32.partialorder %v812_v40, 8.507059e+37 }
 0x60c   : > { %v855_v45 = vor.u32 1.1754944e-38, %v854_v39  ;;  %vm853_vm11 = vcmp.eq.f32.partialorder %v852_v41, 8.507059e+37 }
 0x60f   : > { %v2882_v28 = vpop.eup %2881 }
 0x610   : > { %v2884_v29 = vpop.eup %2883  ;;  %v804_v30 = vmul.f32 %v2882_v28, %v802_v26  ;;  %vm809_vm3 = vweird.f32 %v2882_v28 }
 0x611   : > { %v844_v31 = vmul.f32 %v2884_v29, %v842_v27  ;;  %vm849_vm4 = vweird.f32 %v2884_v29  ;;  %vm810_vm7 = vmor %vm808_vm5, %vm809_vm3 }
 0x612   : > { %v805_v32 = vsub.f32 1.0, %v804_v30  ;;  %vm850_vm8 = vmor %vm848_vm6, %vm849_vm4 }
 0x613   : > { %v845_v33 = vsub.f32 1.0, %v844_v31 }
 0x614   : > { %v806_v34 = vmul.f32 %v2882_v28, %v805_v32 }
 0x615   : > { %v846_v35 = vmul.f32 %v2884_v29, %v845_v33 }
 0x616   : > { %v807_v36 = vadd.f32 %v2882_v28, %v806_v34 }
 0x617   : > { %v847_v37 = vadd.f32 %v2884_v29, %v846_v35 }
 0x618   : > { %v811_v42 = vsel %vm810_vm7, %v2882_v28, %v807_v36 }
 0x619   : > { %v851_v43 = vsel %vm850_vm8, %v2884_v29, %v847_v37  ;;  %v816_v47 = vsel %vm813_vm10, %v815_v44, %v811_v42 }
 0x61a   : > { %v856_v49 = vsel %vm853_vm11, %v855_v45, %v851_v43  ;;  %v822_v59 = vmul.f32 %v820_v58, %v816_v47 }
 0x61b   : > { %v862_v53 = vmul.f32 %v860_v52, %v856_v49 }
 0x677   : > { %v825_v46 = vpop.permute.xlu1 %824 }
 0x678   : > { %v865_v48 = vpop.permute.xlu0 %864  ;;  %v827_v50 = vmul.f32 %v825_v46, %v816_v47 }
 0x679   : > { %v867_v51 = vmul.f32 %v865_v48, %v856_v49 }
 0x67a   : > { %829 = vrot.lane.b32.xlu0 %v827_v50, %s3232_s18 }
 0x67b   : > { %869 = vrot.lane.b32.xlu2 %v867_v51, %s3232_s18 }
 0x6d5   : > { %v870_v54 = vpop.permute.xlu2 %869 }
 0x6d6   : > { %v3527_v55 = vadd.f32 %v870_v54, %v862_v53 }
 0x6d8   : > { %2885 = vtanh.f32 %v3527_v55  ;;  %v979_v52 = vrot.slane %v3527_v55, 2 }
 0x6de   : > { %v2886_v57 = vpop.eup %2885 }
 0x6df   : > { %875 = vrot.lane.b32.xlu1 %v2886_v57, %s3233_s27 }
 0x6ec   : > { %v830_v60 = vpop.permute.xlu0 %829 }
 0x6ed   : > { %v3532_v63 = vadd.f32 %v830_v60, %v822_v59 }
 0x6ef   : > { %2887 = vtanh.f32 %v3532_v63  ;;  %v939_v53 = vrot.slane %v3532_v63, 6 }
 0x6f5   : > { %v2888_v0 = vpop.eup %2887 }
 0x6f6   : > { %835 = vrot.lane.b32.xlu2 %v2888_v0, %s3233_s27 }
 0x750   : > { %v836_v62 = vpop.permute.xlu2 %835 }
 0x751   : > { %v876_v1 = vpop.permute.xlu1 %875  ;;  %v838_v2 = vmul.f32 %v836_v62, %v816_v47 }
 0x752   : > { %v3536_v5 = vmul.f32 %v876_v1, %v856_v49 }
 0x753   : > { %880 = vrot.lane.b32.xlu0 %v838_v2, %s3234_s22 }
 0x754   : > { %v884_v61 = vrot.slane %v3536_v5, 6 }
 0x756   : > { %885 = vrot.lane.b32.xlu1 %v884_v61, %s3233_s27 }
 0x7c5   : > { %v3541_v56 = vpop.permute.xlu0 %880 }
 0x7c8   : > { %v886_v7 = vpop.permute.xlu1 %885 }
 0x7c9   : > { %v888_v9 = vsel %vm646_vm9, %v3541_v56, %v886_v7 }
 0x7ca   : > { %v890_v10 = vrot.slane %v888_v9, 4 }
 0x7cc   : > { %2733 = vmatmul.msk.f32.vlgmr.msrb.gmra.mxu1 %vm505_vm0, %v890_v10 }
 0x849   : > { %v910_v12 = vpop.f32.mrf.mxu1 }
 0x84a   : > { %v914_v14 = vrot.slane %v910_v12, 2  ;;  %v917_v15 = vadd.f32 %v910_v12, %v3466_v23 }
 0x84c   : > { %v916_v17 = vadd.f32 %v914_v14, %v3469_v25  ;;  %2889 = vtanh.f32 %v917_v15  ;;  %v2735_v20 = vmul.f32 -1.442695, %v917_v15 }
 0x84e   : > { %2891 = vtanh.f32 %v916_v17  ;;  %v2734_v26 = vmul.f32 -1.442695, %v916_v17 }
 0x84f   : > { %2893 = vpow2.f32 %v2735_v20 }
 0x852   : > { %v2890_v18 = vpop.eup %2889 }
 0x853   : > { %983 = vrot.lane.b32.xlu2 %v2890_v18, %s3231_s15 }
 0x854   : > { %v2892_v19 = vpop.eup %2891 }
 0x855   : > { %943 = vrot.lane.b32.xlu0 %v2892_v19, %s3231_s15  ;;  %v2894_v21 = vpop.eup %2893 }
 0x856   : > { %v961_v22 = vadd.f32 1.0, %v2894_v21 }
 0x858   : > { %2895 = vrcp.f32 %v961_v22  ;;  %v973_v33 = vand.u32 2147483648, %v961_v22  ;;  %vm967_vm13 = vweird.f32 %v961_v22  ;;  %v971_v34 = vand.u32 2147483647, %v961_v22 }
 0x859   : > { %2897 = vpow2.f32 %v2734_v26 }
 0x85a   : > { %v974_v36 = vor.u32 1.1754944e-38, %v973_v33  ;;  %vm972_vm15 = vcmp.eq.f32.partialorder %v971_v34, 8.507059e+37 }
 0x85e   : > { %v2896_v24 = vpop.eup %2895 }
 0x85f   : > { %v963_v27 = vmul.f32 %v2896_v24, %v961_v22  ;;  %v2898_v30 = vpop.eup %2897  ;;  %vm968_vm12 = vweird.f32 %v2896_v24 }
 0x860   : > { %v921_v32 = vadd.f32 1.0, %v2898_v30  ;;  %vm969_vm14 = vmor %vm967_vm13, %vm968_vm12 }
 0x861   : > { %v964_v28 = vsub.f32 1.0, %v963_v27 }
 0x862   : > { %2899 = vrcp.f32 %v921_v32  ;;  %v933_v45 = vand.u32 2147483648, %v921_v32  ;;  %vm927_vm2 = vweird.f32 %v921_v32  ;;  %v931_v46 = vand.u32 2147483647, %v921_v32 }
 0x863   : > { %v965_v29 = vmul.f32 %v2896_v24, %v964_v28 }
 0x864   : > { %v934_v48 = vor.u32 1.1754944e-38, %v933_v45  ;;  %vm932_vm4 = vcmp.eq.f32.partialorder %v931_v46, 8.507059e+37 }
 0x865   : > { %v966_v31 = vadd.f32 %v2896_v24, %v965_v29 }
 0x867   : > { %v970_v35 = vsel %vm969_vm14, %v2896_v24, %v966_v31 }
 0x868   : > { %v975_v38 = vsel %vm972_vm15, %v974_v36, %v970_v35  ;;  %v2900_v40 = vpop.eup %2899 }
 0x869   : > { %v923_v41 = vmul.f32 %v2900_v40, %v921_v32  ;;  %vm928_vm1 = vweird.f32 %v2900_v40  ;;  %v981_v54 = vmul.f32 %v979_v52, %v975_v38 }
 0x86a   : > { %vm929_vm3 = vmor %vm927_vm2, %vm928_vm1 }
 0x86b   : > { %v924_v42 = vsub.f32 1.0, %v923_v41 }
 0x86d   : > { %v925_v43 = vmul.f32 %v2900_v40, %v924_v42 }
 0x86f   : > { %v926_v44 = vadd.f32 %v2900_v40, %v925_v43 }
 0x871   : > { %v930_v47 = vsel %vm929_vm3, %v2900_v40, %v926_v44 }
 0x872   : > { %v935_v50 = vsel %vm932_vm4, %v934_v48, %v930_v47 }
 0x873   : > { %v941_v59 = vmul.f32 %v939_v53, %v935_v50 }
 0x8ad   : > { %v984_v37 = vpop.permute.xlu2 %983 }
 0x8ae   : > { %v986_v39 = vmul.f32 %v984_v37, %v975_v38 }
 0x8b0   : > { %988 = vrot.lane.b32.xlu1 %v986_v39, %s3232_s18 }
 0x8c7   : > { %v944_v49 = vpop.permute.xlu0 %943 }
 0x8c8   : > { %v946_v51 = vmul.f32 %v944_v49, %v935_v50 }
 0x8ca   : > { %948 = vrot.lane.b32.xlu2 %v946_v51, %s3232_s18 }
 0x922   : > { %v989_v57 = vpop.permute.xlu1 %988 }
 0x923   : > { %v3554_v58 = vadd.f32 %v989_v57, %v981_v54 }
 0x924   : > { %v949_v60 = vpop.permute.xlu2 %948 }
 0x925   : > { %2901 = vtanh.f32 %v3554_v58  ;;  %v3557_v0 = vadd.f32 %v949_v60, %v941_v59 }
 0x927   : > { %2903 = vtanh.f32 %v3557_v0  ;;  %v1058_v54 = vrot.slane %v3557_v0, 6 }
 0x92b   : > { %v2902_v62 = vpop.eup %2901 }
 0x92c   : > { %994 = vrot.lane.b32.xlu0 %v2902_v62, %s3233_s27 }
 0x92d   : > { %v2904_v1 = vpop.eup %2903 }
 0x92e   : > { %954 = vrot.lane.b32.xlu1 %v2904_v1, %s3233_s27  ;;  %v1098_v1 = vrot.slane %v3554_v58, 2 }
 0x99e   : > { %v995_v55 = vpop.permute.xlu0 %994 }
 0x99f   : > { %v3562_v63 = vmul.f32 %v995_v55, %v975_v38 }
 0x9a0   : > { %v955_v2 = vpop.permute.xlu1 %954 }
 0x9a1   : > { %v1003_v61 = vrot.slane %v3562_v63, 2  ;;  %v957_v7 = vmul.f32 %v955_v2, %v935_v50 }
 0x9a3   : > { %1004 = vrot.lane.b32.xlu0 %v1003_v61, %s3233_s27  ;;  %999 = vrot.lane.b32.xlu2 %v957_v7, %s3234_s22 }
 0x9fd   : > { %v3567_v9 = vpop.permute.xlu2 %999 }
 0xa15   : > { %v1005_v10 = vpop.permute.xlu0 %1004 }
 0xa16   : > { %v1007_v12 = vsel %vm646_vm9, %v3567_v9, %v1005_v10 }
 0xa17   : > { %v1009_v14 = vrot.slane %v1007_v12, 6 }
 0xa19   : > { %2736 = vmatmul.msk.f32.vlgmr.msrb.gmra.mxu2 %vm505_vm0, %v1009_v14 }
 0xa9c   : > { %v1029_v15 = vpop.f32.mrf.mxu2 }
 0xa9d   : > { %v1032_v17 = vadd.f32 %v1029_v15, %v3466_v23  ;;  %v1034_v18 = vrot.slane %v1029_v15, 2 }
 0xa9f   : > { %v1036_v19 = vadd.f32 %v1034_v18, %v3469_v25  ;;  %2905 = vtanh.f32 %v1032_v17  ;;  %v2737_v22 = vmul.f32 -1.442695, %v1032_v17 }
 0xaa1   : > { %2907 = vtanh.f32 %v1036_v19  ;;  %v2738_v29 = vmul.f32 -1.442695, %v1036_v19 }
 0xaa2   : > { %2909 = vpow2.f32 %v2737_v22 }
 0xaa5   : > { %v2906_v20 = vpop.eup %2905 }
 0xaa6   : > { %1062 = vrot.lane.b32.xlu2 %v2906_v20, %s3231_s15 }
 0xaa7   : > { %v2908_v21 = vpop.eup %2907 }
 0xaa8   : > { %1102 = vrot.lane.b32.xlu1 %v2908_v21, %s3231_s15  ;;  %v2910_v24 = vpop.eup %2909 }
 0xaa9   : > { %v1040_v26 = vadd.f32 1.0, %v2910_v24 }
 0xaab   : > { %2911 = vrcp.f32 %v1040_v26  ;;  %v1052_v34 = vand.u32 2147483648, %v1040_v26  ;;  %vm1046_vm6 = vweird.f32 %v1040_v26  ;;  %v1050_v36 = vand.u32 2147483647, %v1040_v26 }
 0xaac   : > { %2913 = vpow2.f32 %v2738_v29 }
 0xaad   : > { %v1053_v38 = vor.u32 1.1754944e-38, %v1052_v34  ;;  %vm1051_vm8 = vcmp.eq.f32.partialorder %v1050_v36, 8.507059e+37 }
 0xab1   : > { %v2912_v27 = vpop.eup %2911 }
 0xab2   : > { %v1042_v28 = vmul.f32 %v2912_v27, %v1040_v26  ;;  %v2914_v32 = vpop.eup %2913  ;;  %vm1047_vm5 = vweird.f32 %v2912_v27 }
 0xab3   : > { %v1080_v35 = vadd.f32 1.0, %v2914_v32  ;;  %vm1048_vm7 = vmor %vm1046_vm6, %vm1047_vm5 }
 0xab4   : > { %v1043_v30 = vsub.f32 1.0, %v1042_v28 }
 0xab5   : > { %2915 = vrcp.f32 %v1080_v35  ;;  %v1092_v47 = vand.u32 2147483648, %v1080_v35  ;;  %vm1086_vm11 = vweird.f32 %v1080_v35  ;;  %v1090_v48 = vand.u32 2147483647, %v1080_v35 }
 0xab6   : > { %v1044_v31 = vmul.f32 %v2912_v27, %v1043_v30 }
 0xab7   : > { %v1093_v50 = vor.u32 1.1754944e-38, %v1092_v47  ;;  %vm1091_vm13 = vcmp.eq.f32.partialorder %v1090_v48, 8.507059e+37 }
 0xab8   : > { %v1045_v33 = vadd.f32 %v2912_v27, %v1044_v31 }
 0xaba   : > { %v1049_v37 = vsel %vm1048_vm7, %v2912_v27, %v1045_v33 }
 0xabb   : > { %v1054_v40 = vsel %vm1051_vm8, %v1053_v38, %v1049_v37  ;;  %v2916_v42 = vpop.eup %2915 }
 0xabc   : > { %v1082_v43 = vmul.f32 %v2916_v42, %v1080_v35  ;;  %vm1087_vm10 = vweird.f32 %v2916_v42  ;;  %v1060_v57 = vmul.f32 %v1058_v54, %v1054_v40 }
 0xabd   : > { %vm1088_vm12 = vmor %vm1086_vm11, %vm1087_vm10 }
 0xabe   : > { %v1083_v44 = vsub.f32 1.0, %v1082_v43 }
 0xac0   : > { %v1084_v45 = vmul.f32 %v2916_v42, %v1083_v44 }
 0xac2   : > { %v1085_v46 = vadd.f32 %v2916_v42, %v1084_v45 }
 0xac4   : > { %v1089_v49 = vsel %vm1088_vm12, %v2916_v42, %v1085_v46 }
 0xac5   : > { %v1094_v52 = vsel %vm1091_vm13, %v1093_v50, %v1089_v49 }
 0xac6   : > { %v1100_v55 = vmul.f32 %v1098_v1, %v1094_v52 }
 0xb00   : > { %v1063_v39 = vpop.permute.xlu2 %1062 }
 0xb01   : > { %v1065_v41 = vmul.f32 %v1063_v39, %v1054_v40 }
 0xb03   : > { %1067 = vrot.lane.b32.xlu1 %v1065_v41, %s3232_s18 }
 0xb1a   : > { %v1103_v51 = vpop.permute.xlu1 %1102 }
 0xb1b   : > { %v1105_v53 = vmul.f32 %v1103_v51, %v1094_v52 }
 0xb1d   : > { %1107 = vrot.lane.b32.xlu0 %v1105_v53, %s3232_s18 }
 0xb75   : > { %v1068_v59 = vpop.permute.xlu1 %1067 }
 0xb76   : > { %v3579_v60 = vadd.f32 %v1068_v59, %v1060_v57 }
 0xb78   : > { %2917 = vtanh.f32 %v3579_v60 }
 0xb7e   : > { %v2918_v62 = vpop.eup %2917 }
 0xb7f   : > { %1073 = vrot.lane.b32.xlu0 %v2918_v62, %s3233_s27 }
 0xb8f   : > { %v1108_v2 = vpop.permute.xlu0 %1107 }
 0xb90   : > { %v3584_v61 = vadd.f32 %v1108_v2, %v1100_v55 }
 0xb92   : > { %2919 = vtanh.f32 %v3584_v61  ;;  %v1218_v1 = vrot.slane %v3584_v61, 2 }
 0xb98   : > { %v2920_v7 = vpop.eup %2919 }
 0xb99   : > { %1113 = vrot.lane.b32.xlu2 %v2920_v7, %s3233_s27 }
 0xbf1   : > { %v1074_v0 = vpop.permute.xlu0 %1073 }
 0xbf2   : > { %v1076_v10 = vmul.f32 %v1074_v0, %v1054_v40 }
 0xbf3   : > { %v1114_v12 = vpop.permute.xlu2 %1113 }
 0xbf4   : > { %1118 = vrot.lane.b32.xlu1 %v1076_v10, %s3234_s22  ;;  %v3589_v14 = vmul.f32 %v1114_v12, %v1094_v52  ;;  %v1178_v10 = vrot.slane %v3579_v60, 6 }
 0xbf6   : > { %v1122_v15 = vrot.slane %v3589_v14, 6 }
 0xbf8   : > { %1123 = vrot.lane.b32.xlu2 %v1122_v15, %s3233_s27 }
 0xc52   : > { %v1124_v58 = vpop.permute.xlu2 %1123 }
 0xc66   : > { %v3593_v17 = vpop.permute.xlu1 %1118 }
 0xc67   : > { %v1126_v18 = vsel %vm646_vm9, %v3593_v17, %v1124_v58 }
 0xc68   : > { %2739 = vmatmul.msk.f32.vlgmr.msrb.gmra.mxu3 %vm505_vm0, %v1126_v18 }
 0xceb   : > { %v1147_v19 = vpop.f32.mrf.mxu3 }
 0xcec   : > { %v1151_v20 = vrot.slane %v1147_v19, 6  ;;  %v1154_v21 = vrot.slane %v1147_v19, 4 }
 0xcee   : > { %v1153_v22 = vadd.f32 %v1151_v20, %v3466_v23  ;;  %v1156_v24 = vadd.f32 %v1154_v21, %v3469_v25 }
 0xcf0   : > { %2921 = vtanh.f32 %v1153_v22  ;;  %v2740_v28 = vmul.f32 -1.442695, %v1153_v22  ;;  %v2741_v29 = vmul.f32 -1.442695, %v1156_v24 }
 0xcf1   : > { %2923 = vtanh.f32 %v1156_v24 }
 0xcf2   : > { %2925 = vpow2.f32 %v2740_v28 }
 0xcf3   : > { %2927 = vpow2.f32 %v2741_v29 }
 0xcf6   : > { %v2922_v26 = vpop.eup %2921 }
 0xcf7   : > { %v2924_v27 = vpop.eup %2923  ;;  %1182 = vrot.lane.b32.xlu1 %v2922_v26, %s3231_s15 }
 0xcf8   : > { %1222 = vrot.lane.b32.xlu0 %v2924_v27, %s3231_s15  ;;  %v2926_v30 = vpop.eup %2925 }
 0xcf9   : > { %v2928_v31 = vpop.eup %2927  ;;  %v1160_v32 = vadd.f32 1.0, %v2926_v30 }
 0xcfa   : > { %v1200_v33 = vadd.f32 1.0, %v2928_v31 }
 0xcfb   : > { %2929 = vrcp.f32 %v1160_v32  ;;  %v1172_v44 = vand.u32 2147483648, %v1160_v32  ;;  %vm1166_vm1 = vweird.f32 %v1160_v32  ;;  %v1170_v46 = vand.u32 2147483647, %v1160_v32 }
 0xcfc   : > { %2931 = vrcp.f32 %v1200_v33  ;;  %v1212_v45 = vand.u32 2147483648, %v1200_v33  ;;  %vm1206_vm2 = vweird.f32 %v1200_v33  ;;  %v1210_v47 = vand.u32 2147483647, %v1200_v33 }
 0xcfd   : > { %v1173_v50 = vor.u32 1.1754944e-38, %v1172_v44  ;;  %vm1171_vm5 = vcmp.eq.f32.partialorder %v1170_v46, 8.507059e+37 }
 0xcfe   : > { %v1213_v51 = vor.u32 1.1754944e-38, %v1212_v45  ;;  %vm1211_vm6 = vcmp.eq.f32.partialorder %v1210_v47, 8.507059e+37 }
 0xd01   : > { %v2930_v34 = vpop.eup %2929 }
 0xd02   : > { %v2932_v35 = vpop.eup %2931  ;;  %v1162_v36 = vmul.f32 %v2930_v34, %v1160_v32  ;;  %vm1167_vm14 = vweird.f32 %v2930_v34 }
 0xd03   : > { %v1202_v37 = vmul.f32 %v2932_v35, %v1200_v33  ;;  %vm1207_vm15 = vweird.f32 %v2932_v35  ;;  %vm1168_vm3 = vmor %vm1166_vm1, %vm1167_vm14 }
 0xd04   : > { %v1163_v38 = vsub.f32 1.0, %v1162_v36  ;;  %vm1208_vm4 = vmor %vm1206_vm2, %vm1207_vm15 }
 0xd05   : > { %v1203_v39 = vsub.f32 1.0, %v1202_v37 }
 0xd06   : > { %v1164_v40 = vmul.f32 %v2930_v34, %v1163_v38 }
 0xd07   : > { %v1204_v41 = vmul.f32 %v2932_v35, %v1203_v39 }
 0xd08   : > { %v1165_v42 = vadd.f32 %v2930_v34, %v1164_v40 }
 0xd09   : > { %v1205_v43 = vadd.f32 %v2932_v35, %v1204_v41 }
 0xd0a   : > { %v1169_v48 = vsel %vm1168_vm3, %v2930_v34, %v1165_v42 }
 0xd0b   : > { %v1209_v49 = vsel %vm1208_vm4, %v2932_v35, %v1205_v43  ;;  %v1174_v53 = vsel %vm1171_vm5, %v1173_v50, %v1169_v48 }
 0xd0c   : > { %v1214_v57 = vsel %vm1211_vm6, %v1213_v51, %v1209_v49  ;;  %v1180_v12 = vmul.f32 %v1178_v10, %v1174_v53 }
 0xd0d   : > { %v1220_v55 = vmul.f32 %v1218_v1, %v1214_v57 }
 0xd69   : > { %v1183_v52 = vpop.permute.xlu1 %1182 }
 0xd6a   : > { %v1223_v54 = vpop.permute.xlu0 %1222  ;;  %v1185_v59 = vmul.f32 %v1183_v52, %v1174_v53 }
 0xd6b   : > { %v1225_v62 = vmul.f32 %v1223_v54, %v1214_v57 }
 0xd6c   : > { %1187 = vrot.lane.b32.xlu0 %v1185_v59, %s3232_s18 }
 0xd6d   : > { %1227 = vrot.lane.b32.xlu2 %v1225_v62, %s3232_s18 }
 0xdc7   : > { %v1228_v2 = vpop.permute.xlu2 %1227 }
 0xdc8   : > { %v3605_v7 = vadd.f32 %v1228_v2, %v1220_v55 }
 0xdca   : > { %2933 = vtanh.f32 %v3605_v7 }
 0xdd0   : > { %v2934_v0 = vpop.eup %2933 }
 0xdd1   : > { %1233 = vrot.lane.b32.xlu1 %v2934_v0, %s3233_s27 }
 0xdde   : > { %v1188_v15 = vpop.permute.xlu0 %1187 }
 0xddf   : > { %v3610_v58 = vadd.f32 %v1188_v15, %v1180_v12 }
 0xde1   : > { %2935 = vtanh.f32 %v3610_v58 }
 0xde7   : > { %v2936_v18 = vpop.eup %2935 }
 0xde8   : > { %1193 = vrot.lane.b32.xlu2 %v2936_v18, %s3233_s27  ;;  %v1299_v18 = vrot.slane %v3610_v58, 6 }
 0xe42   : > { %v1194_v61 = vpop.permute.xlu2 %1193 }
 0xe43   : > { %v1234_v19 = vpop.permute.xlu1 %1233  ;;  %v1196_v20 = vmul.f32 %v1194_v61, %v1174_v53  ;;  %v1339_v61 = vrot.slane %v3605_v7, 2 }
 0xe44   : > { %v3614_v21 = vmul.f32 %v1234_v19, %v1214_v57 }
 0xe45   : > { %1238 = vrot.lane.b32.xlu0 %v1196_v20, %s3234_s22 }
 0xe46   : > { %v1242_v22 = vrot.slane %v3614_v21, 2 }
 0xe48   : > { %1243 = vrot.lane.b32.xlu1 %v1242_v22, %s3233_s27 }
 0xeb7   : > { %v3619_v60 = vpop.permute.xlu0 %1238 }
 0xeba   : > { %v1244_v24 = vpop.permute.xlu1 %1243 }
 0xebb   : > { %v1246_v26 = vsel %vm646_vm9, %v3619_v60, %v1244_v24 }
 0xebc   : > { %v1248_v27 = vrot.slane %v1246_v26, 2 }
 0xebe   : > { %2742 = vmatmul.msk.f32.vlgmr.msrb.gmra.mxu0 %vm505_vm0, %v1248_v27 }
 0xf3b   : > { %v1268_v28 = vpop.f32.mrf.mxu0 }
 0xf3c   : > { %v1272_v29 = vrot.slane %v1268_v28, 4  ;;  %v1275_v30 = vrot.slane %v1268_v28, 6 }
 0xf3e   : > { %v1274_v31 = vadd.f32 %v1272_v29, %v3466_v23  ;;  %v1277_v32 = vadd.f32 %v1275_v30, %v3469_v25 }
 0xf40   : > { %2937 = vtanh.f32 %v1274_v31  ;;  %v2744_v35 = vmul.f32 -1.442695, %v1277_v32  ;;  %v2743_v39 = vmul.f32 -1.442695, %v1274_v31 }
 0xf41   : > { %2939 = vtanh.f32 %v1277_v32 }
 0xf42   : > { %2941 = vpow2.f32 %v2744_v35 }
 0xf46   : > { %v2938_v33 = vpop.eup %2937 }
 0xf47   : > { %v2940_v34 = vpop.eup %2939  ;;  %1303 = vrot.lane.b32.xlu0 %v2938_v33, %s3231_s15 }
 0xf48   : > { %1343 = vrot.lane.b32.xlu2 %v2940_v34, %s3231_s15  ;;  %v2942_v36 = vpop.eup %2941 }
 0xf49   : > { %v1321_v37 = vadd.f32 1.0, %v2942_v36 }
 0xf4b   : > { %2943 = vrcp.f32 %v1321_v37  ;;  %v1333_v46 = vand.u32 2147483648, %v1321_v37  ;;  %vm1327_vm8 = vweird.f32 %v1321_v37  ;;  %v1331_v47 = vand.u32 2147483647, %v1321_v37 }
 0xf4c   : > { %2945 = vpow2.f32 %v2743_v39 }
 0xf4d   : > { %v1334_v49 = vor.u32 1.1754944e-38, %v1333_v46  ;;  %vm1332_vm11 = vcmp.eq.f32.partialorder %v1331_v47, 8.507059e+37 }
 0xf51   : > { %v2944_v38 = vpop.eup %2943 }
 0xf52   : > { %v1323_v40 = vmul.f32 %v2944_v38, %v1321_v37  ;;  %v2946_v42 = vpop.eup %2945  ;;  %vm1328_vm7 = vweird.f32 %v2944_v38 }
 0xf53   : > { %v1281_v44 = vadd.f32 1.0, %v2946_v42  ;;  %vm1329_vm10 = vmor %vm1327_vm8, %vm1328_vm7 }
 0xf54   : > { %v1324_v41 = vsub.f32 1.0, %v1323_v40 }
 0xf55   : > { %2947 = vrcp.f32 %v1281_v44  ;;  %v1293_v1 = vand.u32 2147483648, %v1281_v44  ;;  %vm1287_vm13 = vweird.f32 %v1281_v44  ;;  %v1291_v55 = vand.u32 2147483647, %v1281_v44 }
 0xf56   : > { %v1325_v43 = vmul.f32 %v2944_v38, %v1324_v41 }
 0xf57   : > { %v1294_v0 = vor.u32 1.1754944e-38, %v1293_v1  ;;  %vm1292_vm15 = vcmp.eq.f32.partialorder %v1291_v55, 8.507059e+37 }
 0xf58   : > { %v1326_v45 = vadd.f32 %v2944_v38, %v1325_v43 }
 0xf5a   : > { %v1330_v48 = vsel %vm1329_vm10, %v2944_v38, %v1326_v45  ;;  %vm1514_vm10 = vcmask 1041408  }
 0xf5b   : > { %v1335_v51 = vsel %vm1332_vm11, %v1334_v49, %v1330_v48  ;;  %v2948_v52 = vpop.eup %2947  ;;  %vm1516_vm11 = vcmask 1043456  }
 0xf5c   : > { %v1283_v54 = vmul.f32 %v2948_v52, %v1281_v44  ;;  %vm1288_vm12 = vweird.f32 %v2948_v52  ;;  %v1341_v20 = vmul.f32 %v1339_v61, %v1335_v51 }
 0xf5d   : > { %vm1289_vm14 = vmor %vm1287_vm13, %vm1288_vm12  ;;  %vm1518_vm12 = vcmask 1045504  }
 0xf5e   : > { %v1284_v57 = vsub.f32 1.0, %v1283_v54 }
 0xf60   : > { %v1285_v59 = vmul.f32 %v2948_v52, %v1284_v57 }
 0xf62   : > { %v1286_v62 = vadd.f32 %v2948_v52, %v1285_v59 }
 0xf64   : > { %v1290_v2 = vsel %vm1289_vm14, %v2948_v52, %v1286_v62 }
 0xf65   : > { %v1295_v12 = vsel %vm1292_vm15, %v1294_v0, %v1290_v2 }
 0xf66   : > { %v1301_v19 = vmul.f32 %v1299_v18, %v1295_v12 }
 0xfa2   : > { %v1344_v50 = vpop.permute.xlu2 %1343 }
 0xfa3   : > { %v1346_v53 = vmul.f32 %v1344_v50, %v1335_v51 }
 0xfa5   : > { %1348 = vrot.lane.b32.xlu1 %v1346_v53, %s3232_s18 }
 0xfb9   : > { %v1304_v10 = vpop.permute.xlu0 %1303 }
 0xfba   : > { %v1306_v15 = vmul.f32 %v1304_v10, %v1295_v12 }
 0xfbc   : > { %1308 = vrot.lane.b32.xlu2 %v1306_v15, %s3232_s18 }
0x1016   : > { %v1309_v22 = vpop.permute.xlu2 %1308 }
0x1017   : > { %v1349_v24 = vpop.permute.xlu1 %1348  ;;  %v3632_v26 = vadd.f32 %v1309_v22, %v1301_v19 }
0x1018   : > { %v3634_v27 = vadd.f32 %v1349_v24, %v1341_v20 }
0x1019   : > { %2949 = vtanh.f32 %v3632_v26 }
0x101a   : > { %2951 = vtanh.f32 %v3634_v27 }
0x101f   : > { %v2950_v28 = vpop.eup %2949 }
0x1020   : > { %v2952_v29 = vpop.eup %2951  ;;  %1314 = vrot.lane.b32.xlu1 %v2950_v28, %s3233_s27  ;;  %v1418_v28 = vrot.slane %v3632_v26, 6 }
0x1021   : > { %1354 = vrot.lane.b32.xlu0 %v2952_v29, %s3233_s27 }
0x1092   : > { %v1315_v58 = vpop.permute.xlu1 %1314 }
0x1093   : > { %v1355_v7 = vpop.permute.xlu0 %1354  ;;  %v1317_v30 = vmul.f32 %v1315_v58, %v1295_v12 }
0x1094   : > { %v3640_v31 = vmul.f32 %v1355_v7, %v1335_v51 }
0x1095   : > { %1359 = vrot.lane.b32.xlu2 %v1317_v30, %s3234_s22 }
0x1096   : > { %v1363_v32 = vrot.slane %v3640_v31, 6 }
0x1098   : > { %1364 = vrot.lane.b32.xlu0 %v1363_v32, %s3233_s27  ;;  %v1458_v32 = vrot.slane %v3634_v27, 2 }
0x10ef   : > { %v3645_v33 = vpop.permute.xlu2 %1359 }
0x110a   : > { %v1365_v34 = vpop.permute.xlu0 %1364 }
0x110b   : > { %v1367_v35 = vsel %vm646_vm9, %v3645_v33, %v1365_v34 }
0x110c   : > { %v1369_v36 = vrot.slane %v1367_v35, 4 }
0x110e   : > { %2745 = vmatmul.msk.f32.vlgmr.msra.gmra.mxu1 %vm505_vm0, %v1369_v36 }
0x118b   : > { %v1389_v37 = vpop.f32.mrf.mxu1 }
0x118c   : > { %v1393_v38 = vrot.slane %v1389_v37, 2  ;;  %v1396_v39 = vadd.f32 %v1389_v37, %v3469_v25 }
0x118e   : > { %v1395_v40 = vadd.f32 %v1393_v38, %v3466_v23  ;;  %2953 = vtanh.f32 %v1396_v39  ;;  %v2747_v46 = vmul.f32 -1.442695, %v1396_v39  ;;  %v1524_v39 = vld [vmem:[%s3418_s26 + $0x8] sm:$0xff] }
0x1190   : > { %2955 = vtanh.f32 %v1395_v40  ;;  %v2746_v43 = vmul.f32 -1.442695, %v1395_v40  ;;  %v1528_v40 = vld [vmem:[%s396_s12 + $0x8] sm:$0xff] }
0x1192   : > { %2957 = vpow2.f32 %v2746_v43 }
0x1194   : > { %v2954_v41 = vpop.eup %2953 }
0x1195   : > { %1462 = vrot.lane.b32.xlu1 %v2954_v41, %s3231_s15 }
0x1196   : > { %v2956_v42 = vpop.eup %2955 }
0x1197   : > { %1422 = vrot.lane.b32.xlu2 %v2956_v42, %s3231_s15 }
0x1198   : > { %v2958_v44 = vpop.eup %2957 }
0x1199   : > { %v1400_v45 = vadd.f32 1.0, %v2958_v44 }
0x119b   : > { %2959 = vrcp.f32 %v1400_v45  ;;  %v1412_v52 = vand.u32 2147483648, %v1400_v45  ;;  %vm1406_vm2 = vweird.f32 %v1400_v45  ;;  %v1410_v53 = vand.u32 2147483647, %v1400_v45 }
0x119c   : > { %2961 = vpow2.f32 %v2747_v46 }
0x119d   : > { %v1413_v57 = vor.u32 1.1754944e-38, %v1412_v52  ;;  %vm1411_vm4 = vcmp.eq.f32.partialorder %v1410_v53, 8.507059e+37 }
0x11a1   : > { %v2960_v47 = vpop.eup %2959 }
0x11a2   : > { %v1402_v48 = vmul.f32 %v2960_v47, %v1400_v45  ;;  %v2962_v49 = vpop.eup %2961  ;;  %vm1407_vm1 = vweird.f32 %v2960_v47 }
0x11a3   : > { %v1440_v50 = vadd.f32 1.0, %v2962_v49  ;;  %vm1408_vm3 = vmor %vm1406_vm2, %vm1407_vm1 }
0x11a4   : > { %v1403_v25 = vsub.f32 1.0, %v1402_v48 }
0x11a5   : > { %2963 = vrcp.f32 %v1440_v50  ;;  %v1452_v15 = vand.u32 2147483648, %v1440_v50  ;;  %vm1446_vm6 = vweird.f32 %v1440_v50  ;;  %v1450_v18 = vand.u32 2147483647, %v1440_v50 }
0x11a6   : > { %v1404_v23 = vmul.f32 %v2960_v47, %v1403_v25 }
0x11a7   : > { %v1453_v19 = vor.u32 1.1754944e-38, %v1452_v15  ;;  %vm1451_vm8 = vcmp.eq.f32.partialorder %v1450_v18, 8.507059e+37 }
0x11a8   : > { %v1405_v51 = vadd.f32 %v2960_v47, %v1404_v23 }
0x11aa   : > { %v1409_v54 = vsel %vm1408_vm3, %v2960_v47, %v1405_v51 }
0x11ab   : > { %v2964_v59 = vpop.eup %2963  ;;  %v1414_v1 = vsel %vm1411_vm4, %v1413_v57, %v1409_v54 }
0x11ac   : > { %v1442_v2 = vmul.f32 %v2964_v59, %v1440_v50  ;;  %vm1447_vm5 = vweird.f32 %v2964_v59  ;;  %v1420_v29 = vmul.f32 %v1418_v28, %v1414_v1 }
0x11ad   : > { %vm1448_vm7 = vmor %vm1446_vm6, %vm1447_vm5 }
0x11ae   : > { %v1443_v0 = vsub.f32 1.0, %v1442_v2 }
0x11b0   : > { %v1444_v10 = vmul.f32 %v2964_v59, %v1443_v0 }
0x11b2   : > { %v1445_v12 = vadd.f32 %v2964_v59, %v1444_v10 }
0x11b4   : > { %v1449_v61 = vsel %vm1448_vm7, %v2964_v59, %v1445_v12 }
0x11b5   : > { %v1454_v22 = vsel %vm1451_vm8, %v1453_v19, %v1449_v61 }
0x11b6   : > { %v1460_v34 = vmul.f32 %v1458_v32, %v1454_v22 }
0x11f1   : > { %v1423_v62 = vpop.permute.xlu2 %1422 }
0x11f2   : > { %v1425_v55 = vmul.f32 %v1423_v62, %v1414_v1 }
0x11f4   : > { %1427 = vrot.lane.b32.xlu1 %v1425_v55, %s3232_s18 }
0x1207   : > { %v1463_v20 = vpop.permute.xlu1 %1462 }
0x1208   : > { %v1465_v24 = vmul.f32 %v1463_v20, %v1454_v22 }
0x120a   : > { %1467 = vrot.lane.b32.xlu0 %v1465_v24, %s3232_s18 }
0x1266   : > { %v1428_v58 = vpop.permute.xlu1 %1427 }
0x1267   : > { %v1430_v7 = vadd.f32 %v1428_v58, %v1420_v29 }
0x1269   : > { %2965 = vtanh.f32 %v1430_v7 }
0x126f   : > { %v2966_v30 = vpop.eup %2965 }
0x1270   : > { %1433 = vrot.lane.b32.xlu0 %v2966_v30, %s3233_s27 }
0x1278   : > { %1486 = vrot.lane.b32.xlu0 %v3614_v21, %s3233_s27 }
0x127c   : > { %v1468_v35 = vpop.permute.xlu0 %1467 }
0x127d   : > { %v1470_v36 = vadd.f32 %v1468_v35, %v1460_v34 }
0x127f   : > { %2967 = vtanh.f32 %v1470_v36 }
0x1280   : > { %1498 = vrot.lane.b32.xlu0 %v3536_v5, %s3233_s27  ;;  %v1525_v5 = vld [vmem:[%s3418_s26 + $0x10] sm:$0xff] }
0x1285   : > { %v2968_v26 = vpop.eup %2967 }
0x1286   : > { %1473 = vrot.lane.b32.xlu2 %v2968_v26, %s3233_s27 }
0x1288   : > { %1510 = vrot.lane.b32.xlu0 %v3484_v4, %s3233_s27  ;;  %v1526_v4 = vld [vmem:[%s3418_s26 + $0x18] sm:$0xff] }
0x1289   : > { %1553 = vmatpush.msra.mxu2 %v1526_v4 }
0x128b   : > { %1554 = vmatpush.msra.mxu2 %v1525_v5 }
0x128d   : > { %1555 = vmatpush.msra.mxu2 %v1524_v39 }
0x128e   : > { %1482 = vrot.lane.b32.xlu2 %v3640_v31, %s3233_s27  ;;  %v1529_v31 = vld [vmem:[%s396_s12 + $0x10] sm:$0xff] }
0x1296   : > { %1494 = vrot.lane.b32.xlu2 %v3562_v63, %s3233_s27  ;;  %v1530_v63 = vld [vmem:[%s396_s12 + $0x18] sm:$0xff] }
0x1297   : > { %1576 = vmatpush.msra.mxu3 %v1530_v63  ;;  %1688 = vmatpush.msra.mxu0 %v1530_v63 }
0x1298   : > { %1809 = vmatpush.msrb.mxu1 %v1530_v63 }
0x1299   : > { %1577 = vmatpush.msra.mxu3 %v1529_v31  ;;  %1689 = vmatpush.msra.mxu0 %v1529_v31 }
0x129a   : > { %1810 = vmatpush.msrb.mxu1 %v1529_v31 }
0x129b   : > { %1578 = vmatpush.msra.mxu3 %v1528_v40  ;;  %1690 = vmatpush.msra.mxu0 %v1528_v40 }
0x129c   : > { %1811 = vmatpush.msrb.mxu1 %v1528_v40 }
0x12e0   : > { %v1474_v21 = vpop.permute.xlu2 %1473 }
0x12e1   : > { %v1476_v27 = vmul.f32 %v1474_v21, %v1454_v22 }
0x12e2   : > { %v1434_v37 = vpop.permute.xlu0 %1433 }
0x12e3   : > { %v1436_v38 = vmul.f32 %v1434_v37, %v1414_v1  ;;  %1478 = vrot.lane.b32.xlu1 %v1476_v27, %s3233_s27 }
0x12e5   : > { %1507 = vrot.lane.b32.xlu2 %v1436_v38, %s3234_s22 }
0x12ea   : > { %v1487_v41 = vpop.permute.xlu0 %1486 }
0x12eb   : > { %1490 = vrot.lane.b32.xlu1 %v3589_v14, %s3233_s27  ;;  %v1523_v14 = vld [vmem:[%s3418_s26] sm:$0xff]  ;;  %v1489_v48 = vsel %vm646_vm9, %v3541_v56, %v1487_v41 }
0x12ec   : > { %1556 = vmatpush.msra.mxu2 %v1523_v14 }
0x12ee   : > { %2288 = vmatpush.msrb.mxu2 %v1530_v63 }
0x12f0   : > { %2289 = vmatpush.msrb.mxu2 %v1529_v31 }
0x12f2   : > { %2290 = vmatpush.msrb.mxu2 %v1528_v40  ;;  %v1499_v47 = vpop.permute.xlu0 %1498 }
0x12f3   : > { %1502 = vrot.lane.b32.xlu1 %v3510_v3, %s3233_s27  ;;  %v1527_v3 = vld [vmem:[%s396_s12] sm:$0xff] }
0x12f4   : > { %1579 = vmatpush.msra.mxu3 %v1527_v3  ;;  %1691 = vmatpush.msra.mxu0 %v1527_v3 }
0x12f5   : > { %1580 = vmatmul.f32.vlgmr.msra.gmra.mxu3 %v3230_v11  ;;  %1812 = vmatpush.msrb.mxu1 %v1527_v3  ;;  %v1483_v11 = vpop.permute.xlu2 %1482 }
0x12f6   : > { %1930 = vmatpush.msrb.mxu3 %v1530_v63  ;;  %2049 = vmatpush.msrb.mxu0 %v1530_v63  ;;  %v1485_v44 = vsel %vm646_vm9, %v3515_v6, %v1483_v11  ;;  %v1501_v6 = vsel %vm646_vm9, %v3619_v60, %v1499_v47 }
0x12f7   : > { %2167 = vmatpush.msra.mxu1 %v1530_v63  ;;  %2291 = vmatpush.msrb.mxu2 %v1527_v3 }
0x12f8   : > { %1931 = vmatpush.msrb.mxu3 %v1529_v31  ;;  %2050 = vmatpush.msrb.mxu0 %v1529_v31 }
0x12f9   : > { %2168 = vmatpush.msra.mxu1 %v1529_v31 }
0x12fa   : > { %1932 = vmatpush.msrb.mxu3 %v1528_v40  ;;  %2051 = vmatpush.msrb.mxu0 %v1528_v40  ;;  %v1511_v53 = vpop.permute.xlu0 %1510 }
0x12fb   : > { %2169 = vmatpush.msra.mxu1 %v1528_v40 }
0x12fc   : > { %1933 = vmatpush.msrb.mxu3 %v1527_v3  ;;  %2052 = vmatpush.msrb.mxu0 %v1527_v3 }
0x12fd   : > { %2170 = vmatpush.msra.mxu1 %v1527_v3  ;;  %v1495_v46 = vpop.permute.xlu2 %1494 }
0x12fe   : > { %2409 = vmatpush.msra.mxu3 %v1530_v63  ;;  %v1497_v51 = vsel %vm646_vm9, %v3593_v17, %v1495_v46  ;;  %v2840_v17 = vld [vmem:[%s471_s25] ss:$0 sm:$0xff] }
0x12ff   : > { %v1520_v56 = vsel %vm1514_vm10, %v1497_v51, %v1501_v6 }
0x1300   : > { %2410 = vmatpush.msra.mxu3 %v1529_v31 }
0x1302   : > { %2411 = vmatpush.msra.mxu3 %v1528_v40 }
0x1304   : > { %2412 = vmatpush.msra.mxu3 %v1527_v3 }
0x133f   : > { %v1508_v50 = vpop.permute.xlu2 %1507 }
0x1340   : > { %v1513_v54 = vsel %vm646_vm9, %v1508_v50, %v1511_v53 }
0x1355   : > { %v1479_v42 = vpop.permute.xlu1 %1478 }
0x1356   : > { %v1481_v43 = vsel %vm646_vm9, %v3489_v8, %v1479_v42 }
0x1357   : > { %v1515_v45 = vsel %vm1514_vm10, %v1481_v43, %v1485_v44 }
0x1358   : > { %v1517_v8 = vsel %vm1516_vm11, %v1515_v45, %v1489_v48 }
0x135d   : > { %v1491_v25 = vpop.permute.xlu1 %1490 }
0x135e   : > { %v1493_v49 = vsel %vm646_vm9, %v3567_v9, %v1491_v25 }
0x135f   : > { %v1519_v23 = vsel %vm1518_vm12, %v1517_v8, %v1493_v49 }
0x1360   : > { %2748 = vmatmul.msk.f32.vlgmr.msra.gmra.mxu2 %vm505_vm0, %v1519_v23 }
0x1365   : > { %v1503_v52 = vpop.permute.xlu1 %1502 }
0x1366   : > { %v1505_v9 = vsel %vm646_vm9, %v3645_v33, %v1503_v52 }
0x1367   : > { %v1521_v57 = vsel %vm1516_vm11, %v1520_v56, %v1505_v9 }
0x1368   : > { %v1522_v59 = vsel %vm1518_vm12, %v1521_v57, %v1513_v54 }
0x1369   : > { %2749 = vmatmul.msk.f32.gmra.mxu2 %vm505_vm0, %v1522_v59 }
0x1378   : > { %v1581_v62 = vpop.f32.mrf.mxu3 }
0x1379   : > { %v1586_v2 = vrot.slane %v1581_v62, 2 }
0x13e3   : > { %v1558_v60 = vpop.f32.mrf.mxu2 }
0x13e4   : > { %v3714_v1 = vadd.f32 %v2840_v17, %v1558_v60 }
0x13e6   : > { %v1584_v55 = vadd.f32 %v1581_v62, %v3714_v1 }
0x13e8   : > { %2969 = vtanh.f32 %v1584_v55  ;;  %v2750_v18 = vmul.f32 -1.442695, %v1584_v55 }
0x13ec   : > { %v1561_v33 = vpop.f32.mrf.mxu2 }
0x13ed   : > { %v3717_v0 = vadd.f32 %v2840_v17, %v1561_v33 }
0x13ee   : > { %v2970_v10 = vpop.eup %2969 }
0x13ef   : > { %1611 = vrot.lane.b32.xlu2 %v2970_v10, %s3231_s15  ;;  %v1588_v12 = vadd.f32 %v1586_v2, %v3717_v0 }
0x13f1   : > { %2971 = vtanh.f32 %v1588_v12  ;;  %v2751_v28 = vmul.f32 -1.442695, %v1588_v12 }
0x13f2   : > { %2973 = vpow2.f32 %v2750_v18 }
0x13f7   : > { %v2972_v15 = vpop.eup %2971 }
0x13f8   : > { %1648 = vrot.lane.b32.xlu1 %v2972_v15, %s3231_s15  ;;  %v2974_v61 = vpop.eup %2973 }
0x13f9   : > { %v1592_v19 = vadd.f32 1.0, %v2974_v61 }
0x13fb   : > { %2975 = vrcp.f32 %v1592_v19  ;;  %v1604_v7 = vand.u32 2147483648, %v1592_v19  ;;  %vm1598_vm14 = vweird.f32 %v1592_v19  ;;  %v1602_v30 = vand.u32 2147483647, %v1592_v19 }
0x13fc   : > { %2977 = vpow2.f32 %v2751_v28 }
0x13fd   : > { %v1605_v35 = vor.u32 1.1754944e-38, %v1604_v7  ;;  %vm1603_vm1 = vcmp.eq.f32.partialorder %v1602_v30, 8.507059e+37 }
0x1401   : > { %v2976_v20 = vpop.eup %2975 }
0x1402   : > { %v1594_v22 = vmul.f32 %v2976_v20, %v1592_v19  ;;  %vm1599_vm13 = vweird.f32 %v2976_v20  ;;  %v2978_v34 = vpop.eup %2977 }
0x1403   : > { %vm1600_vm15 = vmor %vm1598_vm14, %vm1599_vm13  ;;  %v1629_v27 = vadd.f32 1.0, %v2978_v34 }
0x1404   : > { %v1595_v24 = vsub.f32 1.0, %v1594_v22 }
0x1405   : > { %2979 = vrcp.f32 %v1629_v27  ;;  %v1641_v31 = vand.u32 2147483648, %v1629_v27  ;;  %vm1635_vm3 = vweird.f32 %v1629_v27  ;;  %v1639_v39 = vand.u32 2147483647, %v1629_v27 }
0x1406   : > { %v1596_v29 = vmul.f32 %v2976_v20, %v1595_v24 }
0x1407   : > { %v1642_v40 = vor.u32 1.1754944e-38, %v1641_v31  ;;  %vm1640_vm5 = vcmp.eq.f32.partialorder %v1639_v39, 8.507059e+37 }
0x1408   : > { %v1597_v58 = vadd.f32 %v2976_v20, %v1596_v29 }
0x140a   : > { %v1601_v32 = vsel %vm1600_vm15, %v2976_v20, %v1597_v58 }
0x140b   : > { %v1606_v26 = vsel %vm1603_vm1, %v1605_v35, %v1601_v32  ;;  %v2980_v37 = vpop.eup %2979 }
0x140c   : > { %v1631_v38 = vmul.f32 %v2980_v37, %v1629_v27  ;;  %vm1636_vm2 = vweird.f32 %v2980_v37  ;;  %v1609_v42 = vmul.f32 0.0, %v1606_v26 }
0x140d   : > { %vm1637_vm4 = vmor %vm1635_vm3, %vm1636_vm2 }
0x140e   : > { %v1632_v4 = vsub.f32 1.0, %v1631_v38 }
0x1410   : > { %v1633_v5 = vmul.f32 %v2980_v37, %v1632_v4 }
0x1412   : > { %v1634_v63 = vadd.f32 %v2980_v37, %v1633_v5 }
0x1414   : > { %v1638_v14 = vsel %vm1637_vm4, %v2980_v37, %v1634_v63 }
0x1415   : > { %v1643_v11 = vsel %vm1640_vm5, %v1642_v40, %v1638_v14 }
0x1416   : > { %v1646_v46 = vmul.f32 0.0, %v1643_v11 }
0x1449   : > { %v1612_v36 = vpop.permute.xlu2 %1611 }
0x144a   : > { %v1614_v21 = vmul.f32 %v1612_v36, %v1606_v26 }
0x144c   : > { %1616 = vrot.lane.b32.xlu1 %v1614_v21, %s3232_s18 }
0x146a   : > { %v1649_v3 = vpop.permute.xlu1 %1648 }
0x146b   : > { %v1651_v41 = vmul.f32 %v1649_v3, %v1643_v11 }
0x146d   : > { %1653 = vrot.lane.b32.xlu0 %v1651_v41, %s3232_s18 }
0x14be   : > { %v1617_v43 = vpop.permute.xlu1 %1616 }
0x14bf   : > { %v3724_v44 = vadd.f32 %v1617_v43, %v1609_v42 }
0x14c1   : > { %2981 = vtanh.f32 %v3724_v44 }
0x14c7   : > { %v2982_v45 = vpop.eup %2981 }
0x14c8   : > { %1622 = vrot.lane.b32.xlu0 %v2982_v45, %s3233_s27 }
0x14df   : > { %v1654_v47 = vpop.permute.xlu0 %1653 }
0x14e0   : > { %v3728_v48 = vadd.f32 %v1654_v47, %v1646_v46 }
0x14e2   : > { %2983 = vtanh.f32 %v3728_v48  ;;  %v1764_v31 = vrot.slane %v3728_v48, 2 }
0x14e8   : > { %v2984_v25 = vpop.eup %2983 }
0x14e9   : > { %1659 = vrot.lane.b32.xlu2 %v2984_v25, %s3233_s27 }
0x153a   : > { %v1623_v49 = vpop.permute.xlu0 %1622 }
0x153b   : > { %v1625_v8 = vmul.f32 %v1623_v49, %v1606_v26 }
0x153d   : > { %1664 = vrot.lane.b32.xlu1 %v1625_v8, %s3234_s22 }
0x1543   : > { %v1660_v23 = vpop.permute.xlu2 %1659 }
0x1544   : > { %v3733_v6 = vmul.f32 %v1660_v23, %v1643_v11  ;;  %v1724_v11 = vrot.slane %v3724_v44, 6 }
0x1546   : > { %v1668_v50 = vrot.slane %v3733_v6, 6 }
0x1548   : > { %1669 = vrot.lane.b32.xlu2 %v1668_v50, %s3233_s27 }
0x15a2   : > { %v1670_v51 = vpop.permute.xlu2 %1669 }
0x15af   : > { %v3737_v52 = vpop.permute.xlu1 %1664 }
0x15b0   : > { %v1672_v56 = vsel %vm646_vm9, %v3737_v52, %v1670_v51 }
0x15b1   : > { %2752 = vmatmul.msk.f32.vlgmr.msra.gmra.mxu0 %vm505_vm0, %v1672_v56 }
0x162e   : > { %v1693_v53 = vpop.f32.mrf.mxu0 }
0x162f   : > { %v1697_v9 = vrot.slane %v1693_v53, 6  ;;  %v1700_v54 = vrot.slane %v1693_v53, 4 }
0x1631   : > { %v1699_v57 = vadd.f32 %v1697_v9, %v3714_v1  ;;  %v1702_v59 = vadd.f32 %v1700_v54, %v3717_v0 }
0x1633   : > { %2985 = vtanh.f32 %v1699_v57  ;;  %v2753_v62 = vmul.f32 -1.442695, %v1699_v57  ;;  %v2754_v55 = vmul.f32 -1.442695, %v1702_v59 }
0x1634   : > { %2987 = vtanh.f32 %v1702_v59 }
0x1635   : > { %2989 = vpow2.f32 %v2753_v62 }
0x1636   : > { %2991 = vpow2.f32 %v2754_v55 }
0x1639   : > { %v2986_v17 = vpop.eup %2985 }
0x163a   : > { %v2988_v60 = vpop.eup %2987  ;;  %1728 = vrot.lane.b32.xlu1 %v2986_v17, %s3231_s15 }
0x163b   : > { %1768 = vrot.lane.b32.xlu0 %v2988_v60, %s3231_s15  ;;  %v2990_v33 = vpop.eup %2989 }
0x163c   : > { %v2992_v2 = vpop.eup %2991  ;;  %v1706_v10 = vadd.f32 1.0, %v2990_v33 }
0x163d   : > { %v1746_v12 = vadd.f32 1.0, %v2992_v2 }
0x163e   : > { %2993 = vrcp.f32 %v1706_v10  ;;  %v1718_v7 = vand.u32 2147483648, %v1706_v10  ;;  %vm1712_vm8 = vweird.f32 %v1706_v10  ;;  %v1716_v32 = vand.u32 2147483647, %v1706_v10 }
0x163f   : > { %2995 = vrcp.f32 %v1746_v12  ;;  %v1758_v30 = vand.u32 2147483648, %v1746_v12  ;;  %vm1752_vm13 = vweird.f32 %v1746_v12  ;;  %v1756_v34 = vand.u32 2147483647, %v1746_v12 }
0x1640   : > { %v1719_v26 = vor.u32 1.1754944e-38, %v1718_v7  ;;  %vm1717_vm1 = vcmp.eq.f32.partialorder %v1716_v32, 8.507059e+37 }
0x1641   : > { %v1759_v21 = vor.u32 1.1754944e-38, %v1758_v30  ;;  %vm1757_vm2 = vcmp.eq.f32.partialorder %v1756_v34, 8.507059e+37 }
0x1644   : > { %v2994_v15 = vpop.eup %2993 }
0x1645   : > { %v2996_v18 = vpop.eup %2995  ;;  %v1708_v61 = vmul.f32 %v2994_v15, %v1706_v10  ;;  %vm1713_vm6 = vweird.f32 %v2994_v15 }
0x1646   : > { %v1748_v19 = vmul.f32 %v2996_v18, %v1746_v12  ;;  %vm1753_vm7 = vweird.f32 %v2996_v18  ;;  %vm1714_vm14 = vmor %vm1712_vm8, %vm1713_vm6 }
0x1647   : > { %v1709_v20 = vsub.f32 1.0, %v1708_v61  ;;  %vm1754_vm15 = vmor %vm1752_vm13, %vm1753_vm7 }
0x1648   : > { %v1749_v22 = vsub.f32 1.0, %v1748_v19 }
0x1649   : > { %v1710_v24 = vmul.f32 %v2994_v15, %v1709_v20 }
0x164a   : > { %v1750_v28 = vmul.f32 %v2996_v18, %v1749_v22 }
0x164b   : > { %v1711_v29 = vadd.f32 %v2994_v15, %v1710_v24 }
0x164c   : > { %v1751_v58 = vadd.f32 %v2996_v18, %v1750_v28 }
0x164d   : > { %v1715_v35 = vsel %vm1714_vm14, %v2994_v15, %v1711_v29 }
0x164e   : > { %v1755_v36 = vsel %vm1754_vm15, %v2996_v18, %v1751_v58  ;;  %v1720_v37 = vsel %vm1717_vm1, %v1719_v26, %v1715_v35 }
0x164f   : > { %v1760_v4 = vsel %vm1757_vm2, %v1759_v21, %v1755_v36  ;;  %v1726_v41 = vmul.f32 %v1724_v11, %v1720_v37 }
0x1650   : > { %v1766_v39 = vmul.f32 %v1764_v31, %v1760_v4 }
0x16ac   : > { %v1729_v27 = vpop.permute.xlu1 %1728 }
0x16ad   : > { %v1769_v38 = vpop.permute.xlu0 %1768  ;;  %v1731_v5 = vmul.f32 %v1729_v27, %v1720_v37 }
0x16ae   : > { %v1771_v63 = vmul.f32 %v1769_v38, %v1760_v4 }
0x16af   : > { %1733 = vrot.lane.b32.xlu0 %v1731_v5, %s3232_s18 }
0x16b0   : > { %1773 = vrot.lane.b32.xlu2 %v1771_v63, %s3232_s18 }
0x170a   : > { %v1774_v14 = vpop.permute.xlu2 %1773 }
0x170b   : > { %v3749_v40 = vadd.f32 %v1774_v14, %v1766_v39 }
0x170d   : > { %2997 = vtanh.f32 %v3749_v40  ;;  %v1885_v63 = vrot.slane %v3749_v40, 2 }
0x1713   : > { %v2998_v3 = vpop.eup %2997 }
0x1714   : > { %1779 = vrot.lane.b32.xlu1 %v2998_v3, %s3233_s27 }
0x1721   : > { %v1734_v42 = vpop.permute.xlu0 %1733 }
0x1722   : > { %v3754_v43 = vadd.f32 %v1734_v42, %v1726_v41 }
0x1724   : > { %2999 = vtanh.f32 %v3754_v43  ;;  %v1845_v5 = vrot.slane %v3754_v43, 6 }
0x172a   : > { %v3000_v45 = vpop.eup %2999 }
0x172b   : > { %1739 = vrot.lane.b32.xlu2 %v3000_v45, %s3233_s27 }
0x1785   : > { %v1740_v46 = vpop.permute.xlu2 %1739 }
0x1786   : > { %v1780_v47 = vpop.permute.xlu1 %1779  ;;  %v1742_v48 = vmul.f32 %v1740_v46, %v1720_v37 }
0x1787   : > { %v3758_v25 = vmul.f32 %v1780_v47, %v1760_v4 }
0x1788   : > { %1784 = vrot.lane.b32.xlu0 %v1742_v48, %s3234_s22 }
0x1789   : > { %v1788_v49 = vrot.slane %v3758_v25, 2 }
0x178b   : > { %1789 = vrot.lane.b32.xlu1 %v1788_v49, %s3233_s27 }
0x17fa   : > { %v3763_v44 = vpop.permute.xlu0 %1784 }
0x17fd   : > { %v1790_v8 = vpop.permute.xlu1 %1789 }
0x17fe   : > { %v1792_v23 = vsel %vm646_vm9, %v3763_v44, %v1790_v8 }
0x17ff   : > { %v1794_v50 = vrot.slane %v1792_v23, 2 }
0x1801   : > { %2755 = vmatmul.msk.f32.vlgmr.msrb.gmra.mxu1 %vm505_vm0, %v1794_v50 }
0x187e   : > { %v1814_v51 = vpop.f32.mrf.mxu1 }
0x187f   : > { %v1818_v56 = vrot.slane %v1814_v51, 4  ;;  %v1821_v53 = vrot.slane %v1814_v51, 6 }
0x1881   : > { %v1820_v9 = vadd.f32 %v1818_v56, %v3714_v1  ;;  %v1823_v54 = vadd.f32 %v1821_v53, %v3717_v0 }
0x1883   : > { %3001 = vtanh.f32 %v1820_v9  ;;  %v2757_v17 = vmul.f32 -1.442695, %v1823_v54  ;;  %v2756_v33 = vmul.f32 -1.442695, %v1820_v9 }
0x1884   : > { %3003 = vtanh.f32 %v1823_v54 }
0x1885   : > { %3005 = vpow2.f32 %v2757_v17 }
0x1889   : > { %v3002_v57 = vpop.eup %3001 }
0x188a   : > { %v3004_v59 = vpop.eup %3003  ;;  %1849 = vrot.lane.b32.xlu0 %v3002_v57, %s3231_s15 }
0x188b   : > { %1889 = vrot.lane.b32.xlu2 %v3004_v59, %s3231_s15  ;;  %v3006_v60 = vpop.eup %3005 }
0x188c   : > { %v1867_v62 = vadd.f32 1.0, %v3006_v60 }
0x188e   : > { %3007 = vrcp.f32 %v1867_v62  ;;  %v1879_v19 = vand.u32 2147483648, %v1867_v62  ;;  %vm1873_vm4 = vweird.f32 %v1867_v62  ;;  %v1877_v20 = vand.u32 2147483647, %v1867_v62 }
0x188f   : > { %3009 = vpow2.f32 %v2756_v33 }
0x1890   : > { %v1880_v24 = vor.u32 1.1754944e-38, %v1879_v19  ;;  %vm1878_vm6 = vcmp.eq.f32.partialorder %v1877_v20, 8.507059e+37 }
0x1894   : > { %v3008_v55 = vpop.eup %3007 }
0x1895   : > { %v1869_v2 = vmul.f32 %v3008_v55, %v1867_v62  ;;  %v3010_v12 = vpop.eup %3009  ;;  %vm1874_vm3 = vweird.f32 %v3008_v55 }
0x1896   : > { %v1827_v18 = vadd.f32 1.0, %v3010_v12  ;;  %vm1875_vm5 = vmor %vm1873_vm4, %vm1874_vm3 }
0x1897   : > { %v1870_v10 = vsub.f32 1.0, %v1869_v2 }
0x1898   : > { %3011 = vrcp.f32 %v1827_v18  ;;  %v1839_v36 = vand.u32 2147483648, %v1827_v18  ;;  %vm1833_vm8 = vweird.f32 %v1827_v18  ;;  %v1837_v26 = vand.u32 2147483647, %v1827_v18 }
0x1899   : > { %v1871_v15 = vmul.f32 %v3008_v55, %v1870_v10 }
0x189a   : > { %v1840_v27 = vor.u32 1.1754944e-38, %v1839_v36  ;;  %vm1838_vm14 = vcmp.eq.f32.partialorder %v1837_v26, 8.507059e+37 }
0x189b   : > { %v1872_v61 = vadd.f32 %v3008_v55, %v1871_v15 }
0x189d   : > { %v1876_v22 = vsel %vm1875_vm5, %v3008_v55, %v1872_v61 }
0x189e   : > { %v1881_v29 = vsel %vm1878_vm6, %v1880_v24, %v1876_v22  ;;  %v3012_v58 = vpop.eup %3011 }
0x189f   : > { %v1829_v30 = vmul.f32 %v3012_v58, %v1827_v18  ;;  %vm1834_vm7 = vweird.f32 %v3012_v58  ;;  %v1887_v39 = vmul.f32 %v1885_v63, %v1881_v29 }
0x18a0   : > { %vm1835_vm13 = vmor %vm1833_vm8, %vm1834_vm7 }
0x18a1   : > { %v1830_v32 = vsub.f32 1.0, %v1829_v30 }
0x18a3   : > { %v1831_v34 = vmul.f32 %v3012_v58, %v1830_v32 }
0x18a5   : > { %v1832_v35 = vadd.f32 %v3012_v58, %v1831_v34 }
0x18a7   : > { %v1836_v21 = vsel %vm1835_vm13, %v3012_v58, %v1832_v35 }
0x18a8   : > { %v1841_v38 = vsel %vm1838_vm14, %v1840_v27, %v1836_v21 }
0x18a9   : > { %v1847_v31 = vmul.f32 %v1845_v5, %v1841_v38 }
0x18e5   : > { %v1890_v28 = vpop.permute.xlu2 %1889 }
0x18e6   : > { %v1892_v7 = vmul.f32 %v1890_v28, %v1881_v29 }
0x18e8   : > { %1894 = vrot.lane.b32.xlu1 %v1892_v7, %s3232_s18 }
0x18fc   : > { %v1850_v37 = vpop.permute.xlu0 %1849 }
0x18fd   : > { %v1852_v4 = vmul.f32 %v1850_v37, %v1841_v38 }
0x18ff   : > { %1854 = vrot.lane.b32.xlu2 %v1852_v4, %s3232_s18 }
0x1959   : > { %v1855_v14 = vpop.permute.xlu2 %1854 }
0x195a   : > { %v1895_v3 = vpop.permute.xlu1 %1894  ;;  %v3776_v11 = vadd.f32 %v1855_v14, %v1847_v31 }
0x195b   : > { %v3778_v41 = vadd.f32 %v1895_v3, %v1887_v39 }
0x195c   : > { %3013 = vtanh.f32 %v3776_v11  ;;  %v1964_v4 = vrot.slane %v3776_v11, 6 }
0x195d   : > { %3015 = vtanh.f32 %v3778_v41  ;;  %v2004_v14 = vrot.slane %v3778_v41, 2 }
0x1962   : > { %v3014_v42 = vpop.eup %3013 }
0x1963   : > { %v3016_v45 = vpop.eup %3015  ;;  %1860 = vrot.lane.b32.xlu1 %v3014_v42, %s3233_s27 }
0x1964   : > { %1900 = vrot.lane.b32.xlu0 %v3016_v45, %s3233_s27 }
0x19d5   : > { %v1861_v43 = vpop.permute.xlu1 %1860 }
0x19d6   : > { %v1901_v40 = vpop.permute.xlu0 %1900  ;;  %v1863_v46 = vmul.f32 %v1861_v43, %v1841_v38 }
0x19d7   : > { %v3784_v47 = vmul.f32 %v1901_v40, %v1881_v29 }
0x19d8   : > { %1905 = vrot.lane.b32.xlu2 %v1863_v46, %s3234_s22 }
0x19d9   : > { %v1909_v48 = vrot.slane %v3784_v47, 6 }
0x19db   : > { %1910 = vrot.lane.b32.xlu0 %v1909_v48, %s3233_s27 }
0x1a32   : > { %v3789_v49 = vpop.permute.xlu2 %1905 }
0x1a4d   : > { %v1911_v8 = vpop.permute.xlu0 %1910 }
0x1a4e   : > { %v1913_v23 = vsel %vm646_vm9, %v3789_v49, %v1911_v8 }
0x1a4f   : > { %v1915_v50 = vrot.slane %v1913_v23, 4 }
0x1a51   : > { %2758 = vmatmul.msk.f32.vlgmr.msrb.gmra.mxu3 %vm505_vm0, %v1915_v50 }
0x1ad4   : > { %v1935_v51 = vpop.f32.mrf.mxu3 }
0x1ad5   : > { %v1939_v56 = vrot.slane %v1935_v51, 2  ;;  %v1942_v53 = vadd.f32 %v1935_v51, %v3717_v0 }
0x1ad7   : > { %v1941_v9 = vadd.f32 %v1939_v56, %v3714_v1  ;;  %3017 = vtanh.f32 %v1942_v53  ;;  %v2760_v62 = vmul.f32 -1.442695, %v1942_v53 }
0x1ad9   : > { %3019 = vtanh.f32 %v1941_v9  ;;  %v2759_v59 = vmul.f32 -1.442695, %v1941_v9 }
0x1adb   : > { %3021 = vpow2.f32 %v2759_v59 }
0x1add   : > { %v3018_v54 = vpop.eup %3017 }
0x1ade   : > { %2008 = vrot.lane.b32.xlu1 %v3018_v54, %s3231_s15 }
0x1adf   : > { %v3020_v57 = vpop.eup %3019 }
0x1ae0   : > { %1968 = vrot.lane.b32.xlu2 %v3020_v57, %s3231_s15 }
0x1ae1   : > { %v3022_v17 = vpop.eup %3021 }
0x1ae2   : > { %v1946_v60 = vadd.f32 1.0, %v3022_v17 }
0x1ae4   : > { %3023 = vrcp.f32 %v1946_v60  ;;  %v1958_v61 = vand.u32 2147483648, %v1946_v60  ;;  %vm1952_vm1 = vweird.f32 %v1946_v60  ;;  %v1956_v19 = vand.u32 2147483647, %v1946_v60 }
0x1ae5   : > { %3025 = vpow2.f32 %v2760_v62 }
0x1ae6   : > { %v1959_v22 = vor.u32 1.1754944e-38, %v1958_v61  ;;  %vm1957_vm3 = vcmp.eq.f32.partialorder %v1956_v19, 8.507059e+37 }
0x1aea   : > { %v3024_v55 = vpop.eup %3023 }
0x1aeb   : > { %v1948_v33 = vmul.f32 %v3024_v55, %v1946_v60  ;;  %v3026_v10 = vpop.eup %3025  ;;  %vm1953_vm15 = vweird.f32 %v3024_v55 }
0x1aec   : > { %v1986_v15 = vadd.f32 1.0, %v3026_v10  ;;  %vm1954_vm2 = vmor %vm1952_vm1, %vm1953_vm15 }
0x1aed   : > { %v1949_v2 = vsub.f32 1.0, %v1948_v33 }
0x1aee   : > { %3027 = vrcp.f32 %v1986_v15  ;;  %v1998_v35 = vand.u32 2147483648, %v1986_v15  ;;  %vm1992_vm5 = vweird.f32 %v1986_v15  ;;  %v1996_v36 = vand.u32 2147483647, %v1986_v15 }
0x1aef   : > { %v1950_v12 = vmul.f32 %v3024_v55, %v1949_v2 }
0x1af0   : > { %v1999_v21 = vor.u32 1.1754944e-38, %v1998_v35  ;;  %vm1997_vm7 = vcmp.eq.f32.partialorder %v1996_v36, 8.507059e+37 }
0x1af1   : > { %v1951_v18 = vadd.f32 %v3024_v55, %v1950_v12 }
0x1af3   : > { %v1955_v20 = vsel %vm1954_vm2, %v3024_v55, %v1951_v18 }
0x1af4   : > { %v3028_v24 = vpop.eup %3027  ;;  %v1960_v29 = vsel %vm1957_vm3, %v1959_v22, %v1955_v20 }
0x1af5   : > { %v1988_v7 = vmul.f32 %v3028_v24, %v1986_v15  ;;  %vm1993_vm4 = vweird.f32 %v3028_v24  ;;  %v1966_v5 = vmul.f32 %v1964_v4, %v1960_v29 }
0x1af6   : > { %vm1994_vm6 = vmor %vm1992_vm5, %vm1993_vm4 }
0x1af7   : > { %v1989_v30 = vsub.f32 1.0, %v1988_v7 }
0x1af9   : > { %v1990_v32 = vmul.f32 %v3028_v24, %v1989_v30 }
0x1afb   : > { %v1991_v34 = vadd.f32 %v3028_v24, %v1990_v32 }
0x1afd   : > { %v1995_v26 = vsel %vm1994_vm6, %v3028_v24, %v1991_v34 }
0x1afe   : > { %v2000_v37 = vsel %vm1997_vm7, %v1999_v21, %v1995_v26 }
0x1aff   : > { %v2006_v3 = vmul.f32 %v2004_v14, %v2000_v37 }
0x1b3a   : > { %v1969_v28 = vpop.permute.xlu2 %1968 }
0x1b3b   : > { %v1971_v58 = vmul.f32 %v1969_v28, %v1960_v29 }
0x1b3d   : > { %1973 = vrot.lane.b32.xlu1 %v1971_v58, %s3232_s18 }
0x1b50   : > { %v2009_v27 = vpop.permute.xlu1 %2008 }
0x1b51   : > { %v2011_v38 = vmul.f32 %v2009_v27, %v2000_v37 }
0x1b53   : > { %2013 = vrot.lane.b32.xlu0 %v2011_v38, %s3232_s18 }
0x1baf   : > { %v1974_v63 = vpop.permute.xlu1 %1973 }
0x1bb0   : > { %v3801_v31 = vadd.f32 %v1974_v63, %v1966_v5 }
0x1bb2   : > { %3029 = vtanh.f32 %v3801_v31 }
0x1bb8   : > { %v3030_v39 = vpop.eup %3029 }
0x1bb9   : > { %1979 = vrot.lane.b32.xlu0 %v3030_v39, %s3233_s27 }
0x1bc5   : > { %v2014_v42 = vpop.permute.xlu0 %2013 }
0x1bc6   : > { %v3806_v45 = vadd.f32 %v2014_v42, %v2006_v3  ;;  %v2083_v42 = vrot.slane %v3801_v31, 6 }
0x1bc8   : > { %3031 = vtanh.f32 %v3806_v45  ;;  %v2123_v5 = vrot.slane %v3806_v45, 2 }
0x1bce   : > { %v3032_v43 = vpop.eup %3031 }
0x1bcf   : > { %2019 = vrot.lane.b32.xlu2 %v3032_v43, %s3233_s27 }
0x1c29   : > { %v2020_v11 = vpop.permute.xlu2 %2019 }
0x1c2a   : > { %v3810_v40 = vmul.f32 %v2020_v11, %v2000_v37 }
0x1c2b   : > { %v1980_v46 = vpop.permute.xlu0 %1979 }
0x1c2c   : > { %v2028_v48 = vrot.slane %v3810_v40, 2  ;;  %v1982_v8 = vmul.f32 %v1980_v46, %v1960_v29 }
0x1c2e   : > { %2029 = vrot.lane.b32.xlu2 %v2028_v48, %s3233_s27  ;;  %2024 = vrot.lane.b32.xlu1 %v1982_v8, %s3234_s22 }
0x1c88   : > { %v2030_v41 = vpop.permute.xlu2 %2029 }
0x1ca0   : > { %v3815_v23 = vpop.permute.xlu1 %2024 }
0x1ca1   : > { %v2032_v50 = vsel %vm646_vm9, %v3815_v23, %v2030_v41 }
0x1ca2   : > { %v2034_v51 = vrot.slane %v2032_v50, 6 }
0x1ca4   : > { %2761 = vmatmul.msk.f32.vlgmr.msrb.gmra.mxu0 %vm505_vm0, %v2034_v51 }
0x1d21   : > { %v2054_v56 = vpop.f32.mrf.mxu0 }
0x1d22   : > { %v2057_v53 = vadd.f32 %v2054_v56, %v3717_v0  ;;  %v2059_v9 = vrot.slane %v2054_v56, 2 }
0x1d24   : > { %v2061_v54 = vadd.f32 %v2059_v9, %v3714_v1  ;;  %3033 = vtanh.f32 %v2057_v53  ;;  %v2762_v17 = vmul.f32 -1.442695, %v2057_v53 }
0x1d26   : > { %3035 = vtanh.f32 %v2061_v54  ;;  %v2763_v60 = vmul.f32 -1.442695, %v2061_v54 }
0x1d27   : > { %3037 = vpow2.f32 %v2762_v17 }
0x1d28   : > { %3039 = vpow2.f32 %v2763_v60 }
0x1d2a   : > { %v3034_v57 = vpop.eup %3033 }
0x1d2b   : > { %2087 = vrot.lane.b32.xlu1 %v3034_v57, %s3231_s15 }
0x1d2c   : > { %v3036_v59 = vpop.eup %3035 }
0x1d2d   : > { %2127 = vrot.lane.b32.xlu0 %v3036_v59, %s3231_s15  ;;  %v3038_v62 = vpop.eup %3037 }
0x1d2e   : > { %v3040_v55 = vpop.eup %3039  ;;  %v2065_v33 = vadd.f32 1.0, %v3038_v62 }
0x1d2f   : > { %v2105_v2 = vadd.f32 1.0, %v3040_v55 }
0x1d30   : > { %3041 = vrcp.f32 %v2065_v33  ;;  %v2077_v28 = vand.u32 2147483648, %v2065_v33  ;;  %vm2071_vm13 = vweird.f32 %v2065_v33  ;;  %v2075_v29 = vand.u32 2147483647, %v2065_v33 }
0x1d31   : > { %3043 = vrcp.f32 %v2105_v2  ;;  %v2117_v30 = vand.u32 2147483648, %v2105_v2  ;;  %vm2111_vm1 = vweird.f32 %v2105_v2  ;;  %v2115_v34 = vand.u32 2147483647, %v2105_v2 }
0x1d32   : > { %v2078_v32 = vor.u32 1.1754944e-38, %v2077_v28  ;;  %vm2076_vm2 = vcmp.eq.f32.partialorder %v2075_v29, 8.507059e+37 }
0x1d33   : > { %v2118_v27 = vor.u32 1.1754944e-38, %v2117_v30  ;;  %vm2116_vm4 = vcmp.eq.f32.partialorder %v2115_v34, 8.507059e+37 }
0x1d36   : > { %v3042_v10 = vpop.eup %3041 }
0x1d37   : > { %v3044_v12 = vpop.eup %3043  ;;  %v2067_v15 = vmul.f32 %v3042_v10, %v2065_v33  ;;  %vm2072_vm8 = vweird.f32 %v3042_v10 }
0x1d38   : > { %v2107_v18 = vmul.f32 %v3044_v12, %v2105_v2  ;;  %vm2073_vm14 = vmor %vm2071_vm13, %vm2072_vm8  ;;  %vm2112_vm15 = vweird.f32 %v3044_v12 }
0x1d39   : > { %v2068_v61 = vsub.f32 1.0, %v2067_v15  ;;  %vm2113_vm3 = vmor %vm2111_vm1, %vm2112_vm15 }
0x1d3a   : > { %v2108_v19 = vsub.f32 1.0, %v2107_v18 }
0x1d3b   : > { %v2069_v20 = vmul.f32 %v3042_v10, %v2068_v61 }
0x1d3c   : > { %v2109_v22 = vmul.f32 %v3044_v12, %v2108_v19 }
0x1d3d   : > { %v2070_v24 = vadd.f32 %v3042_v10, %v2069_v20 }
0x1d3e   : > { %v2110_v58 = vadd.f32 %v3044_v12, %v2109_v22 }
0x1d3f   : > { %v2074_v7 = vsel %vm2073_vm14, %v3042_v10, %v2070_v24 }
0x1d40   : > { %v2079_v36 = vsel %vm2076_vm2, %v2078_v32, %v2074_v7  ;;  %v2114_v26 = vsel %vm2113_vm3, %v3044_v12, %v2110_v58 }
0x1d41   : > { %v2119_v38 = vsel %vm2116_vm4, %v2118_v27, %v2114_v26  ;;  %v2085_v43 = vmul.f32 %v2083_v42, %v2079_v36 }
0x1d42   : > { %v2125_v63 = vmul.f32 %v2123_v5, %v2119_v38 }
0x1d9d   : > { %v2088_v35 = vpop.permute.xlu1 %2087 }
0x1d9e   : > { %v2090_v21 = vmul.f32 %v2088_v35, %v2079_v36 }
0x1d9f   : > { %v2128_v37 = vpop.permute.xlu0 %2127 }
0x1da0   : > { %2092 = vrot.lane.b32.xlu0 %v2090_v21, %s3232_s18  ;;  %v2130_v4 = vmul.f32 %v2128_v37, %v2119_v38 }
0x1da2   : > { %2132 = vrot.lane.b32.xlu2 %v2130_v4, %s3232_s18 }
0x1dfc   : > { %v2133_v39 = vpop.permute.xlu2 %2132 }
0x1dfd   : > { %v3827_v14 = vadd.f32 %v2133_v39, %v2125_v63 }
0x1dff   : > { %3045 = vtanh.f32 %v3827_v14  ;;  %v2243_v42 = vrot.slane %v3827_v14, 2 }
0x1e05   : > { %v3046_v3 = vpop.eup %3045 }
0x1e06   : > { %2138 = vrot.lane.b32.xlu1 %v3046_v3, %s3233_s27 }
0x1e12   : > { %v2093_v11 = vpop.permute.xlu0 %2092 }
0x1e13   : > { %v3832_v46 = vadd.f32 %v2093_v11, %v2085_v43 }
0x1e15   : > { %3047 = vtanh.f32 %v3832_v46  ;;  %v2203_v3 = vrot.slane %v3832_v46, 6 }
0x1e1b   : > { %v3048_v48 = vpop.eup %3047 }
0x1e1c   : > { %2098 = vrot.lane.b32.xlu2 %v3048_v48, %s3233_s27 }
0x1e76   : > { %v2099_v45 = vpop.permute.xlu2 %2098 }
0x1e77   : > { %v2101_v8 = vmul.f32 %v2099_v45, %v2079_v36 }
0x1e78   : > { %v2139_v41 = vpop.permute.xlu1 %2138 }
0x1e79   : > { %2143 = vrot.lane.b32.xlu0 %v2101_v8, %s3234_s22  ;;  %v3837_v50 = vmul.f32 %v2139_v41, %v2119_v38 }
0x1e7b   : > { %v2147_v51 = vrot.slane %v3837_v50, 6 }
0x1e7d   : > { %2148 = vrot.lane.b32.xlu1 %v2147_v51, %s3233_s27 }
0x1eeb   : > { %v3841_v31 = vpop.permute.xlu0 %2143 }
0x1eef   : > { %v2149_v56 = vpop.permute.xlu1 %2148 }
0x1ef0   : > { %v2151_v53 = vsel %vm646_vm9, %v3841_v31, %v2149_v56 }
0x1ef1   : > { %2764 = vmatmul.msk.f32.vlgmr.msra.gmra.mxu1 %vm505_vm0, %v2151_v53 }
0x1f6e   : > { %v2172_v9 = vpop.f32.mrf.mxu1 }
0x1f6f   : > { %v2176_v54 = vrot.slane %v2172_v9, 6  ;;  %v2179_v57 = vrot.slane %v2172_v9, 4 }
0x1f71   : > { %v2178_v59 = vadd.f32 %v2176_v54, %v3717_v0  ;;  %v2181_v17 = vadd.f32 %v2179_v57, %v3714_v1 }
0x1f73   : > { %3049 = vtanh.f32 %v2178_v59  ;;  %v2766_v55 = vmul.f32 -1.442695, %v2181_v17  ;;  %v2765_v12 = vmul.f32 -1.442695, %v2178_v59 }
0x1f74   : > { %3051 = vtanh.f32 %v2181_v17 }
0x1f75   : > { %3053 = vpow2.f32 %v2766_v55 }
0x1f79   : > { %v3050_v60 = vpop.eup %3049 }
0x1f7a   : > { %v3052_v62 = vpop.eup %3051  ;;  %2207 = vrot.lane.b32.xlu0 %v3050_v60, %s3231_s15 }
0x1f7b   : > { %2247 = vrot.lane.b32.xlu2 %v3052_v62, %s3231_s15  ;;  %v3054_v33 = vpop.eup %3053 }
0x1f7c   : > { %v2225_v2 = vadd.f32 1.0, %v3054_v33 }
0x1f7e   : > { %3055 = vrcp.f32 %v2225_v2  ;;  %v2237_v24 = vand.u32 2147483648, %v2225_v2  ;;  %vm2231_vm6 = vweird.f32 %v2225_v2  ;;  %v2235_v28 = vand.u32 2147483647, %v2225_v2 }
0x1f7f   : > { %3057 = vpow2.f32 %v2765_v12 }
0x1f80   : > { %v2238_v58 = vor.u32 1.1754944e-38, %v2237_v24  ;;  %vm2236_vm8 = vcmp.eq.f32.partialorder %v2235_v28, 8.507059e+37 }
0x1f84   : > { %v3056_v10 = vpop.eup %3055 }
0x1f85   : > { %v2227_v15 = vmul.f32 %v3056_v10, %v2225_v2  ;;  %v3058_v61 = vpop.eup %3057  ;;  %vm2232_vm5 = vweird.f32 %v3056_v10 }
0x1f86   : > { %v2185_v20 = vadd.f32 1.0, %v3058_v61  ;;  %vm2233_vm7 = vmor %vm2231_vm6, %vm2232_vm5 }
0x1f87   : > { %v2228_v18 = vsub.f32 1.0, %v2227_v15 }
0x1f88   : > { %3059 = vrcp.f32 %v2185_v20  ;;  %v2197_v27 = vand.u32 2147483648, %v2185_v20  ;;  %vm2191_vm14 = vweird.f32 %v2185_v20  ;;  %v2195_v37 = vand.u32 2147483647, %v2185_v20 }
0x1f89   : > { %v2229_v19 = vmul.f32 %v3056_v10, %v2228_v18 }
0x1f8a   : > { %v2198_v4 = vor.u32 1.1754944e-38, %v2197_v27  ;;  %vm2196_vm1 = vcmp.eq.f32.partialorder %v2195_v37, 8.507059e+37 }
0x1f8b   : > { %v2230_v22 = vadd.f32 %v3056_v10, %v2229_v19 }
0x1f8d   : > { %v2234_v29 = vsel %vm2233_vm7, %v3056_v10, %v2230_v22 }
0x1f8e   : > { %v2239_v30 = vsel %vm2236_vm8, %v2238_v58, %v2234_v29  ;;  %v3060_v32 = vpop.eup %3059 }
0x1f8f   : > { %v2187_v35 = vmul.f32 %v3060_v32, %v2185_v20  ;;  %vm2192_vm13 = vweird.f32 %v3060_v32  ;;  %v2245_v11 = vmul.f32 %v2243_v42, %v2239_v30 }
0x1f90   : > { %vm2193_vm15 = vmor %vm2191_vm14, %vm2192_vm13 }
0x1f91   : > { %v2188_v36 = vsub.f32 1.0, %v2187_v35 }
0x1f93   : > { %v2189_v26 = vmul.f32 %v3060_v32, %v2188_v36 }
0x1f95   : > { %v2190_v21 = vadd.f32 %v3060_v32, %v2189_v26 }
0x1f97   : > { %v2194_v38 = vsel %vm2193_vm15, %v3060_v32, %v2190_v21 }
0x1f98   : > { %v2199_v63 = vsel %vm2196_vm1, %v2198_v4, %v2194_v38 }
0x1f99   : > { %v2205_v43 = vmul.f32 %v2203_v3, %v2199_v63 }
0x1fd5   : > { %v2248_v7 = vpop.permute.xlu2 %2247 }
0x1fd6   : > { %v2250_v34 = vmul.f32 %v2248_v7, %v2239_v30 }
0x1fd8   : > { %2252 = vrot.lane.b32.xlu1 %v2250_v34, %s3232_s18 }
0x1fec   : > { %v2208_v5 = vpop.permute.xlu0 %2207 }
0x1fed   : > { %v2210_v39 = vmul.f32 %v2208_v5, %v2199_v63 }
0x1fef   : > { %2212 = vrot.lane.b32.xlu2 %v2210_v39, %s3232_s18 }
0x2049   : > { %v2213_v48 = vpop.permute.xlu2 %2212 }
0x204a   : > { %v2253_v45 = vpop.permute.xlu1 %2252  ;;  %v3854_v8 = vadd.f32 %v2213_v48, %v2205_v43 }
0x204b   : > { %v3856_v41 = vadd.f32 %v2253_v45, %v2245_v11 }
0x204c   : > { %3061 = vtanh.f32 %v3854_v8 }
0x204d   : > { %3063 = vtanh.f32 %v3856_v41 }
0x2052   : > { %v3062_v51 = vpop.eup %3061 }
0x2053   : > { %v3064_v56 = vpop.eup %3063  ;;  %2218 = vrot.lane.b32.xlu1 %v3062_v51, %s3233_s27  ;;  %v2324_v51 = vrot.slane %v3854_v8, 6 }
0x2054   : > { %2258 = vrot.lane.b32.xlu0 %v3064_v56, %s3233_s27 }
0x20c5   : > { %v2219_v46 = vpop.permute.xlu1 %2218 }
0x20c6   : > { %v2259_v14 = vpop.permute.xlu0 %2258  ;;  %v2221_v53 = vmul.f32 %v2219_v46, %v2199_v63 }
0x20c7   : > { %v3862_v9 = vmul.f32 %v2259_v14, %v2239_v30 }
0x20c8   : > { %2263 = vrot.lane.b32.xlu2 %v2221_v53, %s3234_s22 }
0x20c9   : > { %v2267_v54 = vrot.slane %v3862_v9, 2 }
0x20cb   : > { %2268 = vrot.lane.b32.xlu0 %v2267_v54, %s3233_s27  ;;  %v2364_v54 = vrot.slane %v3856_v41, 2 }
0x2122   : > { %v3867_v57 = vpop.permute.xlu2 %2263 }
0x213d   : > { %v2269_v59 = vpop.permute.xlu0 %2268 }
0x213e   : > { %v2271_v17 = vsel %vm646_vm9, %v3867_v57, %v2269_v59 }
0x213f   : > { %v2273_v60 = vrot.slane %v2271_v17, 2 }
0x2141   : > { %2767 = vmatmul.msk.f32.vlgmr.msrb.gmra.mxu2 %vm505_vm0, %v2273_v60 }
0x21c4   : > { %v2293_v62 = vpop.f32.mrf.mxu2 }
0x21c5   : > { %v2297_v55 = vrot.slane %v2293_v62, 4  ;;  %v2300_v33 = vrot.slane %v2293_v62, 6 }
0x21c7   : > { %v2299_v2 = vadd.f32 %v2297_v55, %v3717_v0  ;;  %v2302_v10 = vadd.f32 %v2300_v33, %v3714_v1 }
0x21c9   : > { %3065 = vtanh.f32 %v2299_v2  ;;  %v2768_v18 = vmul.f32 -1.442695, %v2299_v2  ;;  %v2769_v22 = vmul.f32 -1.442695, %v2302_v10 }
0x21ca   : > { %3067 = vtanh.f32 %v2302_v10 }
0x21cb   : > { %3069 = vpow2.f32 %v2768_v18 }
0x21cf   : > { %v3066_v12 = vpop.eup %3065 }
0x21d0   : > { %v3068_v15 = vpop.eup %3067  ;;  %2328 = vrot.lane.b32.xlu2 %v3066_v12, %s3231_s15 }
0x21d1   : > { %2368 = vrot.lane.b32.xlu1 %v3068_v15, %s3231_s15  ;;  %v3070_v61 = vpop.eup %3069 }
0x21d2   : > { %v2306_v19 = vadd.f32 1.0, %v3070_v61 }
0x21d4   : > { %3071 = vrcp.f32 %v2306_v19  ;;  %v2318_v32 = vand.u32 2147483648, %v2306_v19  ;;  %vm2312_vm3 = vweird.f32 %v2306_v19  ;;  %v2316_v34 = vand.u32 2147483647, %v2306_v19 }
0x21d5   : > { %3073 = vpow2.f32 %v2769_v22 }
0x21d6   : > { %v2319_v36 = vor.u32 1.1754944e-38, %v2318_v32  ;;  %vm2317_vm5 = vcmp.eq.f32.partialorder %v2316_v34, 8.507059e+37 }
0x21da   : > { %v3072_v20 = vpop.eup %3071 }
0x21db   : > { %v2308_v24 = vmul.f32 %v3072_v20, %v2306_v19  ;;  %v3074_v58 = vpop.eup %3073  ;;  %vm2313_vm2 = vweird.f32 %v3072_v20 }
0x21dc   : > { %v2346_v7 = vadd.f32 1.0, %v3074_v58  ;;  %vm2314_vm4 = vmor %vm2312_vm3, %vm2313_vm2 }
0x21dd   : > { %v2309_v28 = vsub.f32 1.0, %v2308_v24 }
0x21de   : > { %3075 = vrcp.f32 %v2346_v7  ;;  %v2358_v39 = vand.u32 2147483648, %v2346_v7  ;;  %vm2352_vm7 = vweird.f32 %v2346_v7  ;;  %v2356_v3 = vand.u32 2147483647, %v2346_v7 }
0x21df   : > { %v2310_v29 = vmul.f32 %v3072_v20, %v2309_v28 }
0x21e0   : > { %v2359_v43 = vor.u32 1.1754944e-38, %v2358_v39  ;;  %vm2357_vm13 = vcmp.eq.f32.partialorder %v2356_v3, 8.507059e+37 }
0x21e1   : > { %v2311_v30 = vadd.f32 %v3072_v20, %v2310_v29 }
0x21e3   : > { %v2315_v35 = vsel %vm2314_vm4, %v3072_v20, %v2311_v30 }
0x21e4   : > { %v2320_v21 = vsel %vm2317_vm5, %v2319_v36, %v2315_v35  ;;  %v3076_v37 = vpop.eup %3075 }
0x21e5   : > { %v2348_v38 = vmul.f32 %v3076_v37, %v2346_v7  ;;  %vm2353_vm6 = vweird.f32 %v3076_v37  ;;  %v2326_v56 = vmul.f32 %v2324_v51, %v2320_v21 }
0x21e6   : > { %vm2354_vm8 = vmor %vm2352_vm7, %vm2353_vm6 }
0x21e7   : > { %v2349_v4 = vsub.f32 1.0, %v2348_v38 }
0x21e9   : > { %v2350_v5 = vmul.f32 %v3076_v37, %v2349_v4 }
0x21eb   : > { %v2351_v63 = vadd.f32 %v3076_v37, %v2350_v5 }
0x21ed   : > { %v2355_v42 = vsel %vm2354_vm8, %v3076_v37, %v2351_v63 }
0x21ee   : > { %v2360_v48 = vsel %vm2357_vm13, %v2359_v43, %v2355_v42 }
0x21ef   : > { %v2366_v59 = vmul.f32 %v2364_v54, %v2360_v48 }
0x222a   : > { %v2329_v26 = vpop.permute.xlu2 %2328 }
0x222b   : > { %v2331_v27 = vmul.f32 %v2329_v26, %v2320_v21 }
0x222d   : > { %2333 = vrot.lane.b32.xlu1 %v2331_v27, %s3232_s18 }
0x2243   : > { %v2369_v11 = vpop.permute.xlu1 %2368 }
0x2244   : > { %v2371_v45 = vmul.f32 %v2369_v11, %v2360_v48 }
0x2246   : > { %2373 = vrot.lane.b32.xlu0 %v2371_v45, %s3232_s18 }
0x229f   : > { %v2334_v46 = vpop.permute.xlu1 %2333 }
0x22a0   : > { %v3879_v14 = vadd.f32 %v2334_v46, %v2326_v56 }
0x22a2   : > { %3077 = vtanh.f32 %v3879_v14 }
0x22a8   : > { %v3078_v53 = vpop.eup %3077 }
0x22a9   : > { %2339 = vrot.lane.b32.xlu0 %v3078_v53, %s3233_s27 }
0x22b8   : > { %v2374_v17 = vpop.permute.xlu0 %2373 }
0x22b9   : > { %v3884_v60 = vadd.f32 %v2374_v17, %v2366_v59 }
0x22bb   : > { %3079 = vtanh.f32 %v3884_v60  ;;  %v2483_v59 = vrot.slane %v3884_v60, 2 }
0x22c1   : > { %v3080_v62 = vpop.eup %3079 }
0x22c2   : > { %2379 = vrot.lane.b32.xlu2 %v3080_v62, %s3233_s27 }
0x231b   : > { %v2340_v8 = vpop.permute.xlu0 %2339 }
0x231c   : > { %v2380_v55 = vpop.permute.xlu2 %2379  ;;  %v2342_v33 = vmul.f32 %v2340_v8, %v2320_v21 }
0x231d   : > { %v3888_v2 = vmul.f32 %v2380_v55, %v2360_v48 }
0x231e   : > { %2384 = vrot.lane.b32.xlu1 %v2342_v33, %s3234_s22  ;;  %v2443_v33 = vrot.slane %v3879_v14, 6 }
0x231f   : > { %v2388_v10 = vrot.slane %v3888_v2, 6 }
0x2321   : > { %2389 = vrot.lane.b32.xlu2 %v2388_v10, %s3233_s27 }
0x237b   : > { %v2390_v41 = vpop.permute.xlu2 %2389 }
0x2390   : > { %v3893_v12 = vpop.permute.xlu1 %2384 }
0x2391   : > { %v2392_v15 = vsel %vm646_vm9, %v3893_v12, %v2390_v41 }
0x2392   : > { %v2394_v18 = vrot.slane %v2392_v15, 4 }
0x2394   : > { %2770 = vmatmul.msk.f32.vlgmr.msra.gmra.mxu3 %vm505_vm0, %v2394_v18 }
0x2417   : > { %v2414_v61 = vpop.f32.mrf.mxu3 }
0x2418   : > { %v2418_v19 = vrot.slane %v2414_v61, 2  ;;  %v2421_v20 = vadd.f32 %v2414_v61, %v3714_v1 }
0x241a   : > { %v2420_v22 = vadd.f32 %v2418_v19, %v3717_v0  ;;  %3081 = vtanh.f32 %v2421_v20  ;;  %v2772_v29 = vmul.f32 -1.442695, %v2421_v20 }
0x241c   : > { %3083 = vtanh.f32 %v2420_v22  ;;  %v2771_v58 = vmul.f32 -1.442695, %v2420_v22 }
0x241d   : > { %3085 = vpow2.f32 %v2772_v29 }
0x241e   : > { %3087 = vpow2.f32 %v2771_v58 }
0x2420   : > { %v3082_v24 = vpop.eup %3081 }
0x2421   : > { %2487 = vrot.lane.b32.xlu0 %v3082_v24, %s3231_s15 }
0x2422   : > { %v3084_v28 = vpop.eup %3083 }
0x2423   : > { %2447 = vrot.lane.b32.xlu1 %v3084_v28, %s3231_s15  ;;  %v3086_v7 = vpop.eup %3085 }
0x2424   : > { %v3088_v30 = vpop.eup %3087  ;;  %v2465_v32 = vadd.f32 1.0, %v3086_v7 }
0x2425   : > { %v2425_v34 = vadd.f32 1.0, %v3088_v30 }
0x2426   : > { %3089 = vrcp.f32 %v2465_v32  ;;  %v2477_v4 = vand.u32 2147483648, %v2465_v32  ;;  %vm2471_vm15 = vweird.f32 %v2465_v32  ;;  %v2475_v5 = vand.u32 2147483647, %v2465_v32 }
0x2427   : > { %3091 = vrcp.f32 %v2425_v34  ;;  %v2437_v39 = vand.u32 2147483648, %v2425_v34  ;;  %vm2431_vm3 = vweird.f32 %v2425_v34  ;;  %v2435_v42 = vand.u32 2147483647, %v2425_v34 }
0x2428   : > { %v2478_v43 = vor.u32 1.1754944e-38, %v2477_v4  ;;  %vm2476_vm5 = vcmp.eq.f32.partialorder %v2475_v5, 8.507059e+37 }
0x2429   : > { %v2438_v51 = vor.u32 1.1754944e-38, %v2437_v39  ;;  %vm2436_vm6 = vcmp.eq.f32.partialorder %v2435_v42, 8.507059e+37 }
0x242c   : > { %v3090_v1 = vpop.eup %3089 }
0x242d   : > { %v3092_v0 = vpop.eup %3091  ;;  %v2467_v35 = vmul.f32 %v3090_v1, %v2465_v32  ;;  %vm2472_vm14 = vweird.f32 %v3090_v1 }
0x242e   : > { %v2427_v36 = vmul.f32 %v3092_v0, %v2425_v34  ;;  %vm2432_vm1 = vweird.f32 %v3092_v0  ;;  %vm2473_vm2 = vmor %vm2471_vm15, %vm2472_vm14 }
0x242f   : > { %v2468_v26 = vsub.f32 1.0, %v2467_v35  ;;  %vm2433_vm4 = vmor %vm2431_vm3, %vm2432_vm1 }
0x2430   : > { %v2428_v21 = vsub.f32 1.0, %v2427_v36 }
0x2431   : > { %v2469_v27 = vmul.f32 %v3090_v1, %v2468_v26 }
0x2432   : > { %v2429_v37 = vmul.f32 %v3092_v0, %v2428_v21 }
0x2433   : > { %v2470_v38 = vadd.f32 %v3090_v1, %v2469_v27 }
0x2434   : > { %v2430_v63 = vadd.f32 %v3092_v0, %v2429_v37 }
0x2435   : > { %v2474_v3 = vsel %vm2473_vm2, %v3090_v1, %v2470_v38 }
0x2436   : > { %v2434_v11 = vsel %vm2433_vm4, %v3092_v0, %v2430_v63  ;;  %v2479_v45 = vsel %vm2476_vm5, %v2478_v43, %v2474_v3 }
0x2437   : > { %v2439_v53 = vsel %vm2436_vm6, %v2438_v51, %v2434_v11  ;;  %v2485_v17 = vmul.f32 %v2483_v59, %v2479_v45 }
0x2438   : > { %v2445_v10 = vmul.f32 %v2443_v33, %v2439_v53 }
0x2493   : > { %v2488_v48 = vpop.permute.xlu0 %2487 }
0x2494   : > { %v2490_v56 = vmul.f32 %v2488_v48, %v2479_v45 }
0x2495   : > { %v2448_v46 = vpop.permute.xlu1 %2447 }
0x2496   : > { %v2450_v54 = vmul.f32 %v2448_v46, %v2439_v53  ;;  %2492 = vrot.lane.b32.xlu2 %v2490_v56, %s3232_s18 }
0x2498   : > { %2452 = vrot.lane.b32.xlu0 %v2450_v54, %s3232_s18 }
0x24a0   : > { %2523 = vrot.lane.b32.xlu0 %v3784_v47, %s3233_s27 }
0x24f0   : > { %v2493_v62 = vpop.permute.xlu2 %2492 }
0x24f1   : > { %v2495_v8 = vadd.f32 %v2493_v62, %v2485_v17 }
0x24f3   : > { %3093 = vtanh.f32 %v2495_v8 }
0x24f9   : > { %v3094_v55 = vpop.eup %3093 }
0x24fa   : > { %2498 = vrot.lane.b32.xlu1 %v3094_v55, %s3233_s27 }
0x2502   : > { %2507 = vrot.lane.b32.xlu1 %v3888_v2, %s3233_s27 }
0x250a   : > { %2511 = vrot.lane.b32.xlu1 %v3862_v9, %s3233_s27  ;;  %v2453_v41 = vpop.permute.xlu0 %2452 }
0x250b   : > { %v2455_v47 = vadd.f32 %v2453_v41, %v2445_v10 }
0x250d   : > { %3095 = vtanh.f32 %v2455_v47 }
0x2512   : > { %v2524_v61 = vpop.permute.xlu0 %2523 }
0x2513   : > { %v3096_v60 = vpop.eup %3095  ;;  %v2526_v24 = vsel %vm646_vm9, %v3867_v57, %v2524_v61 }
0x2514   : > { %2458 = vrot.lane.b32.xlu2 %v3096_v60, %s3233_s27 }
0x251c   : > { %2519 = vrot.lane.b32.xlu2 %v3810_v40, %s3233_s27 }
0x2524   : > { %2527 = vrot.lane.b32.xlu2 %v3758_v25, %s3233_s27 }
0x252c   : > { %2535 = vrot.lane.b32.xlu2 %v3733_v6, %s3233_s27 }
0x256c   : > { %v2499_v14 = vpop.permute.xlu1 %2498 }
0x256d   : > { %v2501_v2 = vmul.f32 %v2499_v14, %v2479_v45 }
0x256e   : > { %v2459_v15 = vpop.permute.xlu2 %2458 }
0x256f   : > { %v2461_v18 = vmul.f32 %v2459_v15, %v2439_v53  ;;  %2503 = vrot.lane.b32.xlu0 %v2501_v2, %s3233_s27 }
0x2571   : > { %2532 = vrot.lane.b32.xlu1 %v2461_v18, %s3234_s22 }
0x2574   : > { %v2508_v40 = vpop.permute.xlu1 %2507 }
0x2575   : > { %v2510_v57 = vsel %vm646_vm9, %v3763_v44, %v2508_v40 }
0x2576   : > { %v2520_v9 = vpop.permute.xlu2 %2519 }
0x2577   : > { %2515 = vrot.lane.b32.xlu0 %v3837_v50, %s3233_s27  ;;  %v2522_v6 = vsel %vm646_vm9, %v3841_v31, %v2520_v9 }
0x2578   : > { %v2542_v28 = vsel %vm1514_vm10, %v2522_v6, %v2526_v24 }
0x257c   : > { %v2512_v25 = vpop.permute.xlu1 %2511 }
0x257e   : > { %v2528_v19 = vpop.permute.xlu2 %2527 }
0x257f   : > { %v2530_v20 = vsel %vm646_vm9, %v3893_v12, %v2528_v19 }
0x2580   : > { %v2543_v58 = vsel %vm1516_vm11, %v2542_v28, %v2530_v20 }
0x2586   : > { %v2536_v29 = vpop.permute.xlu2 %2535 }
0x25e1   : > { %v2504_v22 = vpop.permute.xlu0 %2503 }
0x25e2   : > { %v2506_v7 = vsel %vm646_vm9, %v3737_v52, %v2504_v22  ;;  %v2514_v52 = vsel %vm646_vm9, %v3789_v49, %v2512_v25 }
0x25e3   : > { %v2533_v50 = vpop.permute.xlu1 %2532  ;;  %v2539_v32 = vsel %vm1514_vm10, %v2506_v7, %v2510_v57 }
0x25e4   : > { %v2538_v30 = vsel %vm646_vm9, %v2533_v50, %v2536_v29  ;;  %v2540_v1 = vsel %vm1516_vm11, %v2539_v32, %v2514_v52 }
0x25e5   : > { %v2544_v31 = vsel %vm1518_vm12, %v2543_v58, %v2538_v30 }
0x25e6   : > { %v2546_v12 = vmul.f32 %v2544_v31, %v3457_v16 }
0x25e8   : > { %2548 = vst.msk [vmem:[%s476_s11 + $0x8] sm:$0xff] %vm505_vm0, %v2546_v12 }
0x25e9   : > { %v2516_v34 = vpop.permute.xlu0 %2515 }
0x25ea   : > { %v2518_v0 = vsel %vm646_vm9, %v3815_v23, %v2516_v34 }
0x25eb   : > { %v2541_v35 = vsel %vm1518_vm12, %v2540_v1, %v2518_v0 }
0x25ec   : > { %v2545_v36 = vmul.f32 %v2541_v35, %v3450_v13 }
0x25ee   : > { %2547 = vst.msk [vmem:[%s476_s11] sm:$0xff] %vm505_vm0, %v2545_v36 }
0x25ef PF: > { %s3989_s30 = sld [smem:[#allocation9_spill]]  ;;  %s3991_s27 = smov %s3217_s28 }
0x25f0   : > { %s3990_s9 = sld [smem:[#allocation10_spill]]  ;;  %s3992_s28 = smov %s3221_s29 }
0x25f5   : > { %p21_p7 = scmp.ge.s32.totalorder %s3989_s30, 4  }
0x25f6   : > { %s3993_s29 = smov %s3990_s9 }
0x25f7   :  { %23 = sbr.rel (!%p21_p7) target bundleno = 8 (0x8), region = 128 }
0x25fc   :  { %2570 = vsyncpa [#allocation3], 1 }
0x25fd   :  { %2572 = vsyncpa [#allocation3 + $0x1], 1 }
0x25fe   :  { %2573 = vsyncpa [#allocation5], 1 }
0x25ff   :  { %2575 = vsyncpa [#allocation5 + $0x1], 1 }

</bundles_post_ra>
